<compile_context>
chip_gen: v6e
topology: v6e:2x2x1
jax: 0.10.0
libtpu: 0.0.40
codegen_flags: <defaults>
</compile_context>

<pallas_src>
import functools
import math

import jax
import jax.numpy as jnp
import numpy as np
from jax.experimental import pallas as pl
from jax.experimental.pallas import tpu as pltpu


def _kernel(B, Tp, H, L, GW,
            xw_ref, cmat_ref, cbias_ref, w0_ref, wproj_ref,
            whh_ref, b_ref, fcv_ref, fcb_ref,
            o_ref,
            ih_ref, hs_ref, hr_ref):
    """Single-program kernel: conv+pool prologue, L fused BiLSTM layers, FC head."""
    G4 = 4 * GW          # fused gate width  [I|F|G|O], each GW lanes
    HW = GW              # padded hidden width [h_fwd(H) | h_bwd(H) | 0]
    N = Tp * B

    # ---- Conv1d(2->2,k3,p1) + ReLU + MaxPool1d(2) as one aligned matmul -----
    # xw cols ci*4+j hold x_pad[b,ci,2t+j]; cmat cols [c0_ev,c1_ev|pad||c0_od,c1_od|pad]
    y = jnp.maximum(
        jnp.dot(xw_ref[...], cmat_ref[...], preferred_element_type=jnp.float32)
        + cbias_ref[...], 0.0)                               # (N, 2*GW)
    pooled = jnp.maximum(y[:, 0:GW], y[:, GW:2 * GW])        # (N, GW); cols>=2 are 0

    # ---- Bidirectional LSTM, fwd/bwd fused into one padded recurrence -------
    # Fused gate columns: gate g, direction d -> cols [g*GW + d*H : g*GW + (d+1)*H];
    # g-gate columns pre-scaled x2 on host so tanh(x) = 2*sigmoid(2x) - 1.
    # TODO(synk): nn.LSTM inter-layer dropout=0.5 is train-mode only; eval
    # (identity) semantics are implemented here.
    for l in range(L):
        # Input projection for ALL timesteps (hoisted out of the recurrence).
        if l == 0:
            ih_both = jnp.dot(pooled, w0_ref[...],
                              preferred_element_type=jnp.float32)   # (N, 2*G4)
        else:
            x_cat = jnp.concatenate(
                [hs_ref[...].reshape(N, HW), hr_ref[...].reshape(N, HW)],
                axis=-1)                                            # (N, 2*HW)
            wp = wproj_ref[(l - 1) * 2 * HW: l * 2 * HW, :]         # (2*HW, 2*G4)
            ih_both = jnp.dot(x_cat, wp, preferred_element_type=jnp.float32)

        bias = b_ref[l:l + 1, :]                                    # (1, G4)
        ih3 = ih_both.reshape(Tp, B, 2 * G4)
        # Pre-fused ih buffer: one load + one add per recurrence step.
        for s in range(Tp):
            rs = Tp - 1 - s
            ih_ref[s] = ih3[s, :, 0:G4] + ih3[rs, :, G4:2 * G4] + bias

        whh = whh_ref[l * HW:(l + 1) * HW, :]                       # (HW, G4) bf16

        def step(s, carry, whh=whh):
            h, c = carry                                            # (B, HW) f32
            gates = ih_ref[s] + jnp.dot(h.astype(jnp.bfloat16), whh,
                                        preferred_element_type=jnp.float32)
            sg = jax.nn.sigmoid(gates)                              # one EUP pass
            i_g = sg[:, 0:GW]                                       # whole-vreg slices
            f_g = sg[:, GW:2 * GW]
            g_g = 2.0 * sg[:, 2 * GW:3 * GW] - 1.0                  # tanh via sigmoid
            o_g = sg[:, 3 * GW:4 * GW]
            c = f_g * c + i_g * g_g                                 # padded lanes stay 0
            h = o_g * jnp.tanh(c)
            hs_ref[s] = h                                           # by fwd time index
            hr_ref[Tp - 1 - s] = h                                  # by bwd time index
            return h, c

        init = (jnp.zeros((B, HW), jnp.float32),
                jnp.zeros((B, HW), jnp.float32))
        jax.lax.fori_loop(0, Tp, step, init,
                          unroll=True if Tp <= 16 else 8)

    # ---- Linear(2H -> 1) on the last timestep -------------------------------
    last = jnp.concatenate([hs_ref[Tp - 1], hr_ref[Tp - 1]], axis=-1)  # (B, 2*HW)
    o_ref[...] = (jnp.sum(last * fcv_ref[...], axis=-1, keepdims=True)
                  + fcb_ref[0])


def pack_params(params, H, L):
    """One-time host-side weight fusion into the lane-aligned padded layout."""
    GW = 128
    assert 2 * H <= GW, "padded gate layout requires 2*H <= 128"
    G4 = 4 * GW
    HW = GW

    # Conv as a matmul: cols [c0_even, c1_even | pad || c0_odd, c1_odd | pad].
    cw = np.asarray(params["conv_w"], np.float32)        # (2, 2, 3)
    cb = np.asarray(params["conv_b"], np.float32)        # (2,)
    cmat = np.zeros((GW, 2 * GW), np.float32)
    cbias = np.zeros((1, 2 * GW), np.float32)
    for co in range(2):
        cbias[0, co] = cb[co]
        cbias[0, GW + co] = cb[co]
        for ci in range(2):
            for k in range(3):
                cmat[ci * 4 + k, co] = cw[co, ci, k]              # even output (2t)
                cmat[ci * 4 + k + 1, GW + co] = cw[co, ci, k]     # odd output (2t+1)

    whh = np.zeros((L * HW, G4), np.float32)          # block-diag recurrence, padded
    bfu = np.zeros((L, G4), np.float32)               # fused bias (b_ih + b_hh)
    w0 = np.zeros((HW, 2 * G4), np.float32)           # layer-0 proj [fwd G4 | bwd G4]
    wproj = np.zeros((max(L - 1, 1) * 2 * HW, 2 * G4), np.float32)

    for l in range(L):
        for d in range(2):                            # 0 = fwd, 1 = bwd (reverse)
            w_ih, w_hh, b_ih, b_hh = params["lstm"][l * 2 + d]
            w_ih = np.asarray(w_ih, np.float32)       # (4H, in_l)
            w_hh = np.asarray(w_hh, np.float32)       # (4H, H)
            bias = np.asarray(b_ih, np.float32) + np.asarray(b_hh, np.float32)
            for g in range(4):
                sc = 2.0 if g == 2 else 1.0           # tanh(x) = 2*sigmoid(2x) - 1
                cols = slice(g * GW + d * H, g * GW + (d + 1) * H)
                whh[l * HW + d * H: l * HW + (d + 1) * H, cols] = \
                    w_hh[g * H:(g + 1) * H, :].T * sc
                bfu[l, cols] = bias[g * H:(g + 1) * H] * sc
                wg = w_ih[g * H:(g + 1) * H, :]       # (H, in_l)
                ocol = d * G4 + g * GW + d * H        # column base in combined proj
                if l == 0:
                    w0[0:2, ocol:ocol + H] = wg.T * sc
                else:
                    roff = (l - 1) * 2 * HW
                    # rows 0:H read the fwd half of h_s; rows HW+H:HW+2H the bwd
                    # half of h_r -> no in-kernel slicing of hidden states.
                    wproj[roff: roff + H, ocol:ocol + H] = wg[:, 0:H].T * sc
                    wproj[roff + HW + H: roff + HW + 2 * H, ocol:ocol + H] = \
                        wg[:, H:2 * H].T * sc

    fcw = np.asarray(params["fc_w"], np.float32)      # (1, 2H)
    fcv = np.zeros((1, 2 * HW), np.float32)
    fcv[0, 0:H] = fcw[0, 0:H]
    fcv[0, HW + H: HW + 2 * H] = fcw[0, H:2 * H]

    return dict(
        cmat=jnp.asarray(cmat), cbias=jnp.asarray(cbias),
        w0=jnp.asarray(w0), wproj=jnp.asarray(wproj),
        whh=jnp.asarray(whh).astype(jnp.bfloat16),    # bf16 -> single-pass MXU
        b=jnp.asarray(bfu), fcv=jnp.asarray(fcv),
        fcb=jnp.asarray(params["fc_b"], jnp.float32).reshape(1),
    )


@functools.partial(jax.jit, static_argnames=("H", "L"))
def cnn_bilstm_pallas(x, packed, H, L):
    B, T, C = x.shape
    assert C == 2 and T % 2 == 0
    Tp = T // 2
    GW = 128
    G4 = 4 * GW
    HW = GW
    N = Tp * B

    # im2col windows for conv(k3,p1)+pool(2), time-major, zero-padded to 128 lanes.
    xc = jnp.transpose(x, (0, 2, 1)).astype(jnp.float32)          # (B, 2, T)
    xp = jnp.pad(xc, ((0, 0), (0, 0), (1, 1)))                    # (B, 2, T+2)
    idx = 2 * jnp.arange(Tp)[:, None] + jnp.arange(4)[None, :]    # (Tp, 4)
    win = xp[:, :, idx]                                           # (B, 2, Tp, 4)
    xw = jnp.transpose(win, (2, 0, 1, 3)).reshape(N, 8)           # (N, 8) col ci*4+j
    xw = jnp.pad(xw, ((0, 0), (0, GW - 8)))                       # (N, 128)

    kernel = functools.partial(_kernel, B, Tp, H, L, GW)
    vmem = pl.BlockSpec(memory_space=pltpu.MemorySpace.VMEM)
    smem = pl.BlockSpec(memory_space=pltpu.MemorySpace.SMEM)
    return pl.pallas_call(
        kernel,
        out_shape=jax.ShapeDtypeStruct((B, 1), jnp.float32),
        in_specs=[vmem] * 8 + [smem],
        out_specs=vmem,
        scratch_shapes=[
            pltpu.VMEM((Tp, B, G4), jnp.float32),   # fused ih (fwd[s]+bwd[Tp-1-s]+bias)
            pltpu.VMEM((Tp, B, HW), jnp.float32),   # padded h, indexed by fwd time
            pltpu.VMEM((Tp, B, HW), jnp.float32),   # padded h, indexed by bwd time
        ],
        # Explicit VMEM budget (everything here is ~2 MB; 32 MB is safe on all gens).
        compiler_params=pltpu.CompilerParams(vmem_limit_bytes=32 * 1024 * 1024),
    )(xw, packed["cmat"], packed["cbias"], packed["w0"], packed["wproj"],
      packed["whh"], packed["b"], packed["fcv"], packed["fcb"])


def init_params(key, H, L):
    def u(k, shape, bound):
        return jax.random.uniform(k, shape, jnp.float32, -bound, bound)

    ks = jax.random.split(key, 5)
    p = {}
    cb = math.sqrt(1.0 / (2 * 3))
    p["conv_w"] = u(ks[0], (2, 2, 3), cb)
    p["conv_b"] = u(ks[1], (2,), cb)
    lb = math.sqrt(1.0 / H)
    p["lstm"] = []
    keys = jax.random.split(ks[2], L * 2 * 4)
    i = 0
    for l in range(L):
        in_l = 2 if l == 0 else 2 * H
        for _ in range(2):
            w_ih = u(keys[i], (4 * H, in_l), lb); i += 1
            w_hh = u(keys[i], (4 * H, H), lb); i += 1
            b_ih = u(keys[i], (4 * H,), lb); i += 1
            b_hh = u(keys[i], (4 * H,), lb); i += 1
            p["lstm"].append((w_ih, w_hh, b_ih, b_hh))
    fb = math.sqrt(1.0 / (2 * H))
    p["fc_w"] = u(ks[3], (1, 2 * H), fb)
    p["fc_b"] = u(ks[4], (1,), fb)
    return p


def cnn_bilstm_ref(x, params, H, L):
    """Pure-JAX reference mirroring the PyTorch forward (eval mode)."""
    B, T, _ = x.shape
    xc = jnp.transpose(x, (0, 2, 1))                       # (B, 2, T)  NCW
    xp = jnp.pad(xc, ((0, 0), (0, 0), (1, 1)))
    w, b = params["conv_w"], params["conv_b"]
    y = jnp.stack([
        b[co] + sum(w[co, ci, k] * xp[:, ci, k:k + T]
                    for ci in range(2) for k in range(3))
        for co in range(2)], axis=1)                       # (B, 2, T)
    y = jnp.maximum(y, 0.0)
    Tp = T // 2
    y = y[:, :, :Tp * 2].reshape(B, 2, Tp, 2).max(axis=-1)
    seq = jnp.transpose(y, (0, 2, 1))                      # (B, Tp, 2)

    def cell(x_t, h, c, w_ih, w_hh, b_ih, b_hh):
        g = x_t @ w_ih.T + h @ w_hh.T + b_ih + b_hh
        i = jax.nn.sigmoid(g[:, 0:H]); f = jax.nn.sigmoid(g[:, H:2 * H])
        gg = jnp.tanh(g[:, 2 * H:3 * H]); o = jax.nn.sigmoid(g[:, 3 * H:4 * H])
        c = f * c + i * gg
        return o * jnp.tanh(c), c

    inp = seq
    for l in range(L):
        outs = []
        for d in range(2):
            w_ih, w_hh, b_ih, b_hh = params["lstm"][l * 2 + d]
            h = jnp.zeros((B, H)); c = jnp.zeros((B, H))
            hs = [None] * Tp
            order = range(Tp) if d == 0 else range(Tp - 1, -1, -1)
            for t in order:
                h, c = cell(inp[:, t, :], h, c, w_ih, w_hh, b_ih, b_hh)
                hs[t] = h
            outs.append(jnp.stack(hs, axis=1))
        inp = jnp.concatenate(outs, axis=-1)               # (B, Tp, 2H)
    last = inp[:, -1, :]
    return last @ params["fc_w"].T + params["fc_b"]


if __name__ == "__main__":
    B, T, H, L = 2, 16, 32, 2
    key = jax.random.PRNGKey(0)
    kx, kp = jax.random.split(key)
    x = jax.random.normal(kx, (B, T, 2), jnp.float32)
    params = init_params(kp, H, L)

    packed = pack_params(params, H, L)          # one-time host-side weight fusion
    out = cnn_bilstm_pallas(x, packed, H, L)
    out = jax.block_until_ready(out)
    assert out.shape == (B, 1)

    ref = cnn_bilstm_ref(x, params, H, L)
    # Tolerance covers the bf16 recurrence matmul (f32 accumulation, f32 state).
    np.testing.assert_allclose(np.asarray(out), np.asarray(ref),
                               atol=2e-2, rtol=2e-2)
    print("KERNEL_OK")
</pallas_src>

<mosaic_0001>
module attributes {stable_mosaic.version = 11 : i64} {
  func.func @_kernel(%arg0: memref<16x128xf32, #tpu.memory_space<vmem>>, %arg1: memref<128x256xf32, #tpu.memory_space<vmem>>, %arg2: memref<1x256xf32, #tpu.memory_space<vmem>>, %arg3: memref<128x1024xf32, #tpu.memory_space<vmem>>, %arg4: memref<256x1024xf32, #tpu.memory_space<vmem>>, %arg5: memref<256x512xbf16, #tpu.memory_space<vmem>>, %arg6: memref<2x512xf32, #tpu.memory_space<vmem>>, %arg7: memref<1x256xf32, #tpu.memory_space<vmem>>, %arg8: memref<1xf32, #tpu.memory_space<smem>>, %arg9: memref<2x1xf32, #tpu.memory_space<vmem>>, %arg10: memref<8x2x512xf32, #tpu.memory_space<vmem>>, %arg11: memref<8x2x128xf32, #tpu.memory_space<vmem>>, %arg12: memref<8x2x128xf32, #tpu.memory_space<vmem>>) attributes {dimension_semantics = [], scalar_prefetch = 0 : i64, scratch_operands = 3 : i64, tpu.core_type = #tpu.core_type<tc>} {
    %c0 = arith.constant 0 : index
    %c0_0 = arith.constant 0 : index
    %0 = vector.load %arg0[%c0, %c0_0] : memref<16x128xf32, #tpu.memory_space<vmem>>, vector<16x128xf32>
    %c0_1 = arith.constant 0 : index
    %c0_2 = arith.constant 0 : index
    %1 = vector.load %arg1[%c0_1, %c0_2] : memref<128x256xf32, #tpu.memory_space<vmem>>, vector<128x256xf32>
    %cst = arith.constant dense<0.000000e+00> : vector<16x256xf32>
    %2 = tpu.matmul %0, %1, %cst {dimension_numbers = #tpu.dot_dimension_numbers<[1], [0], [0], [1], [0, 0, 1, 1], [], []>} : vector<16x128xf32>, vector<128x256xf32>, vector<16x256xf32> -> vector<16x256xf32>
    %c0_3 = arith.constant 0 : index
    %c0_4 = arith.constant 0 : index
    %3 = vector.load %arg2[%c0_3, %c0_4] : memref<1x256xf32, #tpu.memory_space<vmem>>, vector<1x256xf32>
    %4 = vector.broadcast %3 : vector<1x256xf32> to vector<16x256xf32>
    %5 = arith.addf %2, %4 : vector<16x256xf32>
    %cst_5 = arith.constant 0.000000e+00 : f32
    %6 = vector.broadcast %cst_5 : f32 to vector<16x256xf32>
    %7 = arith.maximumf %5, %6 : vector<16x256xf32>
    %8 = vector.extract_strided_slice %7 {offsets = [0, 0], sizes = [16, 128], strides = [1, 1]} : vector<16x256xf32> to vector<16x128xf32>
    %9 = vector.extract_strided_slice %7 {offsets = [0, 128], sizes = [16, 128], strides = [1, 1]} : vector<16x256xf32> to vector<16x128xf32>
    %10 = arith.maximumf %8, %9 : vector<16x128xf32>
    %c0_6 = arith.constant 0 : index
    %c0_7 = arith.constant 0 : index
    %11 = vector.load %arg3[%c0_6, %c0_7] : memref<128x1024xf32, #tpu.memory_space<vmem>>, vector<128x1024xf32>
    %cst_8 = arith.constant dense<0.000000e+00> : vector<16x1024xf32>
    %12 = tpu.matmul %10, %11, %cst_8 {dimension_numbers = #tpu.dot_dimension_numbers<[1], [0], [0], [1], [0, 0, 1, 1], [], []>} : vector<16x128xf32>, vector<128x1024xf32>, vector<16x1024xf32> -> vector<16x1024xf32>
    %c0_9 = arith.constant 0 : index
    %c0_10 = arith.constant 0 : index
    %13 = vector.load %arg6[%c0_9, %c0_10] : memref<2x512xf32, #tpu.memory_space<vmem>>, vector<1x512xf32>
    %14 = vector.shape_cast %12 : vector<16x1024xf32> to vector<8x2x1024xf32>
    %15 = vector.extract_strided_slice %14 {offsets = [0, 0, 0], sizes = [1, 2, 512], strides = [1, 1, 1]} : vector<8x2x1024xf32> to vector<1x2x512xf32>
    %16 = vector.shape_cast %15 : vector<1x2x512xf32> to vector<2x512xf32>
    %17 = vector.extract_strided_slice %14 {offsets = [7, 0, 512], sizes = [1, 2, 512], strides = [1, 1, 1]} : vector<8x2x1024xf32> to vector<1x2x512xf32>
    %18 = vector.shape_cast %17 : vector<1x2x512xf32> to vector<2x512xf32>
    %19 = arith.addf %16, %18 : vector<2x512xf32>
    %20 = vector.broadcast %13 : vector<1x512xf32> to vector<2x512xf32>
    %21 = arith.addf %19, %20 : vector<2x512xf32>
    %c0_11 = arith.constant 0 : index
    %c0_12 = arith.constant 0 : index
    %c0_13 = arith.constant 0 : index
    %22 = vector.load %arg10[%c0_11, %c0_12, %c0_13] : memref<8x2x512xf32, #tpu.memory_space<vmem>>, vector<1x2x512xf32>
    %23 = vector.shape_cast %22 : vector<1x2x512xf32> to vector<2x512xf32>
    %24 = vector.shape_cast %21 : vector<2x512xf32> to vector<1x2x512xf32>
    tpu.vector_store %arg10[%c0_11, %c0_12, %c0_13], %24 {strides = array<i32>} : memref<8x2x512xf32, #tpu.memory_space<vmem>>, vector<1x2x512xf32>,
    %25 = vector.extract_strided_slice %14 {offsets = [1, 0, 0], sizes = [1, 2, 512], strides = [1, 1, 1]} : vector<8x2x1024xf32> to vector<1x2x512xf32>
    %26 = vector.shape_cast %25 : vector<1x2x512xf32> to vector<2x512xf32>
    %27 = vector.extract_strided_slice %14 {offsets = [6, 0, 512], sizes = [1, 2, 512], strides = [1, 1, 1]} : vector<8x2x1024xf32> to vector<1x2x512xf32>
    %28 = vector.shape_cast %27 : vector<1x2x512xf32> to vector<2x512xf32>
    %29 = arith.addf %26, %28 : vector<2x512xf32>
    %30 = vector.broadcast %13 : vector<1x512xf32> to vector<2x512xf32>
    %31 = arith.addf %29, %30 : vector<2x512xf32>
    %c1 = arith.constant 1 : index
    %c0_14 = arith.constant 0 : index
    %c0_15 = arith.constant 0 : index
    %32 = vector.load %arg10[%c1, %c0_14, %c0_15] : memref<8x2x512xf32, #tpu.memory_space<vmem>>, vector<1x2x512xf32>
    %33 = vector.shape_cast %32 : vector<1x2x512xf32> to vector<2x512xf32>
    %34 = vector.shape_cast %31 : vector<2x512xf32> to vector<1x2x512xf32>
    tpu.vector_store %arg10[%c1, %c0_14, %c0_15], %34 {strides = array<i32>} : memref<8x2x512xf32, #tpu.memory_space<vmem>>, vector<1x2x512xf32>,
    %35 = vector.extract_strided_slice %14 {offsets = [2, 0, 0], sizes = [1, 2, 512], strides = [1, 1, 1]} : vector<8x2x1024xf32> to vector<1x2x512xf32>
    %36 = vector.shape_cast %35 : vector<1x2x512xf32> to vector<2x512xf32>
    %37 = vector.extract_strided_slice %14 {offsets = [5, 0, 512], sizes = [1, 2, 512], strides = [1, 1, 1]} : vector<8x2x1024xf32> to vector<1x2x512xf32>
    %38 = vector.shape_cast %37 : vector<1x2x512xf32> to vector<2x512xf32>
    %39 = arith.addf %36, %38 : vector<2x512xf32>
    %40 = vector.broadcast %13 : vector<1x512xf32> to vector<2x512xf32>
    %41 = arith.addf %39, %40 : vector<2x512xf32>
    %c2 = arith.constant 2 : index
    %c0_16 = arith.constant 0 : index
    %c0_17 = arith.constant 0 : index
    %42 = vector.load %arg10[%c2, %c0_16, %c0_17] : memref<8x2x512xf32, #tpu.memory_space<vmem>>, vector<1x2x512xf32>
    %43 = vector.shape_cast %42 : vector<1x2x512xf32> to vector<2x512xf32>
    %44 = vector.shape_cast %41 : vector<2x512xf32> to vector<1x2x512xf32>
    tpu.vector_store %arg10[%c2, %c0_16, %c0_17], %44 {strides = array<i32>} : memref<8x2x512xf32, #tpu.memory_space<vmem>>, vector<1x2x512xf32>,
    %45 = vector.extract_strided_slice %14 {offsets = [3, 0, 0], sizes = [1, 2, 512], strides = [1, 1, 1]} : vector<8x2x1024xf32> to vector<1x2x512xf32>
    %46 = vector.shape_cast %45 : vector<1x2x512xf32> to vector<2x512xf32>
    %47 = vector.extract_strided_slice %14 {offsets = [4, 0, 512], sizes = [1, 2, 512], strides = [1, 1, 1]} : vector<8x2x1024xf32> to vector<1x2x512xf32>
    %48 = vector.shape_cast %47 : vector<1x2x512xf32> to vector<2x512xf32>
    %49 = arith.addf %46, %48 : vector<2x512xf32>
    %50 = vector.broadcast %13 : vector<1x512xf32> to vector<2x512xf32>
    %51 = arith.addf %49, %50 : vector<2x512xf32>
    %c3 = arith.constant 3 : index
    %c0_18 = arith.constant 0 : index
    %c0_19 = arith.constant 0 : index
    %52 = vector.load %arg10[%c3, %c0_18, %c0_19] : memref<8x2x512xf32, #tpu.memory_space<vmem>>, vector<1x2x512xf32>
    %53 = vector.shape_cast %52 : vector<1x2x512xf32> to vector<2x512xf32>
    %54 = vector.shape_cast %51 : vector<2x512xf32> to vector<1x2x512xf32>
    tpu.vector_store %arg10[%c3, %c0_18, %c0_19], %54 {strides = array<i32>} : memref<8x2x512xf32, #tpu.memory_space<vmem>>, vector<1x2x512xf32>,
    %55 = vector.extract_strided_slice %14 {offsets = [4, 0, 0], sizes = [1, 2, 512], strides = [1, 1, 1]} : vector<8x2x1024xf32> to vector<1x2x512xf32>
    %56 = vector.shape_cast %55 : vector<1x2x512xf32> to vector<2x512xf32>
    %57 = vector.extract_strided_slice %14 {offsets = [3, 0, 512], sizes = [1, 2, 512], strides = [1, 1, 1]} : vector<8x2x1024xf32> to vector<1x2x512xf32>
    %58 = vector.shape_cast %57 : vector<1x2x512xf32> to vector<2x512xf32>
    %59 = arith.addf %56, %58 : vector<2x512xf32>
    %60 = vector.broadcast %13 : vector<1x512xf32> to vector<2x512xf32>
    %61 = arith.addf %59, %60 : vector<2x512xf32>
    %c4 = arith.constant 4 : index
    %c0_20 = arith.constant 0 : index
    %c0_21 = arith.constant 0 : index
    %62 = vector.load %arg10[%c4, %c0_20, %c0_21] : memref<8x2x512xf32, #tpu.memory_space<vmem>>, vector<1x2x512xf32>
    %63 = vector.shape_cast %62 : vector<1x2x512xf32> to vector<2x512xf32>
    %64 = vector.shape_cast %61 : vector<2x512xf32> to vector<1x2x512xf32>
    tpu.vector_store %arg10[%c4, %c0_20, %c0_21], %64 {strides = array<i32>} : memref<8x2x512xf32, #tpu.memory_space<vmem>>, vector<1x2x512xf32>,
    %65 = vector.extract_strided_slice %14 {offsets = [5, 0, 0], sizes = [1, 2, 512], strides = [1, 1, 1]} : vector<8x2x1024xf32> to vector<1x2x512xf32>
    %66 = vector.shape_cast %65 : vector<1x2x512xf32> to vector<2x512xf32>
    %67 = vector.extract_strided_slice %14 {offsets = [2, 0, 512], sizes = [1, 2, 512], strides = [1, 1, 1]} : vector<8x2x1024xf32> to vector<1x2x512xf32>
    %68 = vector.shape_cast %67 : vector<1x2x512xf32> to vector<2x512xf32>
    %69 = arith.addf %66, %68 : vector<2x512xf32>
    %70 = vector.broadcast %13 : vector<1x512xf32> to vector<2x512xf32>
    %71 = arith.addf %69, %70 : vector<2x512xf32>
    %c5 = arith.constant 5 : index
    %c0_22 = arith.constant 0 : index
    %c0_23 = arith.constant 0 : index
    %72 = vector.load %arg10[%c5, %c0_22, %c0_23] : memref<8x2x512xf32, #tpu.memory_space<vmem>>, vector<1x2x512xf32>
    %73 = vector.shape_cast %72 : vector<1x2x512xf32> to vector<2x512xf32>
    %74 = vector.shape_cast %71 : vector<2x512xf32> to vector<1x2x512xf32>
    tpu.vector_store %arg10[%c5, %c0_22, %c0_23], %74 {strides = array<i32>} : memref<8x2x512xf32, #tpu.memory_space<vmem>>, vector<1x2x512xf32>,
    %75 = vector.extract_strided_slice %14 {offsets = [6, 0, 0], sizes = [1, 2, 512], strides = [1, 1, 1]} : vector<8x2x1024xf32> to vector<1x2x512xf32>
    %76 = vector.shape_cast %75 : vector<1x2x512xf32> to vector<2x512xf32>
    %77 = vector.extract_strided_slice %14 {offsets = [1, 0, 512], sizes = [1, 2, 512], strides = [1, 1, 1]} : vector<8x2x1024xf32> to vector<1x2x512xf32>
    %78 = vector.shape_cast %77 : vector<1x2x512xf32> to vector<2x512xf32>
    %79 = arith.addf %76, %78 : vector<2x512xf32>
    %80 = vector.broadcast %13 : vector<1x512xf32> to vector<2x512xf32>
    %81 = arith.addf %79, %80 : vector<2x512xf32>
    %c6 = arith.constant 6 : index
    %c0_24 = arith.constant 0 : index
    %c0_25 = arith.constant 0 : index
    %82 = vector.load %arg10[%c6, %c0_24, %c0_25] : memref<8x2x512xf32, #tpu.memory_space<vmem>>, vector<1x2x512xf32>
    %83 = vector.shape_cast %82 : vector<1x2x512xf32> to vector<2x512xf32>
    %84 = vector.shape_cast %81 : vector<2x512xf32> to vector<1x2x512xf32>
    tpu.vector_store %arg10[%c6, %c0_24, %c0_25], %84 {strides = array<i32>} : memref<8x2x512xf32, #tpu.memory_space<vmem>>, vector<1x2x512xf32>,
    %85 = vector.extract_strided_slice %14 {offsets = [7, 0, 0], sizes = [1, 2, 512], strides = [1, 1, 1]} : vector<8x2x1024xf32> to vector<1x2x512xf32>
    %86 = vector.shape_cast %85 : vector<1x2x512xf32> to vector<2x512xf32>
    %87 = vector.extract_strided_slice %14 {offsets = [0, 0, 512], sizes = [1, 2, 512], strides = [1, 1, 1]} : vector<8x2x1024xf32> to vector<1x2x512xf32>
    %88 = vector.shape_cast %87 : vector<1x2x512xf32> to vector<2x512xf32>
    %89 = arith.addf %86, %88 : vector<2x512xf32>
    %90 = vector.broadcast %13 : vector<1x512xf32> to vector<2x512xf32>
    %91 = arith.addf %89, %90 : vector<2x512xf32>
    %c7 = arith.constant 7 : index
    %c0_26 = arith.constant 0 : index
    %c0_27 = arith.constant 0 : index
    %92 = vector.load %arg10[%c7, %c0_26, %c0_27] : memref<8x2x512xf32, #tpu.memory_space<vmem>>, vector<1x2x512xf32>
    %93 = vector.shape_cast %92 : vector<1x2x512xf32> to vector<2x512xf32>
    %94 = vector.shape_cast %91 : vector<2x512xf32> to vector<1x2x512xf32>
    tpu.vector_store %arg10[%c7, %c0_26, %c0_27], %94 {strides = array<i32>} : memref<8x2x512xf32, #tpu.memory_space<vmem>>, vector<1x2x512xf32>,
    %c0_28 = arith.constant 0 : index
    %c0_29 = arith.constant 0 : index
    %95 = vector.load %arg5[%c0_28, %c0_29] : memref<256x512xbf16, #tpu.memory_space<vmem>>, vector<128x512xbf16>
    %cst_30 = arith.constant 0.000000e+00 : f32
    %96 = vector.broadcast %cst_30 : f32 to vector<2x128xf32>
    %cst_31 = arith.constant 0.000000e+00 : f32
    %97 = vector.broadcast %cst_31 : f32 to vector<2x128xf32>
    %c0_i32 = arith.constant 0 : i32
    %98 = arith.index_cast %c0_i32 : i32 to index
    %c0_32 = arith.constant 0 : index
    %c0_33 = arith.constant 0 : index
    %99 = vector.load %arg10[%98, %c0_32, %c0_33] : memref<8x2x512xf32, #tpu.memory_space<vmem>>, vector<1x2x512xf32>
    %100 = vector.shape_cast %99 : vector<1x2x512xf32> to vector<2x512xf32>
    %101 = arith.truncf %96 : vector<2x128xf32> to vector<2x128xbf16>
    %cst_34 = arith.constant dense<0.000000e+00> : vector<2x512xf32>
    %102 = tpu.matmul %101, %95, %cst_34 {dimension_numbers = #tpu.dot_dimension_numbers<[1], [0], [0], [1], [0, 0, 1, 1], [], []>} : vector<2x128xbf16>, vector<128x512xbf16>, vector<2x512xf32> -> vector<2x512xf32>
    %103 = arith.addf %100, %102 : vector<2x512xf32>
    %104 = arith.negf %103 : vector<2x512xf32>
    %105 = math.exp %104 : vector<2x512xf32>
    %cst_35 = arith.constant 1.000000e+00 : f32
    %106 = vector.broadcast %cst_35 : f32 to vector<2x512xf32>
    %107 = arith.addf %106, %105 : vector<2x512xf32>
    %108 = arith.divf %106, %107 : vector<2x512xf32>
    %109 = vector.extract_strided_slice %108 {offsets = [0, 0], sizes = [2, 128], strides = [1, 1]} : vector<2x512xf32> to vector<2x128xf32>
    %110 = vector.extract_strided_slice %108 {offsets = [0, 128], sizes = [2, 128], strides = [1, 1]} : vector<2x512xf32> to vector<2x128xf32>
    %111 = vector.extract_strided_slice %108 {offsets = [0, 256], sizes = [2, 128], strides = [1, 1]} : vector<2x512xf32> to vector<2x128xf32>
    %cst_36 = arith.constant 2.000000e+00 : f32
    %112 = vector.broadcast %cst_36 : f32 to vector<2x128xf32>
    %113 = arith.mulf %112, %111 : vector<2x128xf32>
    %cst_37 = arith.constant 1.000000e+00 : f32
    %114 = vector.broadcast %cst_37 : f32 to vector<2x128xf32>
    %115 = arith.subf %113, %114 : vector<2x128xf32>
    %116 = vector.extract_strided_slice %108 {offsets = [0, 384], sizes = [2, 128], strides = [1, 1]} : vector<2x512xf32> to vector<2x128xf32>
    %117 = arith.mulf %110, %97 : vector<2x128xf32>
    %118 = arith.mulf %109, %115 : vector<2x128xf32>
    %119 = arith.addf %117, %118 : vector<2x128xf32>
    %120 = math.tanh %119 : vector<2x128xf32>
    %121 = arith.mulf %116, %120 : vector<2x128xf32>
    %122 = arith.index_cast %c0_i32 : i32 to index
    %c0_38 = arith.constant 0 : index
    %c0_39 = arith.constant 0 : index
    %123 = vector.load %arg11[%122, %c0_38, %c0_39] : memref<8x2x128xf32, #tpu.memory_space<vmem>>, vector<1x2x128xf32>
    %124 = vector.shape_cast %123 : vector<1x2x128xf32> to vector<2x128xf32>
    %125 = vector.shape_cast %121 : vector<2x128xf32> to vector<1x2x128xf32>
    tpu.vector_store %arg11[%122, %c0_38, %c0_39], %125 {strides = array<i32>} : memref<8x2x128xf32, #tpu.memory_space<vmem>>, vector<1x2x128xf32>,
    %c7_i32 = arith.constant 7 : i32
    %126 = arith.subi %c7_i32, %c0_i32 : i32
    %127 = arith.index_cast %126 : i32 to index
    %c0_40 = arith.constant 0 : index
    %c0_41 = arith.constant 0 : index
    %128 = vector.load %arg12[%127, %c0_40, %c0_41] : memref<8x2x128xf32, #tpu.memory_space<vmem>>, vector<1x2x128xf32>
    %129 = vector.shape_cast %128 : vector<1x2x128xf32> to vector<2x128xf32>
    %130 = vector.shape_cast %121 : vector<2x128xf32> to vector<1x2x128xf32>
    tpu.vector_store %arg12[%127, %c0_40, %c0_41], %130 {strides = array<i32>} : memref<8x2x128xf32, #tpu.memory_space<vmem>>, vector<1x2x128xf32>,
    %c1_i32 = arith.constant 1 : i32
    %131 = arith.index_cast %c1_i32 : i32 to index
    %c0_42 = arith.constant 0 : index
    %c0_43 = arith.constant 0 : index
    %132 = vector.load %arg10[%131, %c0_42, %c0_43] : memref<8x2x512xf32, #tpu.memory_space<vmem>>, vector<1x2x512xf32>
    %133 = vector.shape_cast %132 : vector<1x2x512xf32> to vector<2x512xf32>
    %134 = arith.truncf %121 : vector<2x128xf32> to vector<2x128xbf16>
    %cst_44 = arith.constant dense<0.000000e+00> : vector<2x512xf32>
    %135 = tpu.matmul %134, %95, %cst_44 {dimension_numbers = #tpu.dot_dimension_numbers<[1], [0], [0], [1], [0, 0, 1, 1], [], []>} : vector<2x128xbf16>, vector<128x512xbf16>, vector<2x512xf32> -> vector<2x512xf32>
    %136 = arith.addf %133, %135 : vector<2x512xf32>
    %137 = arith.negf %136 : vector<2x512xf32>
    %138 = math.exp %137 : vector<2x512xf32>
    %cst_45 = arith.constant 1.000000e+00 : f32
    %139 = vector.broadcast %cst_45 : f32 to vector<2x512xf32>
    %140 = arith.addf %139, %138 : vector<2x512xf32>
    %141 = arith.divf %139, %140 : vector<2x512xf32>
    %142 = vector.extract_strided_slice %141 {offsets = [0, 0], sizes = [2, 128], strides = [1, 1]} : vector<2x512xf32> to vector<2x128xf32>
    %143 = vector.extract_strided_slice %141 {offsets = [0, 128], sizes = [2, 128], strides = [1, 1]} : vector<2x512xf32> to vector<2x128xf32>
    %144 = vector.extract_strided_slice %141 {offsets = [0, 256], sizes = [2, 128], strides = [1, 1]} : vector<2x512xf32> to vector<2x128xf32>
    %cst_46 = arith.constant 2.000000e+00 : f32
    %145 = vector.broadcast %cst_46 : f32 to vector<2x128xf32>
    %146 = arith.mulf %145, %144 : vector<2x128xf32>
    %cst_47 = arith.constant 1.000000e+00 : f32
    %147 = vector.broadcast %cst_47 : f32 to vector<2x128xf32>
    %148 = arith.subf %146, %147 : vector<2x128xf32>
    %149 = vector.extract_strided_slice %141 {offsets = [0, 384], sizes = [2, 128], strides = [1, 1]} : vector<2x512xf32> to vector<2x128xf32>
    %150 = arith.mulf %143, %119 : vector<2x128xf32>
    %151 = arith.mulf %142, %148 : vector<2x128xf32>
    %152 = arith.addf %150, %151 : vector<2x128xf32>
    %153 = math.tanh %152 : vector<2x128xf32>
    %154 = arith.mulf %149, %153 : vector<2x128xf32>
    %155 = arith.index_cast %c1_i32 : i32 to index
    %c0_48 = arith.constant 0 : index
    %c0_49 = arith.constant 0 : index
    %156 = vector.load %arg11[%155, %c0_48, %c0_49] : memref<8x2x128xf32, #tpu.memory_space<vmem>>, vector<1x2x128xf32>
    %157 = vector.shape_cast %156 : vector<1x2x128xf32> to vector<2x128xf32>
    %158 = vector.shape_cast %154 : vector<2x128xf32> to vector<1x2x128xf32>
    tpu.vector_store %arg11[%155, %c0_48, %c0_49], %158 {strides = array<i32>} : memref<8x2x128xf32, #tpu.memory_space<vmem>>, vector<1x2x128xf32>,
    %c7_i32_50 = arith.constant 7 : i32
    %159 = arith.subi %c7_i32_50, %c1_i32 : i32
    %160 = arith.index_cast %159 : i32 to index
    %c0_51 = arith.constant 0 : index
    %c0_52 = arith.constant 0 : index
    %161 = vector.load %arg12[%160, %c0_51, %c0_52] : memref<8x2x128xf32, #tpu.memory_space<vmem>>, vector<1x2x128xf32>
    %162 = vector.shape_cast %161 : vector<1x2x128xf32> to vector<2x128xf32>
    %163 = vector.shape_cast %154 : vector<2x128xf32> to vector<1x2x128xf32>
    tpu.vector_store %arg12[%160, %c0_51, %c0_52], %163 {strides = array<i32>} : memref<8x2x128xf32, #tpu.memory_space<vmem>>, vector<1x2x128xf32>,
    %c2_i32 = arith.constant 2 : i32
    %164 = arith.index_cast %c2_i32 : i32 to index
    %c0_53 = arith.constant 0 : index
    %c0_54 = arith.constant 0 : index
    %165 = vector.load %arg10[%164, %c0_53, %c0_54] : memref<8x2x512xf32, #tpu.memory_space<vmem>>, vector<1x2x512xf32>
    %166 = vector.shape_cast %165 : vector<1x2x512xf32> to vector<2x512xf32>
    %167 = arith.truncf %154 : vector<2x128xf32> to vector<2x128xbf16>
    %cst_55 = arith.constant dense<0.000000e+00> : vector<2x512xf32>
    %168 = tpu.matmul %167, %95, %cst_55 {dimension_numbers = #tpu.dot_dimension_numbers<[1], [0], [0], [1], [0, 0, 1, 1], [], []>} : vector<2x128xbf16>, vector<128x512xbf16>, vector<2x512xf32> -> vector<2x512xf32>
    %169 = arith.addf %166, %168 : vector<2x512xf32>
    %170 = arith.negf %169 : vector<2x512xf32>
    %171 = math.exp %170 : vector<2x512xf32>
    %cst_56 = arith.constant 1.000000e+00 : f32
    %172 = vector.broadcast %cst_56 : f32 to vector<2x512xf32>
    %173 = arith.addf %172, %171 : vector<2x512xf32>
    %174 = arith.divf %172, %173 : vector<2x512xf32>
    %175 = vector.extract_strided_slice %174 {offsets = [0, 0], sizes = [2, 128], strides = [1, 1]} : vector<2x512xf32> to vector<2x128xf32>
    %176 = vector.extract_strided_slice %174 {offsets = [0, 128], sizes = [2, 128], strides = [1, 1]} : vector<2x512xf32> to vector<2x128xf32>
    %177 = vector.extract_strided_slice %174 {offsets = [0, 256], sizes = [2, 128], strides = [1, 1]} : vector<2x512xf32> to vector<2x128xf32>
    %cst_57 = arith.constant 2.000000e+00 : f32
    %178 = vector.broadcast %cst_57 : f32 to vector<2x128xf32>
    %179 = arith.mulf %178, %177 : vector<2x128xf32>
    %cst_58 = arith.constant 1.000000e+00 : f32
    %180 = vector.broadcast %cst_58 : f32 to vector<2x128xf32>
    %181 = arith.subf %179, %180 : vector<2x128xf32>
    %182 = vector.extract_strided_slice %174 {offsets = [0, 384], sizes = [2, 128], strides = [1, 1]} : vector<2x512xf32> to vector<2x128xf32>
    %183 = arith.mulf %176, %152 : vector<2x128xf32>
    %184 = arith.mulf %175, %181 : vector<2x128xf32>
    %185 = arith.addf %183, %184 : vector<2x128xf32>
    %186 = math.tanh %185 : vector<2x128xf32>
    %187 = arith.mulf %182, %186 : vector<2x128xf32>
    %188 = arith.index_cast %c2_i32 : i32 to index
    %c0_59 = arith.constant 0 : index
    %c0_60 = arith.constant 0 : index
    %189 = vector.load %arg11[%188, %c0_59, %c0_60] : memref<8x2x128xf32, #tpu.memory_space<vmem>>, vector<1x2x128xf32>
    %190 = vector.shape_cast %189 : vector<1x2x128xf32> to vector<2x128xf32>
    %191 = vector.shape_cast %187 : vector<2x128xf32> to vector<1x2x128xf32>
    tpu.vector_store %arg11[%188, %c0_59, %c0_60], %191 {strides = array<i32>} : memref<8x2x128xf32, #tpu.memory_space<vmem>>, vector<1x2x128xf32>,
    %c7_i32_61 = arith.constant 7 : i32
    %192 = arith.subi %c7_i32_61, %c2_i32 : i32
    %193 = arith.index_cast %192 : i32 to index
    %c0_62 = arith.constant 0 : index
    %c0_63 = arith.constant 0 : index
    %194 = vector.load %arg12[%193, %c0_62, %c0_63] : memref<8x2x128xf32, #tpu.memory_space<vmem>>, vector<1x2x128xf32>
    %195 = vector.shape_cast %194 : vector<1x2x128xf32> to vector<2x128xf32>
    %196 = vector.shape_cast %187 : vector<2x128xf32> to vector<1x2x128xf32>
    tpu.vector_store %arg12[%193, %c0_62, %c0_63], %196 {strides = array<i32>} : memref<8x2x128xf32, #tpu.memory_space<vmem>>, vector<1x2x128xf32>,
    %c3_i32 = arith.constant 3 : i32
    %197 = arith.index_cast %c3_i32 : i32 to index
    %c0_64 = arith.constant 0 : index
    %c0_65 = arith.constant 0 : index
    %198 = vector.load %arg10[%197, %c0_64, %c0_65] : memref<8x2x512xf32, #tpu.memory_space<vmem>>, vector<1x2x512xf32>
    %199 = vector.shape_cast %198 : vector<1x2x512xf32> to vector<2x512xf32>
    %200 = arith.truncf %187 : vector<2x128xf32> to vector<2x128xbf16>
    %cst_66 = arith.constant dense<0.000000e+00> : vector<2x512xf32>
    %201 = tpu.matmul %200, %95, %cst_66 {dimension_numbers = #tpu.dot_dimension_numbers<[1], [0], [0], [1], [0, 0, 1, 1], [], []>} : vector<2x128xbf16>, vector<128x512xbf16>, vector<2x512xf32> -> vector<2x512xf32>
    %202 = arith.addf %199, %201 : vector<2x512xf32>
    %203 = arith.negf %202 : vector<2x512xf32>
    %204 = math.exp %203 : vector<2x512xf32>
    %cst_67 = arith.constant 1.000000e+00 : f32
    %205 = vector.broadcast %cst_67 : f32 to vector<2x512xf32>
    %206 = arith.addf %205, %204 : vector<2x512xf32>
    %207 = arith.divf %205, %206 : vector<2x512xf32>
    %208 = vector.extract_strided_slice %207 {offsets = [0, 0], sizes = [2, 128], strides = [1, 1]} : vector<2x512xf32> to vector<2x128xf32>
    %209 = vector.extract_strided_slice %207 {offsets = [0, 128], sizes = [2, 128], strides = [1, 1]} : vector<2x512xf32> to vector<2x128xf32>
    %210 = vector.extract_strided_slice %207 {offsets = [0, 256], sizes = [2, 128], strides = [1, 1]} : vector<2x512xf32> to vector<2x128xf32>
    %cst_68 = arith.constant 2.000000e+00 : f32
    %211 = vector.broadcast %cst_68 : f32 to vector<2x128xf32>
    %212 = arith.mulf %211, %210 : vector<2x128xf32>
    %cst_69 = arith.constant 1.000000e+00 : f32
    %213 = vector.broadcast %cst_69 : f32 to vector<2x128xf32>
    %214 = arith.subf %212, %213 : vector<2x128xf32>
    %215 = vector.extract_strided_slice %207 {offsets = [0, 384], sizes = [2, 128], strides = [1, 1]} : vector<2x512xf32> to vector<2x128xf32>
    %216 = arith.mulf %209, %185 : vector<2x128xf32>
    %217 = arith.mulf %208, %214 : vector<2x128xf32>
    %218 = arith.addf %216, %217 : vector<2x128xf32>
    %219 = math.tanh %218 : vector<2x128xf32>
    %220 = arith.mulf %215, %219 : vector<2x128xf32>
    %221 = arith.index_cast %c3_i32 : i32 to index
    %c0_70 = arith.constant 0 : index
    %c0_71 = arith.constant 0 : index
    %222 = vector.load %arg11[%221, %c0_70, %c0_71] : memref<8x2x128xf32, #tpu.memory_space<vmem>>, vector<1x2x128xf32>
    %223 = vector.shape_cast %222 : vector<1x2x128xf32> to vector<2x128xf32>
    %224 = vector.shape_cast %220 : vector<2x128xf32> to vector<1x2x128xf32>
    tpu.vector_store %arg11[%221, %c0_70, %c0_71], %224 {strides = array<i32>} : memref<8x2x128xf32, #tpu.memory_space<vmem>>, vector<1x2x128xf32>,
    %c7_i32_72 = arith.constant 7 : i32
    %225 = arith.subi %c7_i32_72, %c3_i32 : i32
    %226 = arith.index_cast %225 : i32 to index
    %c0_73 = arith.constant 0 : index
    %c0_74 = arith.constant 0 : index
    %227 = vector.load %arg12[%226, %c0_73, %c0_74] : memref<8x2x128xf32, #tpu.memory_space<vmem>>, vector<1x2x128xf32>
    %228 = vector.shape_cast %227 : vector<1x2x128xf32> to vector<2x128xf32>
    %229 = vector.shape_cast %220 : vector<2x128xf32> to vector<1x2x128xf32>
    tpu.vector_store %arg12[%226, %c0_73, %c0_74], %229 {strides = array<i32>} : memref<8x2x128xf32, #tpu.memory_space<vmem>>, vector<1x2x128xf32>,
    %c4_i32 = arith.constant 4 : i32
    %230 = arith.index_cast %c4_i32 : i32 to index
    %c0_75 = arith.constant 0 : index
    %c0_76 = arith.constant 0 : index
    %231 = vector.load %arg10[%230, %c0_75, %c0_76] : memref<8x2x512xf32, #tpu.memory_space<vmem>>, vector<1x2x512xf32>
    %232 = vector.shape_cast %231 : vector<1x2x512xf32> to vector<2x512xf32>
    %233 = arith.truncf %220 : vector<2x128xf32> to vector<2x128xbf16>
    %cst_77 = arith.constant dense<0.000000e+00> : vector<2x512xf32>
    %234 = tpu.matmul %233, %95, %cst_77 {dimension_numbers = #tpu.dot_dimension_numbers<[1], [0], [0], [1], [0, 0, 1, 1], [], []>} : vector<2x128xbf16>, vector<128x512xbf16>, vector<2x512xf32> -> vector<2x512xf32>
    %235 = arith.addf %232, %234 : vector<2x512xf32>
    %236 = arith.negf %235 : vector<2x512xf32>
    %237 = math.exp %236 : vector<2x512xf32>
    %cst_78 = arith.constant 1.000000e+00 : f32
    %238 = vector.broadcast %cst_78 : f32 to vector<2x512xf32>
    %239 = arith.addf %238, %237 : vector<2x512xf32>
    %240 = arith.divf %238, %239 : vector<2x512xf32>
    %241 = vector.extract_strided_slice %240 {offsets = [0, 0], sizes = [2, 128], strides = [1, 1]} : vector<2x512xf32> to vector<2x128xf32>
    %242 = vector.extract_strided_slice %240 {offsets = [0, 128], sizes = [2, 128], strides = [1, 1]} : vector<2x512xf32> to vector<2x128xf32>
    %243 = vector.extract_strided_slice %240 {offsets = [0, 256], sizes = [2, 128], strides = [1, 1]} : vector<2x512xf32> to vector<2x128xf32>
    %cst_79 = arith.constant 2.000000e+00 : f32
    %244 = vector.broadcast %cst_79 : f32 to vector<2x128xf32>
    %245 = arith.mulf %244, %243 : vector<2x128xf32>
    %cst_80 = arith.constant 1.000000e+00 : f32
    %246 = vector.broadcast %cst_80 : f32 to vector<2x128xf32>
    %247 = arith.subf %245, %246 : vector<2x128xf32>
    %248 = vector.extract_strided_slice %240 {offsets = [0, 384], sizes = [2, 128], strides = [1, 1]} : vector<2x512xf32> to vector<2x128xf32>
    %249 = arith.mulf %242, %218 : vector<2x128xf32>
    %250 = arith.mulf %241, %247 : vector<2x128xf32>
    %251 = arith.addf %249, %250 : vector<2x128xf32>
    %252 = math.tanh %251 : vector<2x128xf32>
    %253 = arith.mulf %248, %252 : vector<2x128xf32>
    %254 = arith.index_cast %c4_i32 : i32 to index
    %c0_81 = arith.constant 0 : index
    %c0_82 = arith.constant 0 : index
    %255 = vector.load %arg11[%254, %c0_81, %c0_82] : memref<8x2x128xf32, #tpu.memory_space<vmem>>, vector<1x2x128xf32>
    %256 = vector.shape_cast %255 : vector<1x2x128xf32> to vector<2x128xf32>
    %257 = vector.shape_cast %253 : vector<2x128xf32> to vector<1x2x128xf32>
    tpu.vector_store %arg11[%254, %c0_81, %c0_82], %257 {strides = array<i32>} : memref<8x2x128xf32, #tpu.memory_space<vmem>>, vector<1x2x128xf32>,
    %c7_i32_83 = arith.constant 7 : i32
    %258 = arith.subi %c7_i32_83, %c4_i32 : i32
    %259 = arith.index_cast %258 : i32 to index
    %c0_84 = arith.constant 0 : index
    %c0_85 = arith.constant 0 : index
    %260 = vector.load %arg12[%259, %c0_84, %c0_85] : memref<8x2x128xf32, #tpu.memory_space<vmem>>, vector<1x2x128xf32>
    %261 = vector.shape_cast %260 : vector<1x2x128xf32> to vector<2x128xf32>
    %262 = vector.shape_cast %253 : vector<2x128xf32> to vector<1x2x128xf32>
    tpu.vector_store %arg12[%259, %c0_84, %c0_85], %262 {strides = array<i32>} : memref<8x2x128xf32, #tpu.memory_space<vmem>>, vector<1x2x128xf32>,
    %c5_i32 = arith.constant 5 : i32
    %263 = arith.index_cast %c5_i32 : i32 to index
    %c0_86 = arith.constant 0 : index
    %c0_87 = arith.constant 0 : index
    %264 = vector.load %arg10[%263, %c0_86, %c0_87] : memref<8x2x512xf32, #tpu.memory_space<vmem>>, vector<1x2x512xf32>
    %265 = vector.shape_cast %264 : vector<1x2x512xf32> to vector<2x512xf32>
    %266 = arith.truncf %253 : vector<2x128xf32> to vector<2x128xbf16>
    %cst_88 = arith.constant dense<0.000000e+00> : vector<2x512xf32>
    %267 = tpu.matmul %266, %95, %cst_88 {dimension_numbers = #tpu.dot_dimension_numbers<[1], [0], [0], [1], [0, 0, 1, 1], [], []>} : vector<2x128xbf16>, vector<128x512xbf16>, vector<2x512xf32> -> vector<2x512xf32>
    %268 = arith.addf %265, %267 : vector<2x512xf32>
    %269 = arith.negf %268 : vector<2x512xf32>
    %270 = math.exp %269 : vector<2x512xf32>
    %cst_89 = arith.constant 1.000000e+00 : f32
    %271 = vector.broadcast %cst_89 : f32 to vector<2x512xf32>
    %272 = arith.addf %271, %270 : vector<2x512xf32>
    %273 = arith.divf %271, %272 : vector<2x512xf32>
    %274 = vector.extract_strided_slice %273 {offsets = [0, 0], sizes = [2, 128], strides = [1, 1]} : vector<2x512xf32> to vector<2x128xf32>
    %275 = vector.extract_strided_slice %273 {offsets = [0, 128], sizes = [2, 128], strides = [1, 1]} : vector<2x512xf32> to vector<2x128xf32>
    %276 = vector.extract_strided_slice %273 {offsets = [0, 256], sizes = [2, 128], strides = [1, 1]} : vector<2x512xf32> to vector<2x128xf32>
    %cst_90 = arith.constant 2.000000e+00 : f32
    %277 = vector.broadcast %cst_90 : f32 to vector<2x128xf32>
    %278 = arith.mulf %277, %276 : vector<2x128xf32>
    %cst_91 = arith.constant 1.000000e+00 : f32
    %279 = vector.broadcast %cst_91 : f32 to vector<2x128xf32>
    %280 = arith.subf %278, %279 : vector<2x128xf32>
    %281 = vector.extract_strided_slice %273 {offsets = [0, 384], sizes = [2, 128], strides = [1, 1]} : vector<2x512xf32> to vector<2x128xf32>
    %282 = arith.mulf %275, %251 : vector<2x128xf32>
    %283 = arith.mulf %274, %280 : vector<2x128xf32>
    %284 = arith.addf %282, %283 : vector<2x128xf32>
    %285 = math.tanh %284 : vector<2x128xf32>
    %286 = arith.mulf %281, %285 : vector<2x128xf32>
    %287 = arith.index_cast %c5_i32 : i32 to index
    %c0_92 = arith.constant 0 : index
    %c0_93 = arith.constant 0 : index
    %288 = vector.load %arg11[%287, %c0_92, %c0_93] : memref<8x2x128xf32, #tpu.memory_space<vmem>>, vector<1x2x128xf32>
    %289 = vector.shape_cast %288 : vector<1x2x128xf32> to vector<2x128xf32>
    %290 = vector.shape_cast %286 : vector<2x128xf32> to vector<1x2x128xf32>
    tpu.vector_store %arg11[%287, %c0_92, %c0_93], %290 {strides = array<i32>} : memref<8x2x128xf32, #tpu.memory_space<vmem>>, vector<1x2x128xf32>,
    %c7_i32_94 = arith.constant 7 : i32
    %291 = arith.subi %c7_i32_94, %c5_i32 : i32
    %292 = arith.index_cast %291 : i32 to index
    %c0_95 = arith.constant 0 : index
    %c0_96 = arith.constant 0 : index
    %293 = vector.load %arg12[%292, %c0_95, %c0_96] : memref<8x2x128xf32, #tpu.memory_space<vmem>>, vector<1x2x128xf32>
    %294 = vector.shape_cast %293 : vector<1x2x128xf32> to vector<2x128xf32>
    %295 = vector.shape_cast %286 : vector<2x128xf32> to vector<1x2x128xf32>
    tpu.vector_store %arg12[%292, %c0_95, %c0_96], %295 {strides = array<i32>} : memref<8x2x128xf32, #tpu.memory_space<vmem>>, vector<1x2x128xf32>,
    %c6_i32 = arith.constant 6 : i32
    %296 = arith.index_cast %c6_i32 : i32 to index
    %c0_97 = arith.constant 0 : index
    %c0_98 = arith.constant 0 : index
    %297 = vector.load %arg10[%296, %c0_97, %c0_98] : memref<8x2x512xf32, #tpu.memory_space<vmem>>, vector<1x2x512xf32>
    %298 = vector.shape_cast %297 : vector<1x2x512xf32> to vector<2x512xf32>
    %299 = arith.truncf %286 : vector<2x128xf32> to vector<2x128xbf16>
    %cst_99 = arith.constant dense<0.000000e+00> : vector<2x512xf32>
    %300 = tpu.matmul %299, %95, %cst_99 {dimension_numbers = #tpu.dot_dimension_numbers<[1], [0], [0], [1], [0, 0, 1, 1], [], []>} : vector<2x128xbf16>, vector<128x512xbf16>, vector<2x512xf32> -> vector<2x512xf32>
    %301 = arith.addf %298, %300 : vector<2x512xf32>
    %302 = arith.negf %301 : vector<2x512xf32>
    %303 = math.exp %302 : vector<2x512xf32>
    %cst_100 = arith.constant 1.000000e+00 : f32
    %304 = vector.broadcast %cst_100 : f32 to vector<2x512xf32>
    %305 = arith.addf %304, %303 : vector<2x512xf32>
    %306 = arith.divf %304, %305 : vector<2x512xf32>
    %307 = vector.extract_strided_slice %306 {offsets = [0, 0], sizes = [2, 128], strides = [1, 1]} : vector<2x512xf32> to vector<2x128xf32>
    %308 = vector.extract_strided_slice %306 {offsets = [0, 128], sizes = [2, 128], strides = [1, 1]} : vector<2x512xf32> to vector<2x128xf32>
    %309 = vector.extract_strided_slice %306 {offsets = [0, 256], sizes = [2, 128], strides = [1, 1]} : vector<2x512xf32> to vector<2x128xf32>
    %cst_101 = arith.constant 2.000000e+00 : f32
    %310 = vector.broadcast %cst_101 : f32 to vector<2x128xf32>
    %311 = arith.mulf %310, %309 : vector<2x128xf32>
    %cst_102 = arith.constant 1.000000e+00 : f32
    %312 = vector.broadcast %cst_102 : f32 to vector<2x128xf32>
    %313 = arith.subf %311, %312 : vector<2x128xf32>
    %314 = vector.extract_strided_slice %306 {offsets = [0, 384], sizes = [2, 128], strides = [1, 1]} : vector<2x512xf32> to vector<2x128xf32>
    %315 = arith.mulf %308, %284 : vector<2x128xf32>
    %316 = arith.mulf %307, %313 : vector<2x128xf32>
    %317 = arith.addf %315, %316 : vector<2x128xf32>
    %318 = math.tanh %317 : vector<2x128xf32>
    %319 = arith.mulf %314, %318 : vector<2x128xf32>
    %320 = arith.index_cast %c6_i32 : i32 to index
    %c0_103 = arith.constant 0 : index
    %c0_104 = arith.constant 0 : index
    %321 = vector.load %arg11[%320, %c0_103, %c0_104] : memref<8x2x128xf32, #tpu.memory_space<vmem>>, vector<1x2x128xf32>
    %322 = vector.shape_cast %321 : vector<1x2x128xf32> to vector<2x128xf32>
    %323 = vector.shape_cast %319 : vector<2x128xf32> to vector<1x2x128xf32>
    tpu.vector_store %arg11[%320, %c0_103, %c0_104], %323 {strides = array<i32>} : memref<8x2x128xf32, #tpu.memory_space<vmem>>, vector<1x2x128xf32>,
    %c7_i32_105 = arith.constant 7 : i32
    %324 = arith.subi %c7_i32_105, %c6_i32 : i32
    %325 = arith.index_cast %324 : i32 to index
    %c0_106 = arith.constant 0 : index
    %c0_107 = arith.constant 0 : index
    %326 = vector.load %arg12[%325, %c0_106, %c0_107] : memref<8x2x128xf32, #tpu.memory_space<vmem>>, vector<1x2x128xf32>
    %327 = vector.shape_cast %326 : vector<1x2x128xf32> to vector<2x128xf32>
    %328 = vector.shape_cast %319 : vector<2x128xf32> to vector<1x2x128xf32>
    tpu.vector_store %arg12[%325, %c0_106, %c0_107], %328 {strides = array<i32>} : memref<8x2x128xf32, #tpu.memory_space<vmem>>, vector<1x2x128xf32>,
    %c7_i32_108 = arith.constant 7 : i32
    %329 = arith.index_cast %c7_i32_108 : i32 to index
    %c0_109 = arith.constant 0 : index
    %c0_110 = arith.constant 0 : index
    %330 = vector.load %arg10[%329, %c0_109, %c0_110] : memref<8x2x512xf32, #tpu.memory_space<vmem>>, vector<1x2x512xf32>
    %331 = vector.shape_cast %330 : vector<1x2x512xf32> to vector<2x512xf32>
    %332 = arith.truncf %319 : vector<2x128xf32> to vector<2x128xbf16>
    %cst_111 = arith.constant dense<0.000000e+00> : vector<2x512xf32>
    %333 = tpu.matmul %332, %95, %cst_111 {dimension_numbers = #tpu.dot_dimension_numbers<[1], [0], [0], [1], [0, 0, 1, 1], [], []>} : vector<2x128xbf16>, vector<128x512xbf16>, vector<2x512xf32> -> vector<2x512xf32>
    %334 = arith.addf %331, %333 : vector<2x512xf32>
    %335 = arith.negf %334 : vector<2x512xf32>
    %336 = math.exp %335 : vector<2x512xf32>
    %cst_112 = arith.constant 1.000000e+00 : f32
    %337 = vector.broadcast %cst_112 : f32 to vector<2x512xf32>
    %338 = arith.addf %337, %336 : vector<2x512xf32>
    %339 = arith.divf %337, %338 : vector<2x512xf32>
    %340 = vector.extract_strided_slice %339 {offsets = [0, 0], sizes = [2, 128], strides = [1, 1]} : vector<2x512xf32> to vector<2x128xf32>
    %341 = vector.extract_strided_slice %339 {offsets = [0, 128], sizes = [2, 128], strides = [1, 1]} : vector<2x512xf32> to vector<2x128xf32>
    %342 = vector.extract_strided_slice %339 {offsets = [0, 256], sizes = [2, 128], strides = [1, 1]} : vector<2x512xf32> to vector<2x128xf32>
    %cst_113 = arith.constant 2.000000e+00 : f32
    %343 = vector.broadcast %cst_113 : f32 to vector<2x128xf32>
    %344 = arith.mulf %343, %342 : vector<2x128xf32>
    %cst_114 = arith.constant 1.000000e+00 : f32
    %345 = vector.broadcast %cst_114 : f32 to vector<2x128xf32>
    %346 = arith.subf %344, %345 : vector<2x128xf32>
    %347 = vector.extract_strided_slice %339 {offsets = [0, 384], sizes = [2, 128], strides = [1, 1]} : vector<2x512xf32> to vector<2x128xf32>
    %348 = arith.mulf %341, %317 : vector<2x128xf32>
    %349 = arith.mulf %340, %346 : vector<2x128xf32>
    %350 = arith.addf %348, %349 : vector<2x128xf32>
    %351 = math.tanh %350 : vector<2x128xf32>
    %352 = arith.mulf %347, %351 : vector<2x128xf32>
    %353 = arith.index_cast %c7_i32_108 : i32 to index
    %c0_115 = arith.constant 0 : index
    %c0_116 = arith.constant 0 : index
    %354 = vector.load %arg11[%353, %c0_115, %c0_116] : memref<8x2x128xf32, #tpu.memory_space<vmem>>, vector<1x2x128xf32>
    %355 = vector.shape_cast %354 : vector<1x2x128xf32> to vector<2x128xf32>
    %356 = vector.shape_cast %352 : vector<2x128xf32> to vector<1x2x128xf32>
    tpu.vector_store %arg11[%353, %c0_115, %c0_116], %356 {strides = array<i32>} : memref<8x2x128xf32, #tpu.memory_space<vmem>>, vector<1x2x128xf32>,
    %c7_i32_117 = arith.constant 7 : i32
    %357 = arith.subi %c7_i32_117, %c7_i32_108 : i32
    %358 = arith.index_cast %357 : i32 to index
    %c0_118 = arith.constant 0 : index
    %c0_119 = arith.constant 0 : index
    %359 = vector.load %arg12[%358, %c0_118, %c0_119] : memref<8x2x128xf32, #tpu.memory_space<vmem>>, vector<1x2x128xf32>
    %360 = vector.shape_cast %359 : vector<1x2x128xf32> to vector<2x128xf32>
    %361 = vector.shape_cast %352 : vector<2x128xf32> to vector<1x2x128xf32>
    tpu.vector_store %arg12[%358, %c0_118, %c0_119], %361 {strides = array<i32>} : memref<8x2x128xf32, #tpu.memory_space<vmem>>, vector<1x2x128xf32>,
    %c8_i32 = arith.constant 8 : i32
    %c0_120 = arith.constant 0 : index
    %c0_121 = arith.constant 0 : index
    %c0_122 = arith.constant 0 : index
    %362 = vector.load %arg11[%c0_120, %c0_121, %c0_122] : memref<8x2x128xf32, #tpu.memory_space<vmem>>, vector<8x2x128xf32>
    %363 = vector.shape_cast %362 : vector<8x2x128xf32> to vector<16x128xf32>
    %c0_123 = arith.constant 0 : index
    %c0_124 = arith.constant 0 : index
    %c0_125 = arith.constant 0 : index
    %364 = vector.load %arg12[%c0_123, %c0_124, %c0_125] : memref<8x2x128xf32, #tpu.memory_space<vmem>>, vector<8x2x128xf32>
    %365 = vector.shape_cast %364 : vector<8x2x128xf32> to vector<16x128xf32>
    %366 = tpu.concatenate %363, %365 in 1 : vector<16x128xf32>, vector<16x128xf32> -> vector<16x256xf32>
    %c0_126 = arith.constant 0 : index
    %c0_127 = arith.constant 0 : index
    %367 = vector.load %arg4[%c0_126, %c0_127] : memref<256x1024xf32, #tpu.memory_space<vmem>>, vector<256x1024xf32>
    %cst_128 = arith.constant dense<0.000000e+00> : vector<16x1024xf32>
    %368 = tpu.matmul %366, %367, %cst_128 {dimension_numbers = #tpu.dot_dimension_numbers<[1], [0], [0], [1], [0, 0, 1, 1], [], []>} : vector<16x256xf32>, vector<256x1024xf32>, vector<16x1024xf32> -> vector<16x1024xf32>
    %c1_129 = arith.constant 1 : index
    %c0_130 = arith.constant 0 : index
    %369 = vector.load %arg6[%c1_129, %c0_130] : memref<2x512xf32, #tpu.memory_space<vmem>>, vector<1x512xf32>
    %370 = vector.shape_cast %368 : vector<16x1024xf32> to vector<8x2x1024xf32>
    %371 = vector.extract_strided_slice %370 {offsets = [0, 0, 0], sizes = [1, 2, 512], strides = [1, 1, 1]} : vector<8x2x1024xf32> to vector<1x2x512xf32>
    %372 = vector.shape_cast %371 : vector<1x2x512xf32> to vector<2x512xf32>
    %373 = vector.extract_strided_slice %370 {offsets = [7, 0, 512], sizes = [1, 2, 512], strides = [1, 1, 1]} : vector<8x2x1024xf32> to vector<1x2x512xf32>
    %374 = vector.shape_cast %373 : vector<1x2x512xf32> to vector<2x512xf32>
    %375 = arith.addf %372, %374 : vector<2x512xf32>
    %376 = vector.broadcast %369 : vector<1x512xf32> to vector<2x512xf32>
    %377 = arith.addf %375, %376 : vector<2x512xf32>
    %c0_131 = arith.constant 0 : index
    %c0_132 = arith.constant 0 : index
    %c0_133 = arith.constant 0 : index
    %378 = vector.load %arg10[%c0_131, %c0_132, %c0_133] : memref<8x2x512xf32, #tpu.memory_space<vmem>>, vector<1x2x512xf32>
    %379 = vector.shape_cast %378 : vector<1x2x512xf32> to vector<2x512xf32>
    %380 = vector.shape_cast %377 : vector<2x512xf32> to vector<1x2x512xf32>
    tpu.vector_store %arg10[%c0_131, %c0_132, %c0_133], %380 {strides = array<i32>} : memref<8x2x512xf32, #tpu.memory_space<vmem>>, vector<1x2x512xf32>,
    %381 = vector.extract_strided_slice %370 {offsets = [1, 0, 0], sizes = [1, 2, 512], strides = [1, 1, 1]} : vector<8x2x1024xf32> to vector<1x2x512xf32>
    %382 = vector.shape_cast %381 : vector<1x2x512xf32> to vector<2x512xf32>
    %383 = vector.extract_strided_slice %370 {offsets = [6, 0, 512], sizes = [1, 2, 512], strides = [1, 1, 1]} : vector<8x2x1024xf32> to vector<1x2x512xf32>
    %384 = vector.shape_cast %383 : vector<1x2x512xf32> to vector<2x512xf32>
    %385 = arith.addf %382, %384 : vector<2x512xf32>
    %386 = vector.broadcast %369 : vector<1x512xf32> to vector<2x512xf32>
    %387 = arith.addf %385, %386 : vector<2x512xf32>
    %c1_134 = arith.constant 1 : index
    %c0_135 = arith.constant 0 : index
    %c0_136 = arith.constant 0 : index
    %388 = vector.load %arg10[%c1_134, %c0_135, %c0_136] : memref<8x2x512xf32, #tpu.memory_space<vmem>>, vector<1x2x512xf32>
    %389 = vector.shape_cast %388 : vector<1x2x512xf32> to vector<2x512xf32>
    %390 = vector.shape_cast %387 : vector<2x512xf32> to vector<1x2x512xf32>
    tpu.vector_store %arg10[%c1_134, %c0_135, %c0_136], %390 {strides = array<i32>} : memref<8x2x512xf32, #tpu.memory_space<vmem>>, vector<1x2x512xf32>,
    %391 = vector.extract_strided_slice %370 {offsets = [2, 0, 0], sizes = [1, 2, 512], strides = [1, 1, 1]} : vector<8x2x1024xf32> to vector<1x2x512xf32>
    %392 = vector.shape_cast %391 : vector<1x2x512xf32> to vector<2x512xf32>
    %393 = vector.extract_strided_slice %370 {offsets = [5, 0, 512], sizes = [1, 2, 512], strides = [1, 1, 1]} : vector<8x2x1024xf32> to vector<1x2x512xf32>
    %394 = vector.shape_cast %393 : vector<1x2x512xf32> to vector<2x512xf32>
    %395 = arith.addf %392, %394 : vector<2x512xf32>
    %396 = vector.broadcast %369 : vector<1x512xf32> to vector<2x512xf32>
    %397 = arith.addf %395, %396 : vector<2x512xf32>
    %c2_137 = arith.constant 2 : index
    %c0_138 = arith.constant 0 : index
    %c0_139 = arith.constant 0 : index
    %398 = vector.load %arg10[%c2_137, %c0_138, %c0_139] : memref<8x2x512xf32, #tpu.memory_space<vmem>>, vector<1x2x512xf32>
    %399 = vector.shape_cast %398 : vector<1x2x512xf32> to vector<2x512xf32>
    %400 = vector.shape_cast %397 : vector<2x512xf32> to vector<1x2x512xf32>
    tpu.vector_store %arg10[%c2_137, %c0_138, %c0_139], %400 {strides = array<i32>} : memref<8x2x512xf32, #tpu.memory_space<vmem>>, vector<1x2x512xf32>,
    %401 = vector.extract_strided_slice %370 {offsets = [3, 0, 0], sizes = [1, 2, 512], strides = [1, 1, 1]} : vector<8x2x1024xf32> to vector<1x2x512xf32>
    %402 = vector.shape_cast %401 : vector<1x2x512xf32> to vector<2x512xf32>
    %403 = vector.extract_strided_slice %370 {offsets = [4, 0, 512], sizes = [1, 2, 512], strides = [1, 1, 1]} : vector<8x2x1024xf32> to vector<1x2x512xf32>
    %404 = vector.shape_cast %403 : vector<1x2x512xf32> to vector<2x512xf32>
    %405 = arith.addf %402, %404 : vector<2x512xf32>
    %406 = vector.broadcast %369 : vector<1x512xf32> to vector<2x512xf32>
    %407 = arith.addf %405, %406 : vector<2x512xf32>
    %c3_140 = arith.constant 3 : index
    %c0_141 = arith.constant 0 : index
    %c0_142 = arith.constant 0 : index
    %408 = vector.load %arg10[%c3_140, %c0_141, %c0_142] : memref<8x2x512xf32, #tpu.memory_space<vmem>>, vector<1x2x512xf32>
    %409 = vector.shape_cast %408 : vector<1x2x512xf32> to vector<2x512xf32>
    %410 = vector.shape_cast %407 : vector<2x512xf32> to vector<1x2x512xf32>
    tpu.vector_store %arg10[%c3_140, %c0_141, %c0_142], %410 {strides = array<i32>} : memref<8x2x512xf32, #tpu.memory_space<vmem>>, vector<1x2x512xf32>,
    %411 = vector.extract_strided_slice %370 {offsets = [4, 0, 0], sizes = [1, 2, 512], strides = [1, 1, 1]} : vector<8x2x1024xf32> to vector<1x2x512xf32>
    %412 = vector.shape_cast %411 : vector<1x2x512xf32> to vector<2x512xf32>
    %413 = vector.extract_strided_slice %370 {offsets = [3, 0, 512], sizes = [1, 2, 512], strides = [1, 1, 1]} : vector<8x2x1024xf32> to vector<1x2x512xf32>
    %414 = vector.shape_cast %413 : vector<1x2x512xf32> to vector<2x512xf32>
    %415 = arith.addf %412, %414 : vector<2x512xf32>
    %416 = vector.broadcast %369 : vector<1x512xf32> to vector<2x512xf32>
    %417 = arith.addf %415, %416 : vector<2x512xf32>
    %c4_143 = arith.constant 4 : index
    %c0_144 = arith.constant 0 : index
    %c0_145 = arith.constant 0 : index
    %418 = vector.load %arg10[%c4_143, %c0_144, %c0_145] : memref<8x2x512xf32, #tpu.memory_space<vmem>>, vector<1x2x512xf32>
    %419 = vector.shape_cast %418 : vector<1x2x512xf32> to vector<2x512xf32>
    %420 = vector.shape_cast %417 : vector<2x512xf32> to vector<1x2x512xf32>
    tpu.vector_store %arg10[%c4_143, %c0_144, %c0_145], %420 {strides = array<i32>} : memref<8x2x512xf32, #tpu.memory_space<vmem>>, vector<1x2x512xf32>,
    %421 = vector.extract_strided_slice %370 {offsets = [5, 0, 0], sizes = [1, 2, 512], strides = [1, 1, 1]} : vector<8x2x1024xf32> to vector<1x2x512xf32>
    %422 = vector.shape_cast %421 : vector<1x2x512xf32> to vector<2x512xf32>
    %423 = vector.extract_strided_slice %370 {offsets = [2, 0, 512], sizes = [1, 2, 512], strides = [1, 1, 1]} : vector<8x2x1024xf32> to vector<1x2x512xf32>
    %424 = vector.shape_cast %423 : vector<1x2x512xf32> to vector<2x512xf32>
    %425 = arith.addf %422, %424 : vector<2x512xf32>
    %426 = vector.broadcast %369 : vector<1x512xf32> to vector<2x512xf32>
    %427 = arith.addf %425, %426 : vector<2x512xf32>
    %c5_146 = arith.constant 5 : index
    %c0_147 = arith.constant 0 : index
    %c0_148 = arith.constant 0 : index
    %428 = vector.load %arg10[%c5_146, %c0_147, %c0_148] : memref<8x2x512xf32, #tpu.memory_space<vmem>>, vector<1x2x512xf32>
    %429 = vector.shape_cast %428 : vector<1x2x512xf32> to vector<2x512xf32>
    %430 = vector.shape_cast %427 : vector<2x512xf32> to vector<1x2x512xf32>
    tpu.vector_store %arg10[%c5_146, %c0_147, %c0_148], %430 {strides = array<i32>} : memref<8x2x512xf32, #tpu.memory_space<vmem>>, vector<1x2x512xf32>,
    %431 = vector.extract_strided_slice %370 {offsets = [6, 0, 0], sizes = [1, 2, 512], strides = [1, 1, 1]} : vector<8x2x1024xf32> to vector<1x2x512xf32>
    %432 = vector.shape_cast %431 : vector<1x2x512xf32> to vector<2x512xf32>
    %433 = vector.extract_strided_slice %370 {offsets = [1, 0, 512], sizes = [1, 2, 512], strides = [1, 1, 1]} : vector<8x2x1024xf32> to vector<1x2x512xf32>
    %434 = vector.shape_cast %433 : vector<1x2x512xf32> to vector<2x512xf32>
    %435 = arith.addf %432, %434 : vector<2x512xf32>
    %436 = vector.broadcast %369 : vector<1x512xf32> to vector<2x512xf32>
    %437 = arith.addf %435, %436 : vector<2x512xf32>
    %c6_149 = arith.constant 6 : index
    %c0_150 = arith.constant 0 : index
    %c0_151 = arith.constant 0 : index
    %438 = vector.load %arg10[%c6_149, %c0_150, %c0_151] : memref<8x2x512xf32, #tpu.memory_space<vmem>>, vector<1x2x512xf32>
    %439 = vector.shape_cast %438 : vector<1x2x512xf32> to vector<2x512xf32>
    %440 = vector.shape_cast %437 : vector<2x512xf32> to vector<1x2x512xf32>
    tpu.vector_store %arg10[%c6_149, %c0_150, %c0_151], %440 {strides = array<i32>} : memref<8x2x512xf32, #tpu.memory_space<vmem>>, vector<1x2x512xf32>,
    %441 = vector.extract_strided_slice %370 {offsets = [7, 0, 0], sizes = [1, 2, 512], strides = [1, 1, 1]} : vector<8x2x1024xf32> to vector<1x2x512xf32>
    %442 = vector.shape_cast %441 : vector<1x2x512xf32> to vector<2x512xf32>
    %443 = vector.extract_strided_slice %370 {offsets = [0, 0, 512], sizes = [1, 2, 512], strides = [1, 1, 1]} : vector<8x2x1024xf32> to vector<1x2x512xf32>
    %444 = vector.shape_cast %443 : vector<1x2x512xf32> to vector<2x512xf32>
    %445 = arith.addf %442, %444 : vector<2x512xf32>
    %446 = vector.broadcast %369 : vector<1x512xf32> to vector<2x512xf32>
    %447 = arith.addf %445, %446 : vector<2x512xf32>
    %c7_152 = arith.constant 7 : index
    %c0_153 = arith.constant 0 : index
    %c0_154 = arith.constant 0 : index
    %448 = vector.load %arg10[%c7_152, %c0_153, %c0_154] : memref<8x2x512xf32, #tpu.memory_space<vmem>>, vector<1x2x512xf32>
    %449 = vector.shape_cast %448 : vector<1x2x512xf32> to vector<2x512xf32>
    %450 = vector.shape_cast %447 : vector<2x512xf32> to vector<1x2x512xf32>
    tpu.vector_store %arg10[%c7_152, %c0_153, %c0_154], %450 {strides = array<i32>} : memref<8x2x512xf32, #tpu.memory_space<vmem>>, vector<1x2x512xf32>,
    %c128 = arith.constant 128 : index
    %c0_155 = arith.constant 0 : index
    %451 = vector.load %arg5[%c128, %c0_155] : memref<256x512xbf16, #tpu.memory_space<vmem>>, vector<128x512xbf16>
    %cst_156 = arith.constant 0.000000e+00 : f32
    %452 = vector.broadcast %cst_156 : f32 to vector<2x128xf32>
    %cst_157 = arith.constant 0.000000e+00 : f32
    %453 = vector.broadcast %cst_157 : f32 to vector<2x128xf32>
    %c0_i32_158 = arith.constant 0 : i32
    %454 = arith.index_cast %c0_i32_158 : i32 to index
    %c0_159 = arith.constant 0 : index
    %c0_160 = arith.constant 0 : index
    %455 = vector.load %arg10[%454, %c0_159, %c0_160] : memref<8x2x512xf32, #tpu.memory_space<vmem>>, vector<1x2x512xf32>
    %456 = vector.shape_cast %455 : vector<1x2x512xf32> to vector<2x512xf32>
    %457 = arith.truncf %452 : vector<2x128xf32> to vector<2x128xbf16>
    %cst_161 = arith.constant dense<0.000000e+00> : vector<2x512xf32>
    %458 = tpu.matmul %457, %451, %cst_161 {dimension_numbers = #tpu.dot_dimension_numbers<[1], [0], [0], [1], [0, 0, 1, 1], [], []>} : vector<2x128xbf16>, vector<128x512xbf16>, vector<2x512xf32> -> vector<2x512xf32>
    %459 = arith.addf %456, %458 : vector<2x512xf32>
    %460 = arith.negf %459 : vector<2x512xf32>
    %461 = math.exp %460 : vector<2x512xf32>
    %cst_162 = arith.constant 1.000000e+00 : f32
    %462 = vector.broadcast %cst_162 : f32 to vector<2x512xf32>
    %463 = arith.addf %462, %461 : vector<2x512xf32>
    %464 = arith.divf %462, %463 : vector<2x512xf32>
    %465 = vector.extract_strided_slice %464 {offsets = [0, 0], sizes = [2, 128], strides = [1, 1]} : vector<2x512xf32> to vector<2x128xf32>
    %466 = vector.extract_strided_slice %464 {offsets = [0, 128], sizes = [2, 128], strides = [1, 1]} : vector<2x512xf32> to vector<2x128xf32>
    %467 = vector.extract_strided_slice %464 {offsets = [0, 256], sizes = [2, 128], strides = [1, 1]} : vector<2x512xf32> to vector<2x128xf32>
    %cst_163 = arith.constant 2.000000e+00 : f32
    %468 = vector.broadcast %cst_163 : f32 to vector<2x128xf32>
    %469 = arith.mulf %468, %467 : vector<2x128xf32>
    %cst_164 = arith.constant 1.000000e+00 : f32
    %470 = vector.broadcast %cst_164 : f32 to vector<2x128xf32>
    %471 = arith.subf %469, %470 : vector<2x128xf32>
    %472 = vector.extract_strided_slice %464 {offsets = [0, 384], sizes = [2, 128], strides = [1, 1]} : vector<2x512xf32> to vector<2x128xf32>
    %473 = arith.mulf %466, %453 : vector<2x128xf32>
    %474 = arith.mulf %465, %471 : vector<2x128xf32>
    %475 = arith.addf %473, %474 : vector<2x128xf32>
    %476 = math.tanh %475 : vector<2x128xf32>
    %477 = arith.mulf %472, %476 : vector<2x128xf32>
    %478 = arith.index_cast %c0_i32_158 : i32 to index
    %c0_165 = arith.constant 0 : index
    %c0_166 = arith.constant 0 : index
    %479 = vector.load %arg11[%478, %c0_165, %c0_166] : memref<8x2x128xf32, #tpu.memory_space<vmem>>, vector<1x2x128xf32>
    %480 = vector.shape_cast %479 : vector<1x2x128xf32> to vector<2x128xf32>
    %481 = vector.shape_cast %477 : vector<2x128xf32> to vector<1x2x128xf32>
    tpu.vector_store %arg11[%478, %c0_165, %c0_166], %481 {strides = array<i32>} : memref<8x2x128xf32, #tpu.memory_space<vmem>>, vector<1x2x128xf32>,
    %c7_i32_167 = arith.constant 7 : i32
    %482 = arith.subi %c7_i32_167, %c0_i32_158 : i32
    %483 = arith.index_cast %482 : i32 to index
    %c0_168 = arith.constant 0 : index
    %c0_169 = arith.constant 0 : index
    %484 = vector.load %arg12[%483, %c0_168, %c0_169] : memref<8x2x128xf32, #tpu.memory_space<vmem>>, vector<1x2x128xf32>
    %485 = vector.shape_cast %484 : vector<1x2x128xf32> to vector<2x128xf32>
    %486 = vector.shape_cast %477 : vector<2x128xf32> to vector<1x2x128xf32>
    tpu.vector_store %arg12[%483, %c0_168, %c0_169], %486 {strides = array<i32>} : memref<8x2x128xf32, #tpu.memory_space<vmem>>, vector<1x2x128xf32>,
    %c1_i32_170 = arith.constant 1 : i32
    %487 = arith.index_cast %c1_i32_170 : i32 to index
    %c0_171 = arith.constant 0 : index
    %c0_172 = arith.constant 0 : index
    %488 = vector.load %arg10[%487, %c0_171, %c0_172] : memref<8x2x512xf32, #tpu.memory_space<vmem>>, vector<1x2x512xf32>
    %489 = vector.shape_cast %488 : vector<1x2x512xf32> to vector<2x512xf32>
    %490 = arith.truncf %477 : vector<2x128xf32> to vector<2x128xbf16>
    %cst_173 = arith.constant dense<0.000000e+00> : vector<2x512xf32>
    %491 = tpu.matmul %490, %451, %cst_173 {dimension_numbers = #tpu.dot_dimension_numbers<[1], [0], [0], [1], [0, 0, 1, 1], [], []>} : vector<2x128xbf16>, vector<128x512xbf16>, vector<2x512xf32> -> vector<2x512xf32>
    %492 = arith.addf %489, %491 : vector<2x512xf32>
    %493 = arith.negf %492 : vector<2x512xf32>
    %494 = math.exp %493 : vector<2x512xf32>
    %cst_174 = arith.constant 1.000000e+00 : f32
    %495 = vector.broadcast %cst_174 : f32 to vector<2x512xf32>
    %496 = arith.addf %495, %494 : vector<2x512xf32>
    %497 = arith.divf %495, %496 : vector<2x512xf32>
    %498 = vector.extract_strided_slice %497 {offsets = [0, 0], sizes = [2, 128], strides = [1, 1]} : vector<2x512xf32> to vector<2x128xf32>
    %499 = vector.extract_strided_slice %497 {offsets = [0, 128], sizes = [2, 128], strides = [1, 1]} : vector<2x512xf32> to vector<2x128xf32>
    %500 = vector.extract_strided_slice %497 {offsets = [0, 256], sizes = [2, 128], strides = [1, 1]} : vector<2x512xf32> to vector<2x128xf32>
    %cst_175 = arith.constant 2.000000e+00 : f32
    %501 = vector.broadcast %cst_175 : f32 to vector<2x128xf32>
    %502 = arith.mulf %501, %500 : vector<2x128xf32>
    %cst_176 = arith.constant 1.000000e+00 : f32
    %503 = vector.broadcast %cst_176 : f32 to vector<2x128xf32>
    %504 = arith.subf %502, %503 : vector<2x128xf32>
    %505 = vector.extract_strided_slice %497 {offsets = [0, 384], sizes = [2, 128], strides = [1, 1]} : vector<2x512xf32> to vector<2x128xf32>
    %506 = arith.mulf %499, %475 : vector<2x128xf32>
    %507 = arith.mulf %498, %504 : vector<2x128xf32>
    %508 = arith.addf %506, %507 : vector<2x128xf32>
    %509 = math.tanh %508 : vector<2x128xf32>
    %510 = arith.mulf %505, %509 : vector<2x128xf32>
    %511 = arith.index_cast %c1_i32_170 : i32 to index
    %c0_177 = arith.constant 0 : index
    %c0_178 = arith.constant 0 : index
    %512 = vector.load %arg11[%511, %c0_177, %c0_178] : memref<8x2x128xf32, #tpu.memory_space<vmem>>, vector<1x2x128xf32>
    %513 = vector.shape_cast %512 : vector<1x2x128xf32> to vector<2x128xf32>
    %514 = vector.shape_cast %510 : vector<2x128xf32> to vector<1x2x128xf32>
    tpu.vector_store %arg11[%511, %c0_177, %c0_178], %514 {strides = array<i32>} : memref<8x2x128xf32, #tpu.memory_space<vmem>>, vector<1x2x128xf32>,
    %c7_i32_179 = arith.constant 7 : i32
    %515 = arith.subi %c7_i32_179, %c1_i32_170 : i32
    %516 = arith.index_cast %515 : i32 to index
    %c0_180 = arith.constant 0 : index
    %c0_181 = arith.constant 0 : index
    %517 = vector.load %arg12[%516, %c0_180, %c0_181] : memref<8x2x128xf32, #tpu.memory_space<vmem>>, vector<1x2x128xf32>
    %518 = vector.shape_cast %517 : vector<1x2x128xf32> to vector<2x128xf32>
    %519 = vector.shape_cast %510 : vector<2x128xf32> to vector<1x2x128xf32>
    tpu.vector_store %arg12[%516, %c0_180, %c0_181], %519 {strides = array<i32>} : memref<8x2x128xf32, #tpu.memory_space<vmem>>, vector<1x2x128xf32>,
    %c2_i32_182 = arith.constant 2 : i32
    %520 = arith.index_cast %c2_i32_182 : i32 to index
    %c0_183 = arith.constant 0 : index
    %c0_184 = arith.constant 0 : index
    %521 = vector.load %arg10[%520, %c0_183, %c0_184] : memref<8x2x512xf32, #tpu.memory_space<vmem>>, vector<1x2x512xf32>
    %522 = vector.shape_cast %521 : vector<1x2x512xf32> to vector<2x512xf32>
    %523 = arith.truncf %510 : vector<2x128xf32> to vector<2x128xbf16>
    %cst_185 = arith.constant dense<0.000000e+00> : vector<2x512xf32>
    %524 = tpu.matmul %523, %451, %cst_185 {dimension_numbers = #tpu.dot_dimension_numbers<[1], [0], [0], [1], [0, 0, 1, 1], [], []>} : vector<2x128xbf16>, vector<128x512xbf16>, vector<2x512xf32> -> vector<2x512xf32>
    %525 = arith.addf %522, %524 : vector<2x512xf32>
    %526 = arith.negf %525 : vector<2x512xf32>
    %527 = math.exp %526 : vector<2x512xf32>
    %cst_186 = arith.constant 1.000000e+00 : f32
    %528 = vector.broadcast %cst_186 : f32 to vector<2x512xf32>
    %529 = arith.addf %528, %527 : vector<2x512xf32>
    %530 = arith.divf %528, %529 : vector<2x512xf32>
    %531 = vector.extract_strided_slice %530 {offsets = [0, 0], sizes = [2, 128], strides = [1, 1]} : vector<2x512xf32> to vector<2x128xf32>
    %532 = vector.extract_strided_slice %530 {offsets = [0, 128], sizes = [2, 128], strides = [1, 1]} : vector<2x512xf32> to vector<2x128xf32>
    %533 = vector.extract_strided_slice %530 {offsets = [0, 256], sizes = [2, 128], strides = [1, 1]} : vector<2x512xf32> to vector<2x128xf32>
    %cst_187 = arith.constant 2.000000e+00 : f32
    %534 = vector.broadcast %cst_187 : f32 to vector<2x128xf32>
    %535 = arith.mulf %534, %533 : vector<2x128xf32>
    %cst_188 = arith.constant 1.000000e+00 : f32
    %536 = vector.broadcast %cst_188 : f32 to vector<2x128xf32>
    %537 = arith.subf %535, %536 : vector<2x128xf32>
    %538 = vector.extract_strided_slice %530 {offsets = [0, 384], sizes = [2, 128], strides = [1, 1]} : vector<2x512xf32> to vector<2x128xf32>
    %539 = arith.mulf %532, %508 : vector<2x128xf32>
    %540 = arith.mulf %531, %537 : vector<2x128xf32>
    %541 = arith.addf %539, %540 : vector<2x128xf32>
    %542 = math.tanh %541 : vector<2x128xf32>
    %543 = arith.mulf %538, %542 : vector<2x128xf32>
    %544 = arith.index_cast %c2_i32_182 : i32 to index
    %c0_189 = arith.constant 0 : index
    %c0_190 = arith.constant 0 : index
    %545 = vector.load %arg11[%544, %c0_189, %c0_190] : memref<8x2x128xf32, #tpu.memory_space<vmem>>, vector<1x2x128xf32>
    %546 = vector.shape_cast %545 : vector<1x2x128xf32> to vector<2x128xf32>
    %547 = vector.shape_cast %543 : vector<2x128xf32> to vector<1x2x128xf32>
    tpu.vector_store %arg11[%544, %c0_189, %c0_190], %547 {strides = array<i32>} : memref<8x2x128xf32, #tpu.memory_space<vmem>>, vector<1x2x128xf32>,
    %c7_i32_191 = arith.constant 7 : i32
    %548 = arith.subi %c7_i32_191, %c2_i32_182 : i32
    %549 = arith.index_cast %548 : i32 to index
    %c0_192 = arith.constant 0 : index
    %c0_193 = arith.constant 0 : index
    %550 = vector.load %arg12[%549, %c0_192, %c0_193] : memref<8x2x128xf32, #tpu.memory_space<vmem>>, vector<1x2x128xf32>
    %551 = vector.shape_cast %550 : vector<1x2x128xf32> to vector<2x128xf32>
    %552 = vector.shape_cast %543 : vector<2x128xf32> to vector<1x2x128xf32>
    tpu.vector_store %arg12[%549, %c0_192, %c0_193], %552 {strides = array<i32>} : memref<8x2x128xf32, #tpu.memory_space<vmem>>, vector<1x2x128xf32>,
    %c3_i32_194 = arith.constant 3 : i32
    %553 = arith.index_cast %c3_i32_194 : i32 to index
    %c0_195 = arith.constant 0 : index
    %c0_196 = arith.constant 0 : index
    %554 = vector.load %arg10[%553, %c0_195, %c0_196] : memref<8x2x512xf32, #tpu.memory_space<vmem>>, vector<1x2x512xf32>
    %555 = vector.shape_cast %554 : vector<1x2x512xf32> to vector<2x512xf32>
    %556 = arith.truncf %543 : vector<2x128xf32> to vector<2x128xbf16>
    %cst_197 = arith.constant dense<0.000000e+00> : vector<2x512xf32>
    %557 = tpu.matmul %556, %451, %cst_197 {dimension_numbers = #tpu.dot_dimension_numbers<[1], [0], [0], [1], [0, 0, 1, 1], [], []>} : vector<2x128xbf16>, vector<128x512xbf16>, vector<2x512xf32> -> vector<2x512xf32>
    %558 = arith.addf %555, %557 : vector<2x512xf32>
    %559 = arith.negf %558 : vector<2x512xf32>
    %560 = math.exp %559 : vector<2x512xf32>
    %cst_198 = arith.constant 1.000000e+00 : f32
    %561 = vector.broadcast %cst_198 : f32 to vector<2x512xf32>
    %562 = arith.addf %561, %560 : vector<2x512xf32>
    %563 = arith.divf %561, %562 : vector<2x512xf32>
    %564 = vector.extract_strided_slice %563 {offsets = [0, 0], sizes = [2, 128], strides = [1, 1]} : vector<2x512xf32> to vector<2x128xf32>
    %565 = vector.extract_strided_slice %563 {offsets = [0, 128], sizes = [2, 128], strides = [1, 1]} : vector<2x512xf32> to vector<2x128xf32>
    %566 = vector.extract_strided_slice %563 {offsets = [0, 256], sizes = [2, 128], strides = [1, 1]} : vector<2x512xf32> to vector<2x128xf32>
    %cst_199 = arith.constant 2.000000e+00 : f32
    %567 = vector.broadcast %cst_199 : f32 to vector<2x128xf32>
    %568 = arith.mulf %567, %566 : vector<2x128xf32>
    %cst_200 = arith.constant 1.000000e+00 : f32
    %569 = vector.broadcast %cst_200 : f32 to vector<2x128xf32>
    %570 = arith.subf %568, %569 : vector<2x128xf32>
    %571 = vector.extract_strided_slice %563 {offsets = [0, 384], sizes = [2, 128], strides = [1, 1]} : vector<2x512xf32> to vector<2x128xf32>
    %572 = arith.mulf %565, %541 : vector<2x128xf32>
    %573 = arith.mulf %564, %570 : vector<2x128xf32>
    %574 = arith.addf %572, %573 : vector<2x128xf32>
    %575 = math.tanh %574 : vector<2x128xf32>
    %576 = arith.mulf %571, %575 : vector<2x128xf32>
    %577 = arith.index_cast %c3_i32_194 : i32 to index
    %c0_201 = arith.constant 0 : index
    %c0_202 = arith.constant 0 : index
    %578 = vector.load %arg11[%577, %c0_201, %c0_202] : memref<8x2x128xf32, #tpu.memory_space<vmem>>, vector<1x2x128xf32>
    %579 = vector.shape_cast %578 : vector<1x2x128xf32> to vector<2x128xf32>
    %580 = vector.shape_cast %576 : vector<2x128xf32> to vector<1x2x128xf32>
    tpu.vector_store %arg11[%577, %c0_201, %c0_202], %580 {strides = array<i32>} : memref<8x2x128xf32, #tpu.memory_space<vmem>>, vector<1x2x128xf32>,
    %c7_i32_203 = arith.constant 7 : i32
    %581 = arith.subi %c7_i32_203, %c3_i32_194 : i32
    %582 = arith.index_cast %581 : i32 to index
    %c0_204 = arith.constant 0 : index
    %c0_205 = arith.constant 0 : index
    %583 = vector.load %arg12[%582, %c0_204, %c0_205] : memref<8x2x128xf32, #tpu.memory_space<vmem>>, vector<1x2x128xf32>
    %584 = vector.shape_cast %583 : vector<1x2x128xf32> to vector<2x128xf32>
    %585 = vector.shape_cast %576 : vector<2x128xf32> to vector<1x2x128xf32>
    tpu.vector_store %arg12[%582, %c0_204, %c0_205], %585 {strides = array<i32>} : memref<8x2x128xf32, #tpu.memory_space<vmem>>, vector<1x2x128xf32>,
    %c4_i32_206 = arith.constant 4 : i32
    %586 = arith.index_cast %c4_i32_206 : i32 to index
    %c0_207 = arith.constant 0 : index
    %c0_208 = arith.constant 0 : index
    %587 = vector.load %arg10[%586, %c0_207, %c0_208] : memref<8x2x512xf32, #tpu.memory_space<vmem>>, vector<1x2x512xf32>
    %588 = vector.shape_cast %587 : vector<1x2x512xf32> to vector<2x512xf32>
    %589 = arith.truncf %576 : vector<2x128xf32> to vector<2x128xbf16>
    %cst_209 = arith.constant dense<0.000000e+00> : vector<2x512xf32>
    %590 = tpu.matmul %589, %451, %cst_209 {dimension_numbers = #tpu.dot_dimension_numbers<[1], [0], [0], [1], [0, 0, 1, 1], [], []>} : vector<2x128xbf16>, vector<128x512xbf16>, vector<2x512xf32> -> vector<2x512xf32>
    %591 = arith.addf %588, %590 : vector<2x512xf32>
    %592 = arith.negf %591 : vector<2x512xf32>
    %593 = math.exp %592 : vector<2x512xf32>
    %cst_210 = arith.constant 1.000000e+00 : f32
    %594 = vector.broadcast %cst_210 : f32 to vector<2x512xf32>
    %595 = arith.addf %594, %593 : vector<2x512xf32>
    %596 = arith.divf %594, %595 : vector<2x512xf32>
    %597 = vector.extract_strided_slice %596 {offsets = [0, 0], sizes = [2, 128], strides = [1, 1]} : vector<2x512xf32> to vector<2x128xf32>
    %598 = vector.extract_strided_slice %596 {offsets = [0, 128], sizes = [2, 128], strides = [1, 1]} : vector<2x512xf32> to vector<2x128xf32>
    %599 = vector.extract_strided_slice %596 {offsets = [0, 256], sizes = [2, 128], strides = [1, 1]} : vector<2x512xf32> to vector<2x128xf32>
    %cst_211 = arith.constant 2.000000e+00 : f32
    %600 = vector.broadcast %cst_211 : f32 to vector<2x128xf32>
    %601 = arith.mulf %600, %599 : vector<2x128xf32>
    %cst_212 = arith.constant 1.000000e+00 : f32
    %602 = vector.broadcast %cst_212 : f32 to vector<2x128xf32>
    %603 = arith.subf %601, %602 : vector<2x128xf32>
    %604 = vector.extract_strided_slice %596 {offsets = [0, 384], sizes = [2, 128], strides = [1, 1]} : vector<2x512xf32> to vector<2x128xf32>
    %605 = arith.mulf %598, %574 : vector<2x128xf32>
    %606 = arith.mulf %597, %603 : vector<2x128xf32>
    %607 = arith.addf %605, %606 : vector<2x128xf32>
    %608 = math.tanh %607 : vector<2x128xf32>
    %609 = arith.mulf %604, %608 : vector<2x128xf32>
    %610 = arith.index_cast %c4_i32_206 : i32 to index
    %c0_213 = arith.constant 0 : index
    %c0_214 = arith.constant 0 : index
    %611 = vector.load %arg11[%610, %c0_213, %c0_214] : memref<8x2x128xf32, #tpu.memory_space<vmem>>, vector<1x2x128xf32>
    %612 = vector.shape_cast %611 : vector<1x2x128xf32> to vector<2x128xf32>
    %613 = vector.shape_cast %609 : vector<2x128xf32> to vector<1x2x128xf32>
    tpu.vector_store %arg11[%610, %c0_213, %c0_214], %613 {strides = array<i32>} : memref<8x2x128xf32, #tpu.memory_space<vmem>>, vector<1x2x128xf32>,
    %c7_i32_215 = arith.constant 7 : i32
    %614 = arith.subi %c7_i32_215, %c4_i32_206 : i32
    %615 = arith.index_cast %614 : i32 to index
    %c0_216 = arith.constant 0 : index
    %c0_217 = arith.constant 0 : index
    %616 = vector.load %arg12[%615, %c0_216, %c0_217] : memref<8x2x128xf32, #tpu.memory_space<vmem>>, vector<1x2x128xf32>
    %617 = vector.shape_cast %616 : vector<1x2x128xf32> to vector<2x128xf32>
    %618 = vector.shape_cast %609 : vector<2x128xf32> to vector<1x2x128xf32>
    tpu.vector_store %arg12[%615, %c0_216, %c0_217], %618 {strides = array<i32>} : memref<8x2x128xf32, #tpu.memory_space<vmem>>, vector<1x2x128xf32>,
    %c5_i32_218 = arith.constant 5 : i32
    %619 = arith.index_cast %c5_i32_218 : i32 to index
    %c0_219 = arith.constant 0 : index
    %c0_220 = arith.constant 0 : index
    %620 = vector.load %arg10[%619, %c0_219, %c0_220] : memref<8x2x512xf32, #tpu.memory_space<vmem>>, vector<1x2x512xf32>
    %621 = vector.shape_cast %620 : vector<1x2x512xf32> to vector<2x512xf32>
    %622 = arith.truncf %609 : vector<2x128xf32> to vector<2x128xbf16>
    %cst_221 = arith.constant dense<0.000000e+00> : vector<2x512xf32>
    %623 = tpu.matmul %622, %451, %cst_221 {dimension_numbers = #tpu.dot_dimension_numbers<[1], [0], [0], [1], [0, 0, 1, 1], [], []>} : vector<2x128xbf16>, vector<128x512xbf16>, vector<2x512xf32> -> vector<2x512xf32>
    %624 = arith.addf %621, %623 : vector<2x512xf32>
    %625 = arith.negf %624 : vector<2x512xf32>
    %626 = math.exp %625 : vector<2x512xf32>
    %cst_222 = arith.constant 1.000000e+00 : f32
    %627 = vector.broadcast %cst_222 : f32 to vector<2x512xf32>
    %628 = arith.addf %627, %626 : vector<2x512xf32>
    %629 = arith.divf %627, %628 : vector<2x512xf32>
    %630 = vector.extract_strided_slice %629 {offsets = [0, 0], sizes = [2, 128], strides = [1, 1]} : vector<2x512xf32> to vector<2x128xf32>
    %631 = vector.extract_strided_slice %629 {offsets = [0, 128], sizes = [2, 128], strides = [1, 1]} : vector<2x512xf32> to vector<2x128xf32>
    %632 = vector.extract_strided_slice %629 {offsets = [0, 256], sizes = [2, 128], strides = [1, 1]} : vector<2x512xf32> to vector<2x128xf32>
    %cst_223 = arith.constant 2.000000e+00 : f32
    %633 = vector.broadcast %cst_223 : f32 to vector<2x128xf32>
    %634 = arith.mulf %633, %632 : vector<2x128xf32>
    %cst_224 = arith.constant 1.000000e+00 : f32
    %635 = vector.broadcast %cst_224 : f32 to vector<2x128xf32>
    %636 = arith.subf %634, %635 : vector<2x128xf32>
    %637 = vector.extract_strided_slice %629 {offsets = [0, 384], sizes = [2, 128], strides = [1, 1]} : vector<2x512xf32> to vector<2x128xf32>
    %638 = arith.mulf %631, %607 : vector<2x128xf32>
    %639 = arith.mulf %630, %636 : vector<2x128xf32>
    %640 = arith.addf %638, %639 : vector<2x128xf32>
    %641 = math.tanh %640 : vector<2x128xf32>
    %642 = arith.mulf %637, %641 : vector<2x128xf32>
    %643 = arith.index_cast %c5_i32_218 : i32 to index
    %c0_225 = arith.constant 0 : index
    %c0_226 = arith.constant 0 : index
    %644 = vector.load %arg11[%643, %c0_225, %c0_226] : memref<8x2x128xf32, #tpu.memory_space<vmem>>, vector<1x2x128xf32>
    %645 = vector.shape_cast %644 : vector<1x2x128xf32> to vector<2x128xf32>
    %646 = vector.shape_cast %642 : vector<2x128xf32> to vector<1x2x128xf32>
    tpu.vector_store %arg11[%643, %c0_225, %c0_226], %646 {strides = array<i32>} : memref<8x2x128xf32, #tpu.memory_space<vmem>>, vector<1x2x128xf32>,
    %c7_i32_227 = arith.constant 7 : i32
    %647 = arith.subi %c7_i32_227, %c5_i32_218 : i32
    %648 = arith.index_cast %647 : i32 to index
    %c0_228 = arith.constant 0 : index
    %c0_229 = arith.constant 0 : index
    %649 = vector.load %arg12[%648, %c0_228, %c0_229] : memref<8x2x128xf32, #tpu.memory_space<vmem>>, vector<1x2x128xf32>
    %650 = vector.shape_cast %649 : vector<1x2x128xf32> to vector<2x128xf32>
    %651 = vector.shape_cast %642 : vector<2x128xf32> to vector<1x2x128xf32>
    tpu.vector_store %arg12[%648, %c0_228, %c0_229], %651 {strides = array<i32>} : memref<8x2x128xf32, #tpu.memory_space<vmem>>, vector<1x2x128xf32>,
    %c6_i32_230 = arith.constant 6 : i32
    %652 = arith.index_cast %c6_i32_230 : i32 to index
    %c0_231 = arith.constant 0 : index
    %c0_232 = arith.constant 0 : index
    %653 = vector.load %arg10[%652, %c0_231, %c0_232] : memref<8x2x512xf32, #tpu.memory_space<vmem>>, vector<1x2x512xf32>
    %654 = vector.shape_cast %653 : vector<1x2x512xf32> to vector<2x512xf32>
    %655 = arith.truncf %642 : vector<2x128xf32> to vector<2x128xbf16>
    %cst_233 = arith.constant dense<0.000000e+00> : vector<2x512xf32>
    %656 = tpu.matmul %655, %451, %cst_233 {dimension_numbers = #tpu.dot_dimension_numbers<[1], [0], [0], [1], [0, 0, 1, 1], [], []>} : vector<2x128xbf16>, vector<128x512xbf16>, vector<2x512xf32> -> vector<2x512xf32>
    %657 = arith.addf %654, %656 : vector<2x512xf32>
    %658 = arith.negf %657 : vector<2x512xf32>
    %659 = math.exp %658 : vector<2x512xf32>
    %cst_234 = arith.constant 1.000000e+00 : f32
    %660 = vector.broadcast %cst_234 : f32 to vector<2x512xf32>
    %661 = arith.addf %660, %659 : vector<2x512xf32>
    %662 = arith.divf %660, %661 : vector<2x512xf32>
    %663 = vector.extract_strided_slice %662 {offsets = [0, 0], sizes = [2, 128], strides = [1, 1]} : vector<2x512xf32> to vector<2x128xf32>
    %664 = vector.extract_strided_slice %662 {offsets = [0, 128], sizes = [2, 128], strides = [1, 1]} : vector<2x512xf32> to vector<2x128xf32>
    %665 = vector.extract_strided_slice %662 {offsets = [0, 256], sizes = [2, 128], strides = [1, 1]} : vector<2x512xf32> to vector<2x128xf32>
    %cst_235 = arith.constant 2.000000e+00 : f32
    %666 = vector.broadcast %cst_235 : f32 to vector<2x128xf32>
    %667 = arith.mulf %666, %665 : vector<2x128xf32>
    %cst_236 = arith.constant 1.000000e+00 : f32
    %668 = vector.broadcast %cst_236 : f32 to vector<2x128xf32>
    %669 = arith.subf %667, %668 : vector<2x128xf32>
    %670 = vector.extract_strided_slice %662 {offsets = [0, 384], sizes = [2, 128], strides = [1, 1]} : vector<2x512xf32> to vector<2x128xf32>
    %671 = arith.mulf %664, %640 : vector<2x128xf32>
    %672 = arith.mulf %663, %669 : vector<2x128xf32>
    %673 = arith.addf %671, %672 : vector<2x128xf32>
    %674 = math.tanh %673 : vector<2x128xf32>
    %675 = arith.mulf %670, %674 : vector<2x128xf32>
    %676 = arith.index_cast %c6_i32_230 : i32 to index
    %c0_237 = arith.constant 0 : index
    %c0_238 = arith.constant 0 : index
    %677 = vector.load %arg11[%676, %c0_237, %c0_238] : memref<8x2x128xf32, #tpu.memory_space<vmem>>, vector<1x2x128xf32>
    %678 = vector.shape_cast %677 : vector<1x2x128xf32> to vector<2x128xf32>
    %679 = vector.shape_cast %675 : vector<2x128xf32> to vector<1x2x128xf32>
    tpu.vector_store %arg11[%676, %c0_237, %c0_238], %679 {strides = array<i32>} : memref<8x2x128xf32, #tpu.memory_space<vmem>>, vector<1x2x128xf32>,
    %c7_i32_239 = arith.constant 7 : i32
    %680 = arith.subi %c7_i32_239, %c6_i32_230 : i32
    %681 = arith.index_cast %680 : i32 to index
    %c0_240 = arith.constant 0 : index
    %c0_241 = arith.constant 0 : index
    %682 = vector.load %arg12[%681, %c0_240, %c0_241] : memref<8x2x128xf32, #tpu.memory_space<vmem>>, vector<1x2x128xf32>
    %683 = vector.shape_cast %682 : vector<1x2x128xf32> to vector<2x128xf32>
    %684 = vector.shape_cast %675 : vector<2x128xf32> to vector<1x2x128xf32>
    tpu.vector_store %arg12[%681, %c0_240, %c0_241], %684 {strides = array<i32>} : memref<8x2x128xf32, #tpu.memory_space<vmem>>, vector<1x2x128xf32>,
    %c7_i32_242 = arith.constant 7 : i32
    %685 = arith.index_cast %c7_i32_242 : i32 to index
    %c0_243 = arith.constant 0 : index
    %c0_244 = arith.constant 0 : index
    %686 = vector.load %arg10[%685, %c0_243, %c0_244] : memref<8x2x512xf32, #tpu.memory_space<vmem>>, vector<1x2x512xf32>
    %687 = vector.shape_cast %686 : vector<1x2x512xf32> to vector<2x512xf32>
    %688 = arith.truncf %675 : vector<2x128xf32> to vector<2x128xbf16>
    %cst_245 = arith.constant dense<0.000000e+00> : vector<2x512xf32>
    %689 = tpu.matmul %688, %451, %cst_245 {dimension_numbers = #tpu.dot_dimension_numbers<[1], [0], [0], [1], [0, 0, 1, 1], [], []>} : vector<2x128xbf16>, vector<128x512xbf16>, vector<2x512xf32> -> vector<2x512xf32>
    %690 = arith.addf %687, %689 : vector<2x512xf32>
    %691 = arith.negf %690 : vector<2x512xf32>
    %692 = math.exp %691 : vector<2x512xf32>
    %cst_246 = arith.constant 1.000000e+00 : f32
    %693 = vector.broadcast %cst_246 : f32 to vector<2x512xf32>
    %694 = arith.addf %693, %692 : vector<2x512xf32>
    %695 = arith.divf %693, %694 : vector<2x512xf32>
    %696 = vector.extract_strided_slice %695 {offsets = [0, 0], sizes = [2, 128], strides = [1, 1]} : vector<2x512xf32> to vector<2x128xf32>
    %697 = vector.extract_strided_slice %695 {offsets = [0, 128], sizes = [2, 128], strides = [1, 1]} : vector<2x512xf32> to vector<2x128xf32>
    %698 = vector.extract_strided_slice %695 {offsets = [0, 256], sizes = [2, 128], strides = [1, 1]} : vector<2x512xf32> to vector<2x128xf32>
    %cst_247 = arith.constant 2.000000e+00 : f32
    %699 = vector.broadcast %cst_247 : f32 to vector<2x128xf32>
    %700 = arith.mulf %699, %698 : vector<2x128xf32>
    %cst_248 = arith.constant 1.000000e+00 : f32
    %701 = vector.broadcast %cst_248 : f32 to vector<2x128xf32>
    %702 = arith.subf %700, %701 : vector<2x128xf32>
    %703 = vector.extract_strided_slice %695 {offsets = [0, 384], sizes = [2, 128], strides = [1, 1]} : vector<2x512xf32> to vector<2x128xf32>
    %704 = arith.mulf %697, %673 : vector<2x128xf32>
    %705 = arith.mulf %696, %702 : vector<2x128xf32>
    %706 = arith.addf %704, %705 : vector<2x128xf32>
    %707 = math.tanh %706 : vector<2x128xf32>
    %708 = arith.mulf %703, %707 : vector<2x128xf32>
    %709 = arith.index_cast %c7_i32_242 : i32 to index
    %c0_249 = arith.constant 0 : index
    %c0_250 = arith.constant 0 : index
    %710 = vector.load %arg11[%709, %c0_249, %c0_250] : memref<8x2x128xf32, #tpu.memory_space<vmem>>, vector<1x2x128xf32>
    %711 = vector.shape_cast %710 : vector<1x2x128xf32> to vector<2x128xf32>
    %712 = vector.shape_cast %708 : vector<2x128xf32> to vector<1x2x128xf32>
    tpu.vector_store %arg11[%709, %c0_249, %c0_250], %712 {strides = array<i32>} : memref<8x2x128xf32, #tpu.memory_space<vmem>>, vector<1x2x128xf32>,
    %c7_i32_251 = arith.constant 7 : i32
    %713 = arith.subi %c7_i32_251, %c7_i32_242 : i32
    %714 = arith.index_cast %713 : i32 to index
    %c0_252 = arith.constant 0 : index
    %c0_253 = arith.constant 0 : index
    %715 = vector.load %arg12[%714, %c0_252, %c0_253] : memref<8x2x128xf32, #tpu.memory_space<vmem>>, vector<1x2x128xf32>
    %716 = vector.shape_cast %715 : vector<1x2x128xf32> to vector<2x128xf32>
    %717 = vector.shape_cast %708 : vector<2x128xf32> to vector<1x2x128xf32>
    tpu.vector_store %arg12[%714, %c0_252, %c0_253], %717 {strides = array<i32>} : memref<8x2x128xf32, #tpu.memory_space<vmem>>, vector<1x2x128xf32>,
    %c8_i32_254 = arith.constant 8 : i32
    %c7_255 = arith.constant 7 : index
    %c0_256 = arith.constant 0 : index
    %c0_257 = arith.constant 0 : index
    %718 = vector.load %arg11[%c7_255, %c0_256, %c0_257] : memref<8x2x128xf32, #tpu.memory_space<vmem>>, vector<1x2x128xf32>
    %719 = vector.shape_cast %718 : vector<1x2x128xf32> to vector<2x128xf32>
    %c7_258 = arith.constant 7 : index
    %c0_259 = arith.constant 0 : index
    %c0_260 = arith.constant 0 : index
    %720 = vector.load %arg12[%c7_258, %c0_259, %c0_260] : memref<8x2x128xf32, #tpu.memory_space<vmem>>, vector<1x2x128xf32>
    %721 = vector.shape_cast %720 : vector<1x2x128xf32> to vector<2x128xf32>
    %722 = tpu.concatenate %719, %721 in 1 : vector<2x128xf32>, vector<2x128xf32> -> vector<2x256xf32>
    %c0_261 = arith.constant 0 : index
    %c0_262 = arith.constant 0 : index
    %723 = vector.load %arg7[%c0_261, %c0_262] : memref<1x256xf32, #tpu.memory_space<vmem>>, vector<1x256xf32>
    %724 = vector.broadcast %723 : vector<1x256xf32> to vector<2x256xf32>
    %725 = arith.mulf %722, %724 : vector<2x256xf32>
    %cst_263 = arith.constant dense<0.000000e+00> : vector<2xf32>
    %726 = vector.multi_reduction <add>, %725, %cst_263 [1] : vector<2x256xf32> to vector<2xf32>
    %727 = vector.shape_cast %726 : vector<2xf32> to vector<2x1xf32>
    %c0_264 = arith.constant 0 : index
    %728 = memref.load %arg8[%c0_264] : memref<1xf32, #tpu.memory_space<smem>>
    %729 = vector.broadcast %728 : f32 to vector<2x1xf32>
    %730 = arith.addf %727, %729 : vector<2x1xf32>
    %c0_265 = arith.constant 0 : index
    %c0_266 = arith.constant 0 : index
    %731 = vector.load %arg9[%c0_265, %c0_266] : memref<2x1xf32, #tpu.memory_space<vmem>>, vector<2x1xf32>
    tpu.vector_store %arg9[%c0_265, %c0_266], %730 {strides = array<i32>} : memref<2x1xf32, #tpu.memory_space<vmem>>, vector<2x1xf32>,
    return
  }
}

</mosaic_0001>

<bundles_post_ra>
// kernel: cnn_bilstm_pallas.1
= control target key start
LH: loop header
LB: loop body
LE: loop exit
PB: predicated region body
PF: predicated region fallthrough
CT: control target
= control target key end

     0   :  { %15 = vsyncpa [#allocation7], 0  ;;  %s5837_s0 = inlined_call_operand.vmem [shape: f32[16,128], index: 0, kind: input, shape index: {}]   ;;  %s5838_s1 = inlined_call_operand.vmem [shape: f32[128,256], index: 1, kind: input, shape index: {}]   ;;  %s5839_s2 = inlined_call_operand.vmem [shape: f32[1,256], index: 2, kind: input, shape index: {}]   ;;  %s5840_s3 = inlined_call_operand.hbm [shape: f32[128,1024], index: 3, kind: input, shape index: {}]   ;;  %s5841_s4 = inlined_call_operand.hbm [shape: f32[256,1024], index: 4, kind: input, shape index: {}]   ;;  %s5842_s5 = inlined_call_operand.hbm [shape: bf16[256,512], index: 5, kind: input, shape index: {}]   ;;  %s5843_s6 = inlined_call_operand.vmem [shape: f32[2,512], index: 6, kind: input, shape index: {}]   ;;  %s5844_s7 = inlined_call_operand.vmem [shape: f32[1,256], index: 7, kind: input, shape index: {}]   ;;  %s5845_s8 = inlined_call_operand.<no memory space> [shape: f32[1], index: 8, kind: input, shape index: {}]   ;;  %s5846_s9 = inlined_call_operand.vmem [shape: f32[2,1], index: 9, kind: output, shape index: {}]  }
   0x1   :  { %16 = vsyncpa [#allocation9], 0  ;;  %s4709_s30 = smov [#allocation8]   ;;  %s4710_s11 = smov [#allocation6]  }
   0x2   :  { %s40_s10 = sshll.u32 %s4709_s30, 4  ;;  %s28_s12 = sshll.u32 %s4710_s11, 4  ;;  %s41_s10 = int_to_ptr.vmem [resolvable:$true] %s40_s10  ;;  %s29_s12 = int_to_ptr.vmem [resolvable:$true] %s28_s12 }
   0x3   :  { %s4653_s13 = scalar_lea.vmem %s41_s10, 32768  ;;  %p4658_p1 = scmp.lt.s32.totalorder %s41_s10, %s41_s10 }
   0x4   :  { %p4654_p0 = scmp.ne.s32.totalorder %s41_s10, %s4653_s13  ;;  %p4659_p2 = scmp.lt.s32.totalorder %s4653_s13, %s4653_s13 }
   0x6   :  { %p4660_p3 = por %p4659_p2, %p4658_p1 }
   0x8   :  { %p4661_p4 = pnand %p4660_p3, %p4654_p0 }
   0xa   :  { %4664 = shalt.err (!%p4661_p4)
}
   0xb   :  { %s4711_s14 = smov 1024   ;;  %s4712_s15 = smov 64  }
   0xc   :  { %46 = dma.hbm_to_vmem [thread:$0]  %s5841_s4, 32768, %s41_s10, [#allocation9], %s4711_s14, %s4711_s14, %s4712_s15  }
   0xd   :  { %s4673_s18 = scalar_lea.vmem %s29_s12, 16384  ;;  %p4678_p6 = scmp.lt.s32.totalorder %s29_s12, %s29_s12 }
   0xe   :  { %p4674_p5 = scmp.ne.s32.totalorder %s29_s12, %s4673_s18  ;;  %p4679_p7 = scmp.lt.s32.totalorder %s4673_s18, %s4673_s18 }
  0x10   :  { %p4680_p8 = por %p4679_p7, %p4678_p6 }
  0x12   :  { %p4681_p9 = pnand %p4680_p8, %p4674_p5 }
  0x14   :  { %4684 = shalt.err (!%p4681_p9)
}
  0x15   :  { %34 = dma.hbm_to_vmem [thread:$0]  %s5840_s3, 16384, %s29_s12, [#allocation7], %s4711_s14, %s4711_s14, %s4712_s15  }
  0x16   :  { %s4713_s21 = smov [#allocation10]  }
  0x17   :  { %s52_s22 = sshll.u32 %s4713_s21, 4  ;;  %s53_s22 = int_to_ptr.vmem [resolvable:$true] %s52_s22 }
  0x18   :  { %s4693_s23 = scalar_lea.vmem %s53_s22, 8192  ;;  %p4698_p11 = scmp.lt.s32.totalorder %s53_s22, %s53_s22 }
  0x19   :  { %p4694_p10 = scmp.ne.s32.totalorder %s53_s22, %s4693_s23  ;;  %p4699_p12 = scmp.lt.s32.totalorder %s4693_s23, %s4693_s23 }
  0x1b   :  { %p4700_p13 = por %p4699_p12, %p4698_p11 }
  0x1d   :  { %p4701_p0 = pnand %p4700_p13, %p4694_p10 }
  0x1f   :  { %4704 = shalt.err (!%p4701_p0)
}
  0x20   :  { %s4714_s4 = smov 256   ;;  %s4715_s24 = smov 16  }
  0x21   :  { %58 = dma.hbm_to_vmem [thread:$0]  %s5842_s5, 8192, %s53_s22, [#allocation9], %s4714_s4, %s4714_s4, %s4715_s24  }
  0x22   :  { %4705 = dma.done.wait [#allocation7], 16384  }
  0x23   :  { %4706 = vsyncadd [#allocation7], 4294950912 }
  0x24   :  { %4707 = dma.done.wait [#allocation9], 40960  }
  0x25   :  { %4708 = vsyncadd [#allocation9], 4294926336  ;;  %v4716_v0 = vmov 0.0   ;;  %v108_v1 = vld [vmem:[%s5838_s1 + $0xf8] sm:$0xff]  ;;  %v107_v2 = vld [vmem:[%s5838_s1 + $0xf0] sm:$0xff]  ;;  %vm4264_vm0 = vcmask 1041408  }
  0x26   :  { %185 = vmatprep.mubr.f32.mxu0 %v4716_v0  ;;  %396 = vmatprep.mubr.f32.mxu1 %v4716_v0  ;;  %v106_v3 = vld [vmem:[%s5838_s1 + $0xe8] sm:$0xff]  ;;  %v105_v4 = vld [vmem:[%s5838_s1 + $0xe0] sm:$0xff]  ;;  %v104_v5 = vld [vmem:[%s5838_s1 + $0xd8] sm:$0xff]  ;;  %vm4273_vm1 = vcmask 1024  }
  0x27   :  { %121 = vmatprep.subr.mxu0 %v108_v1  ;;  %v103_v6 = vld [vmem:[%s5838_s1 + $0xd0] sm:$0xff]  ;;  %v102_v7 = vld [vmem:[%s5838_s1 + $0xc8] sm:$0xff]  ;;  %v101_v8 = vld [vmem:[%s5838_s1 + $0xc0] sm:$0xff] }
  0x28   :  { %122 = vmatpush1.msra.mxu0 %v107_v2  ;;  %v100_v9 = vld [vmem:[%s5838_s1 + $0xb8] sm:$0xff]  ;;  %v99_v10 = vld [vmem:[%s5838_s1 + $0xb0] sm:$0xff]  ;;  %v98_v11 = vld [vmem:[%s5838_s1 + $0xa8] sm:$0xff] }
  0x29   :  { %123 = vmatprep.subr.mxu0 %v106_v3  ;;  %v97_v12 = vld [vmem:[%s5838_s1 + $0xa0] sm:$0xff]  ;;  %v96_v13 = vld [vmem:[%s5838_s1 + $0x98] sm:$0xff]  ;;  %v95_v14 = vld [vmem:[%s5838_s1 + $0x90] sm:$0xff] }
  0x2a   :  { %124 = vmatpush1.msra.mxu0 %v105_v4  ;;  %v325_v15 = vld [vmem:[#allocation6 + $0x3c8] sm:$0xff]  ;;  %v324_v17 = vld [vmem:[#allocation6 + $0x3c0] sm:$0xff]  ;;  %v92_v21 = vld [vmem:[%s5838_s1 + $0x78] sm:$0xff] }
  0x2b   :  { %125 = vmatprep.subr.mxu0 %v104_v5  ;;  %v94_v16 = vld [vmem:[%s5838_s1 + $0x88] sm:$0xff]  ;;  %332 = vmatprep.subr.mxu1 %v325_v15  ;;  %v93_v19 = vld [vmem:[%s5838_s1 + $0x80] sm:$0xff]  ;;  %v91_v24 = vld [vmem:[%s5838_s1 + $0x70] sm:$0xff] }
  0x2c   :  { %126 = vmatpush1.msra.mxu0 %v103_v6  ;;  %v317_v18 = vld [vmem:[#allocation6 + $0x388] sm:$0xff]  ;;  %333 = vmatpush1.msra.mxu1 %v324_v17  ;;  %v316_v20 = vld [vmem:[#allocation6 + $0x380] sm:$0xff]  ;;  %v88_v30 = vld [vmem:[%s5838_s1 + $0x58] sm:$0xff] }
  0x2d   :  { %127 = vmatprep.subr.mxu0 %v102_v7  ;;  %334 = vmatprep.subr.mxu1 %v317_v18  ;;  %v309_v22 = vld [vmem:[#allocation6 + $0x348] sm:$0xff]  ;;  %v308_v23 = vld [vmem:[#allocation6 + $0x340] sm:$0xff]  ;;  %v87_v32 = vld [vmem:[%s5838_s1 + $0x50] sm:$0xff] }
  0x2e   :  { %128 = vmatpush1.msra.mxu0 %v101_v8  ;;  %335 = vmatpush1.msra.mxu1 %v316_v20  ;;  %v301_v25 = vld [vmem:[#allocation6 + $0x308] sm:$0xff]  ;;  %v300_v27 = vld [vmem:[#allocation6 + $0x300] sm:$0xff]  ;;  %v84_v38 = vld [vmem:[%s5838_s1 + $0x38] sm:$0xff]  ;;  %v111_v20 = vlaneseq }
  0x2f   :  { %129 = vmatprep.subr.mxu0 %v100_v9  ;;  %v90_v26 = vld [vmem:[%s5838_s1 + $0x68] sm:$0xff]  ;;  %336 = vmatprep.subr.mxu1 %v309_v22  ;;  %v89_v28 = vld [vmem:[%s5838_s1 + $0x60] sm:$0xff]  ;;  %v83_v40 = vld [vmem:[%s5838_s1 + $0x30] sm:$0xff] }
  0x30   :  { %130 = vmatpush1.msra.mxu0 %v99_v10  ;;  %337 = vmatpush1.msra.mxu1 %v308_v23  ;;  %v293_v29 = vld [vmem:[#allocation6 + $0x2c8] sm:$0xff]  ;;  %v292_v31 = vld [vmem:[#allocation6 + $0x2c0] sm:$0xff]  ;;  %v80_v45 = vld [vmem:[%s5838_s1 + $0x18] sm:$0xff] }
  0x31   :  { %131 = vmatprep.subr.mxu0 %v98_v11  ;;  %338 = vmatprep.subr.mxu1 %v301_v25  ;;  %v285_v33 = vld [vmem:[#allocation6 + $0x288] sm:$0xff]  ;;  %v284_v35 = vld [vmem:[#allocation6 + $0x280] sm:$0xff]  ;;  %v79_v46 = vld [vmem:[%s5838_s1 + $0x10] sm:$0xff]  ;;  %v4884_v25 = vshrl.u32 %v111_v20, 7 }
  0x32   :  { %132 = vmatpush1.msra.mxu0 %v97_v12  ;;  %339 = vmatpush1.msra.mxu1 %v300_v27  ;;  %v86_v34 = vld [vmem:[%s5838_s1 + $0x48] sm:$0xff]  ;;  %v85_v36 = vld [vmem:[%s5838_s1 + $0x40] sm:$0xff]  ;;  %v327_v55 = vld [vmem:[#allocation6 + $0x3d8] sm:$0xff] }
  0x33   :  { %133 = vmatprep.subr.mxu0 %v96_v13  ;;  %340 = vmatprep.subr.mxu1 %v293_v29  ;;  %v277_v37 = vld [vmem:[#allocation6 + $0x248] sm:$0xff]  ;;  %v276_v39 = vld [vmem:[#allocation6 + $0x240] sm:$0xff]  ;;  %v326_v56 = vld [vmem:[#allocation6 + $0x3d0] sm:$0xff] }
  0x34   :  { %134 = vmatpush1.msra.mxu0 %v95_v14  ;;  %341 = vmatpush1.msra.mxu1 %v292_v31  ;;  %v269_v41 = vld [vmem:[#allocation6 + $0x208] sm:$0xff]  ;;  %v81_v43 = vld [vmem:[%s5838_s1 + $0x20] sm:$0xff]  ;;  %v319_v57 = vld [vmem:[#allocation6 + $0x398] sm:$0xff]  ;;  %v833_v31 = vsub.s32 3, %v4884_v25 }
  0x35   :  { %135 = vmatprep.subr.mxu0 %v94_v16  ;;  %342 = vmatprep.subr.mxu1 %v285_v33  ;;  %v82_v42 = vld [vmem:[%s5838_s1 + $0x28] sm:$0xff]  ;;  %v268_v44 = vld [vmem:[#allocation6 + $0x200] sm:$0xff]  ;;  %v318_v59 = vld [vmem:[#allocation6 + $0x390] sm:$0xff] }
  0x36   :  { %136 = vmatpush1.msra.mxu0 %v93_v19  ;;  %343 = vmatpush1.msra.mxu1 %v284_v35  ;;  %v261_v47 = vld [vmem:[#allocation6 + $0x1c8] sm:$0xff]  ;;  %v260_v49 = vld [vmem:[#allocation6 + $0x1c0] sm:$0xff]  ;;  %v311_v62 = vld [vmem:[#allocation6 + $0x358] sm:$0xff] }
  0x37   :  { %137 = vmatprep.subr.mxu0 %v92_v21  ;;  %344 = vmatprep.subr.mxu1 %v277_v37  ;;  %v78_v48 = vld [vmem:[%s5838_s1 + $0x8] sm:$0xff]  ;;  %v77_v51 = vld [vmem:[%s5838_s1] sm:$0xff]  ;;  %v310_v63 = vld [vmem:[#allocation6 + $0x350] sm:$0xff] }
  0x38   :  { %138 = vmatpush1.msra.mxu0 %v91_v24  ;;  %345 = vmatpush1.msra.mxu1 %v276_v39  ;;  %v253_v50 = vld [vmem:[#allocation6 + $0x188] sm:$0xff]  ;;  %v252_v52 = vld [vmem:[#allocation6 + $0x180] sm:$0xff]  ;;  %v303_v2 = vld [vmem:[#allocation6 + $0x318] sm:$0xff] }
  0x39   :  { %139 = vmatprep.subr.mxu0 %v90_v26  ;;  %346 = vmatprep.subr.mxu1 %v269_v41  ;;  %v245_v53 = vld [vmem:[#allocation6 + $0x148] sm:$0xff]  ;;  %v75_v54 = vld [vmem:[%s5837_s0] sm:$0xff]  ;;  %v302_v3 = vld [vmem:[#allocation6 + $0x310] sm:$0xff] }
  0x3a   :  { %140 = vmatpush1.msra.mxu0 %v89_v28  ;;  %347 = vmatpush1.msra.mxu1 %v268_v44  ;;  %v244_v58 = vld [vmem:[#allocation6 + $0x140] sm:$0xff]  ;;  %v237_v60 = vld [vmem:[#allocation6 + $0x108] sm:$0xff]  ;;  %v295_v4 = vld [vmem:[#allocation6 + $0x2d8] sm:$0xff] }
  0x3b   :  { %141 = vmatprep.subr.mxu0 %v88_v30  ;;  %348 = vmatprep.subr.mxu1 %v261_v47  ;;  %v76_v61 = vld [vmem:[%s5837_s0 + $0x8] sm:$0xff]  ;;  %v236_v1 = vld [vmem:[#allocation6 + $0x100] sm:$0xff]  ;;  %v294_v5 = vld [vmem:[#allocation6 + $0x2d0] sm:$0xff]  ;;  %v829_v30 = vsub.s32 2, %v4884_v25 }
  0x3c   :  { %142 = vmatpush1.msra.mxu0 %v87_v32  ;;  %349 = vmatpush1.msra.mxu1 %v260_v49  ;;  %v287_v6 = vld [vmem:[#allocation6 + $0x298] sm:$0xff]  ;;  %v286_v7 = vld [vmem:[#allocation6 + $0x290] sm:$0xff]  ;;  %v229_v21 = vld [vmem:[#allocation6 + $0xc8] sm:$0xff] }
  0x3d   :  { %143 = vmatprep.subr.mxu0 %v86_v34  ;;  %350 = vmatprep.subr.mxu1 %v253_v50  ;;  %v279_v8 = vld [vmem:[#allocation6 + $0x258] sm:$0xff]  ;;  %v278_v9 = vld [vmem:[#allocation6 + $0x250] sm:$0xff]  ;;  %v228_v23 = vld [vmem:[#allocation6 + $0xc0] sm:$0xff] }
  0x3e   :  { %144 = vmatpush1.msra.mxu0 %v85_v36  ;;  %351 = vmatpush1.msra.mxu1 %v252_v52  ;;  %v271_v10 = vld [vmem:[#allocation6 + $0x218] sm:$0xff]  ;;  %v270_v11 = vld [vmem:[#allocation6 + $0x210] sm:$0xff]  ;;  %v221_v26 = vld [vmem:[#allocation6 + $0x88] sm:$0xff] }
  0x3f   :  { %145 = vmatprep.subr.mxu0 %v84_v38  ;;  %352 = vmatprep.subr.mxu1 %v245_v53  ;;  %v263_v12 = vld [vmem:[#allocation6 + $0x1d8] sm:$0xff]  ;;  %v262_v13 = vld [vmem:[#allocation6 + $0x1d0] sm:$0xff]  ;;  %v220_v28 = vld [vmem:[#allocation6 + $0x80] sm:$0xff] }
  0x40   :  { %146 = vmatpush1.msra.mxu0 %v83_v40  ;;  %353 = vmatpush1.msra.mxu1 %v244_v58  ;;  %v255_v14 = vld [vmem:[#allocation6 + $0x198] sm:$0xff]  ;;  %v254_v15 = vld [vmem:[#allocation6 + $0x190] sm:$0xff]  ;;  %v4329_v32 = vld [vmem:[%s5843_s6 + $0x1] ss:$2 sm:$0xf] }
  0x41   :  { %147 = vmatprep.subr.mxu0 %v82_v42  ;;  %354 = vmatprep.subr.mxu1 %v237_v60  ;;  %v247_v16 = vld [vmem:[#allocation6 + $0x158] sm:$0xff]  ;;  %v246_v17 = vld [vmem:[#allocation6 + $0x150] sm:$0xff]  ;;  %v213_v33 = vld [vmem:[#allocation6 + $0x48] sm:$0xff]  ;;  %v4893_v35 = vrot.slane %v4329_v32, %v829_v30  ;;  %v4897_v39 = vrot.slane %v4329_v32, %v833_v31 }
  0x42   :  { %148 = vmatpush1.msra.mxu0 %v81_v43  ;;  %355 = vmatpush1.msra.mxu1 %v236_v1  ;;  %v239_v18 = vld [vmem:[#allocation6 + $0x118] sm:$0xff]  ;;  %v238_v19 = vld [vmem:[#allocation6 + $0x110] sm:$0xff]  ;;  %v212_v36 = vld [vmem:[#allocation6 + $0x40] sm:$0xff] }
  0x43   :  { %149 = vmatprep.subr.mxu0 %v80_v45  ;;  %v231_v22 = vld [vmem:[#allocation6 + $0xd8] sm:$0xff]  ;;  %356 = vmatprep.subr.mxu1 %v229_v21  ;;  %v230_v24 = vld [vmem:[#allocation6 + $0xd0] sm:$0xff]  ;;  %5869 = vst [vmem:[#allocation13_spill] sm:$0xff] %v4893_v35  ;;  %v205_v38 = vld [vmem:[#allocation6 + $0x8] sm:$0xff] }
  0x44   :  { %150 = vmatpush1.msra.mxu0 %v79_v46  ;;  %357 = vmatpush1.msra.mxu1 %v228_v23  ;;  %v223_v27 = vld [vmem:[#allocation6 + $0x98] sm:$0xff]  ;;  %v222_v29 = vld [vmem:[#allocation6 + $0x90] sm:$0xff]  ;;  %5870 = vst [vmem:[#allocation14_spill] sm:$0xff] %v4897_v39  ;;  %v204_v41 = vld [vmem:[#allocation6] sm:$0xff]  ;;  %v4902_v46 = vsub.s32 0, %v4884_v25 }
  0x45   :  { %151 = vmatprep.subr.mxu0 %v78_v48  ;;  %358 = vmatprep.subr.mxu1 %v221_v26  ;;  %v215_v34 = vld [vmem:[#allocation6 + $0x58] sm:$0xff]  ;;  %v214_v37 = vld [vmem:[#allocation6 + $0x50] sm:$0xff]  ;;  %v329_v43 = vld [vmem:[#allocation6 + $0x3e8] sm:$0xff]  ;;  %v4908_v48 = vsub.s32 1, %v4884_v25 }
  0x46   :  { %152 = vmatpush1.msra.mxu0 %v77_v51  ;;  %359 = vmatpush1.msra.mxu1 %v220_v28  ;;  %v207_v40 = vld [vmem:[#allocation6 + $0x18] sm:$0xff]  ;;  %v206_v42 = vld [vmem:[#allocation6 + $0x10] sm:$0xff]  ;;  %5871 = vst [vmem:[#allocation15_spill] sm:$0xff] %v4902_v46  ;;  %v109_v47 = vld [vmem:[%s5839_s2] sm:$0x3] }
  0x47   :  { %186 = vmatmul.mubr.f32.vlgmr.msra.gmra.mxu0 %v75_v54  ;;  %409 = vmatprep.subr.mxu0 %v327_v55  ;;  %v331_v44 = vld [vmem:[#allocation6 + $0x3f8] sm:$0xff]  ;;  %5872 = vst [vmem:[#allocation16_spill] sm:$0xff] %v4908_v48  ;;  %v4911_v49 = vrot.slane %v109_v47, %v4902_v46  ;;  %v4914_v50 = vrot.slane %v109_v47, %v4908_v48  ;;  %v328_v58 = vld [vmem:[#allocation6 + $0x3e0] sm:$0xff]  ;;  %v321_v60 = vld [vmem:[#allocation6 + $0x3a8] sm:$0xff] }
  0x48   :  { %191 = vmatprep.mubr.f32.mxu0 %v4716_v0  ;;  %410 = vmatpush1.msra.mxu0 %v326_v56  ;;  %v313_v1 = vld [vmem:[#allocation6 + $0x368] sm:$0xff]  ;;  %v280_v20 = vld [vmem:[#allocation6 + $0x260] sm:$0xff]  ;;  %v282_v21 = vld [vmem:[#allocation6 + $0x270] sm:$0xff] }
  0x49   :  { %411 = vmatprep.subr.mxu0 %v319_v57  ;;  %360 = vmatprep.subr.mxu1 %v213_v33  ;;  %v275_v23 = vld [vmem:[#allocation6 + $0x238] sm:$0xff]  ;;  %v272_v26 = vld [vmem:[#allocation6 + $0x220] sm:$0xff]  ;;  %v265_v28 = vld [vmem:[#allocation6 + $0x1e8] sm:$0xff] }
  0x4a   :  { %412 = vmatpush1.msra.mxu0 %v318_v59  ;;  %361 = vmatpush1.msra.mxu1 %v212_v36  ;;  %v330_v59 = vld [vmem:[#allocation6 + $0x3f0] sm:$0xff]  ;;  %v264_v33 = vld [vmem:[#allocation6 + $0x1e0] sm:$0xff] }
  0x4b   :  { %192 = vmatmul.mubr.f32.gmra.mxu0 %v76_v61  ;;  %413 = vmatprep.subr.mxu0 %v311_v62  ;;  %v323_v61 = vld [vmem:[#allocation6 + $0x3b8] sm:$0xff]  ;;  %v320_v62 = vld [vmem:[#allocation6 + $0x3a0] sm:$0xff] }
  0x4c   :  { %414 = vmatpush1.msra.mxu0 %v310_v63  ;;  %473 = vmatprep.mubr.f32.mxu0 %v4716_v0  ;;  %v322_v63 = vld [vmem:[#allocation6 + $0x3b0] sm:$0xff] }
  0x4d   :  { %415 = vmatprep.subr.mxu0 %v303_v2  ;;  %362 = vmatprep.subr.mxu1 %v205_v38  ;;  %v315_v2 = vld [vmem:[#allocation6 + $0x378] sm:$0xff] }
  0x4e   :  { %416 = vmatpush1.msra.mxu0 %v302_v3  ;;  %363 = vmatpush1.msra.mxu1 %v204_v41  ;;  %v312_v3 = vld [vmem:[#allocation6 + $0x360] sm:$0xff]  ;;  %v259_v38 = vld [vmem:[#allocation6 + $0x1b8] sm:$0xff]  ;;  %v258_v41 = vld [vmem:[#allocation6 + $0x1b0] sm:$0xff] }
  0x4f   :  { %417 = vmatprep.subr.mxu0 %v295_v4  ;;  %486 = vmatprep.subr.mxu1 %v329_v43  ;;  %v314_v4 = vld [vmem:[#allocation6 + $0x370] sm:$0xff]  ;;  %v251_v43 = vld [vmem:[#allocation6 + $0x178] sm:$0xff] }
  0x50   :  { %418 = vmatpush1.msra.mxu0 %v294_v5  ;;  %v305_v5 = vld [vmem:[#allocation6 + $0x328] sm:$0xff] }
  0x51   :  { %419 = vmatprep.subr.mxu0 %v287_v6  ;;  %v307_v6 = vld [vmem:[#allocation6 + $0x338] sm:$0xff] }
  0x52   :  { %420 = vmatpush1.msra.mxu0 %v286_v7  ;;  %v304_v7 = vld [vmem:[#allocation6 + $0x320] sm:$0xff] }
  0x53   :  { %421 = vmatprep.subr.mxu0 %v279_v8  ;;  %v306_v8 = vld [vmem:[#allocation6 + $0x330] sm:$0xff] }
  0x54   :  { %422 = vmatpush1.msra.mxu0 %v278_v9  ;;  %v297_v9 = vld [vmem:[#allocation6 + $0x2e8] sm:$0xff] }
  0x55   :  { %423 = vmatprep.subr.mxu0 %v271_v10  ;;  %v299_v10 = vld [vmem:[#allocation6 + $0x2f8] sm:$0xff] }
  0x56   :  { %424 = vmatpush1.msra.mxu0 %v270_v11  ;;  %v296_v11 = vld [vmem:[#allocation6 + $0x2e0] sm:$0xff] }
  0x57   :  { %425 = vmatprep.subr.mxu0 %v263_v12  ;;  %v298_v12 = vld [vmem:[#allocation6 + $0x2f0] sm:$0xff] }
  0x58   :  { %426 = vmatpush1.msra.mxu0 %v262_v13  ;;  %v289_v13 = vld [vmem:[#allocation6 + $0x2a8] sm:$0xff] }
  0x59   :  { %427 = vmatprep.subr.mxu0 %v255_v14  ;;  %v291_v14 = vld [vmem:[#allocation6 + $0x2b8] sm:$0xff] }
  0x5a   :  { %428 = vmatpush1.msra.mxu0 %v254_v15 }
  0x5b   :  { %429 = vmatprep.subr.mxu0 %v247_v16  ;;  %v288_v16 = vld [vmem:[#allocation6 + $0x2a0] sm:$0xff] }
  0x5c   :  { %430 = vmatpush1.msra.mxu0 %v246_v17  ;;  %v290_v17 = vld [vmem:[#allocation6 + $0x2b0] sm:$0xff] }
  0x5d   :  { %431 = vmatprep.subr.mxu0 %v239_v18  ;;  %v281_v18 = vld [vmem:[#allocation6 + $0x268] sm:$0xff] }
  0x5e   :  { %432 = vmatpush1.msra.mxu0 %v238_v19  ;;  %v283_v19 = vld [vmem:[#allocation6 + $0x278] sm:$0xff] }
  0x5f   :  { %433 = vmatprep.subr.mxu0 %v231_v22  ;;  %v273_v22 = vld [vmem:[#allocation6 + $0x228] sm:$0xff] }
  0x60   :  { %434 = vmatpush1.msra.mxu0 %v230_v24 }
  0x61   :  { %435 = vmatprep.subr.mxu0 %v223_v27  ;;  %v274_v27 = vld [vmem:[#allocation6 + $0x230] sm:$0xff] }
  0x62   :  { %436 = vmatpush1.msra.mxu0 %v222_v29  ;;  %v267_v29 = vld [vmem:[#allocation6 + $0x1f8] sm:$0xff] }
  0x63   :  { %437 = vmatprep.subr.mxu0 %v215_v34  ;;  %v266_v34 = vld [vmem:[#allocation6 + $0x1f0] sm:$0xff] }
  0x64   :  { %438 = vmatpush1.msra.mxu0 %v214_v37  ;;  %v257_v37 = vld [vmem:[#allocation6 + $0x1a8] sm:$0xff] }
  0x65   :  { %439 = vmatprep.subr.mxu0 %v207_v40  ;;  %v256_v40 = vld [vmem:[#allocation6 + $0x1a0] sm:$0xff] }
  0x66   :  { %440 = vmatpush1.msra.mxu0 %v206_v42  ;;  %v249_v42 = vld [vmem:[#allocation6 + $0x168] sm:$0xff] }
  0x67   :  { %563 = vmatprep.subr.mxu0 %v331_v44 }
 0x107   :  { %v187_v51 = vpop.f32.mrf.mxu0 }
 0x108   :  { %v188_v52 = vadd.f32 %v187_v51, %v4911_v49  ;;  %v250_v51 = vld [vmem:[#allocation6 + $0x170] sm:$0xff] }
 0x109   :  { %v189_v53 = vpop.f32.mrf.mxu0 }
 0x10a   :  { %v190_v54 = vadd.f32 %v189_v53, %v4914_v50  ;;  %v198_v55 = vmax.f32 %v188_v52, 0.0  ;;  %v243_v52 = vld [vmem:[#allocation6 + $0x138] sm:$0xff]  ;;  %v240_v53 = vld [vmem:[#allocation6 + $0x120] sm:$0xff] }
 0x10b   :  { %v193_v15 = vpop.f32.mrf.mxu0 }
 0x10c   :  { %v199_v56 = vmax.f32 %v190_v54, 0.0  ;;  %v194_v32 = vadd.f32 %v193_v15, %v4911_v49  ;;  %v248_v49 = vld [vmem:[#allocation6 + $0x160] sm:$0xff]  ;;  %v242_v54 = vld [vmem:[#allocation6 + $0x130] sm:$0xff]  ;;  %v4942_v15 = vld [vmem:[#allocation10 + $0xcc] ss:$16 sps:$4 sm:$0xff]  }
 0x10d   :  { %v195_v24 = vpop.f32.mrf.mxu0 }
 0x10e   :  { %v4918_v57 = vmax.f32 %v198_v55, %v199_v56  ;;  %v196_v36 = vadd.f32 %v195_v24, %v4914_v50  ;;  %v200_v44 = vmax.f32 %v194_v32, 0.0  ;;  %v241_v50 = vld [vmem:[#allocation6 + $0x128] sm:$0xff]  ;;  %v4992_v32 = vld [vmem:[#allocation10 + $0x44] ss:$16 sps:$4 sm:$0xff]  }
 0x10f   :  { %v233_v56 = vld [vmem:[#allocation6 + $0xe8] sm:$0xff] }
 0x110   :  { %397 = vmatmul.mubr.f32.vlgmr.msra.gmra.mxu1 %v4918_v57  ;;  %474 = vmatmul.mubr.f32.vlgmr.msra.gmra.mxu0 %v4918_v57  ;;  %v201_v47 = vmax.f32 %v196_v36, 0.0  ;;  %v4976_v24 = vld [vmem:[#allocation10 + $0x88] ss:$16 sps:$4 sm:$0xff]  }
 0x111   :  { %487 = vmatpush1.msra.mxu1 %v328_v58  ;;  %564 = vmatpush1.msra.mxu0 %v330_v59  ;;  %v235_v58 = vld [vmem:[#allocation6 + $0xf8] sm:$0xff]  ;;  %v232_v59 = vld [vmem:[#allocation6 + $0xe0] sm:$0xff] }
 0x112   :  { %488 = vmatprep.subr.mxu1 %v321_v60  ;;  %565 = vmatprep.subr.mxu0 %v323_v61  ;;  %v203_v55 = vmax.f32 %v200_v44, %v201_v47  ;;  %v234_v60 = vld [vmem:[#allocation6 + $0xf0] sm:$0xff]  ;;  %v225_v61 = vld [vmem:[#allocation6 + $0xa8] sm:$0xff] }
 0x113   :  { %489 = vmatpush1.msra.mxu1 %v320_v62  ;;  %566 = vmatpush1.msra.mxu0 %v322_v63  ;;  %v227_v62 = vld [vmem:[#allocation6 + $0xb8] sm:$0xff]  ;;  %v224_v63 = vld [vmem:[#allocation6 + $0xa0] sm:$0xff] }
 0x114   :  { %490 = vmatprep.subr.mxu1 %v313_v1  ;;  %567 = vmatprep.subr.mxu0 %v315_v2  ;;  %v226_v1 = vld [vmem:[#allocation6 + $0xb0] sm:$0xff]  ;;  %v217_v2 = vld [vmem:[#allocation6 + $0x68] sm:$0xff] }
 0x115   :  { %491 = vmatpush1.msra.mxu1 %v312_v3  ;;  %568 = vmatpush1.msra.mxu0 %v314_v4  ;;  %v219_v3 = vld [vmem:[#allocation6 + $0x78] sm:$0xff]  ;;  %v216_v4 = vld [vmem:[#allocation6 + $0x60] sm:$0xff] }
 0x116   :  { %492 = vmatprep.subr.mxu1 %v305_v5  ;;  %569 = vmatprep.subr.mxu0 %v307_v6  ;;  %v218_v5 = vld [vmem:[#allocation6 + $0x70] sm:$0xff]  ;;  %v209_v6 = vld [vmem:[#allocation6 + $0x28] sm:$0xff] }
 0x117   :  { %493 = vmatpush1.msra.mxu1 %v304_v7  ;;  %570 = vmatpush1.msra.mxu0 %v306_v8  ;;  %v211_v7 = vld [vmem:[#allocation6 + $0x38] sm:$0xff]  ;;  %v208_v8 = vld [vmem:[#allocation6 + $0x20] sm:$0xff] }
 0x118   :  { %494 = vmatprep.subr.mxu1 %v297_v9  ;;  %571 = vmatprep.subr.mxu0 %v299_v10  ;;  %v210_v9 = vld [vmem:[#allocation6 + $0x30] sm:$0xff]  ;;  %v5000_v36 = vld [vmem:[#allocation10 + $0x48] ss:$16 sps:$4 sm:$0xff]  }
 0x119   :  { %495 = vmatpush1.msra.mxu1 %v296_v11  ;;  %572 = vmatpush1.msra.mxu0 %v298_v12  ;;  %v4926_v10 = vld [vmem:[#allocation10 + $0xe4] ss:$16 sps:$4 sm:$0xff]   ;;  %v4928_v11 = vld [vmem:[#allocation10 + $0xec] ss:$16 sps:$4 sm:$0xff]   ;;  %v4931_v12 = vld [vmem:[#allocation10 + $0xe0] ss:$16 sps:$4 sm:$0xff]  }
 0x11a   :  { %496 = vmatprep.subr.mxu1 %v289_v13  ;;  %573 = vmatprep.subr.mxu0 %v291_v14  ;;  %5873 = vst [vmem:[#allocation17_spill] sm:$0xff] %v4926_v10  ;;  %5874 = vst [vmem:[#allocation18_spill] sm:$0xff] %v4928_v11  ;;  %v4933_v13 = vld [vmem:[#allocation10 + $0xe8] ss:$16 sps:$4 sm:$0xff]   ;;  %v4940_v14 = vld [vmem:[#allocation10 + $0xc4] ss:$16 sps:$4 sm:$0xff]  }
 0x11b   :  { %497 = vmatpush1.msra.mxu1 %v288_v16  ;;  %574 = vmatpush1.msra.mxu0 %v290_v17  ;;  %v4946_v16 = vld [vmem:[#allocation10 + $0xc0] ss:$16 sps:$4 sm:$0xff]   ;;  %v4948_v17 = vld [vmem:[#allocation10 + $0xc8] ss:$16 sps:$4 sm:$0xff]  }
 0x11c   :  { %498 = vmatprep.subr.mxu1 %v281_v18  ;;  %575 = vmatprep.subr.mxu0 %v283_v19  ;;  %v4954_v18 = vld [vmem:[#allocation10 + $0xac] ss:$16 sps:$4 sm:$0xff]   ;;  %v4960_v19 = vld [vmem:[#allocation10 + $0xa0] ss:$16 sps:$4 sm:$0xff]   ;;  %v5024_v47 = vld [vmem:[#allocation10 + $0x8] ss:$16 sps:$4 sm:$0xff]  }
 0x11d   :  { %499 = vmatpush1.msra.mxu1 %v280_v20  ;;  %576 = vmatpush1.msra.mxu0 %v282_v21  ;;  %v4962_v20 = vld [vmem:[#allocation10 + $0xa8] ss:$16 sps:$4 sm:$0xff]   ;;  %v4968_v21 = vld [vmem:[#allocation10 + $0x8c] ss:$16 sps:$4 sm:$0xff]   ;;  %v5022_v44 = vld [vmem:[#allocation10] ss:$16 sps:$4 sm:$0xff]  }
 0x11e   :  { %500 = vmatprep.subr.mxu1 %v273_v22  ;;  %577 = vmatprep.subr.mxu0 %v275_v23  ;;  %v5847_v22 = vmov 0   ;;  %v4974_v23 = vld [vmem:[#allocation10 + $0x80] ss:$16 sps:$4 sm:$0xff]   ;;  %5875 = vst [vmem:[#allocation19_spill] sm:$0xff] %v5024_v47 }
 0x11f   :  { %501 = vmatpush1.msra.mxu1 %v272_v26  ;;  %578 = vmatpush1.msra.mxu0 %v274_v27  ;;  %v4980_v26 = vld [vmem:[#allocation10 + $0x64] ss:$16 sps:$4 sm:$0xff]   ;;  %v4982_v27 = vld [vmem:[#allocation10 + $0x6c] ss:$16 sps:$4 sm:$0xff]  }
 0x120   :  { %502 = vmatprep.subr.mxu1 %v265_v28  ;;  %579 = vmatprep.subr.mxu0 %v267_v29  ;;  %v4986_v28 = vld [vmem:[#allocation10 + $0x60] ss:$16 sps:$4 sm:$0xff]   ;;  %v4988_v29 = vld [vmem:[#allocation10 + $0x68] ss:$16 sps:$4 sm:$0xff]  }
 0x121   :  { %503 = vmatpush1.msra.mxu1 %v264_v33  ;;  %580 = vmatpush1.msra.mxu0 %v266_v34  ;;  %v4994_v33 = vld [vmem:[#allocation10 + $0x4c] ss:$16 sps:$4 sm:$0xff]   ;;  %v4998_v34 = vld [vmem:[#allocation10 + $0x40] ss:$16 sps:$4 sm:$0xff]  }
 0x122   :  { %504 = vmatprep.subr.mxu1 %v257_v37  ;;  %581 = vmatprep.subr.mxu0 %v259_v38  ;;  %v5004_v37 = vld [vmem:[#allocation10 + $0x24] ss:$16 sps:$4 sm:$0xff]   ;;  %v5006_v38 = vld [vmem:[#allocation10 + $0x2c] ss:$16 sps:$4 sm:$0xff]  }
 0x123   :  { %505 = vmatpush1.msra.mxu1 %v256_v40  ;;  %582 = vmatpush1.msra.mxu0 %v258_v41  ;;  %v5010_v40 = vld [vmem:[#allocation10 + $0x20] ss:$16 sps:$4 sm:$0xff]   ;;  %v5012_v41 = vld [vmem:[#allocation10 + $0x28] ss:$16 sps:$4 sm:$0xff]  }
 0x124   :  { %506 = vmatprep.subr.mxu1 %v249_v42  ;;  %583 = vmatprep.subr.mxu0 %v251_v43  ;;  %v5016_v42 = vld [vmem:[#allocation10 + $0x4] ss:$16 sps:$4 sm:$0xff]   ;;  %v5018_v43 = vld [vmem:[#allocation10 + $0xc] ss:$16 sps:$4 sm:$0xff]  }
 0x125   :  { %507 = vmatpush1.msra.mxu1 %v248_v49  ;;  %584 = vmatpush1.msra.mxu0 %v250_v51  ;;  %v4718_v49 = vmov 1983009808  }
 0x126   :  { %508 = vmatprep.subr.mxu1 %v241_v50  ;;  %585 = vmatprep.subr.mxu0 %v243_v52  ;;  %v662_v51 = vunpack.c.l.s4 %v4718_v49 }
 0x127   :  { %509 = vmatpush1.msra.mxu1 %v240_v53  ;;  %586 = vmatpush1.msra.mxu0 %v242_v54 }
 0x128   :  { %402 = vmatprep.mubr.f32.mxu1 %v4716_v0  ;;  %479 = vmatprep.mubr.f32.mxu0 %v4716_v0  ;;  %v663_v50 = vunpack.c.0.s8 %v662_v51 }
 0x129   :  { %510 = vmatprep.subr.mxu1 %v233_v56  ;;  %587 = vmatprep.subr.mxu0 %v235_v58 }
 0x12a   :  { %403 = vmatmul.mubr.f32.gmra.mxu1 %v203_v55  ;;  %480 = vmatmul.mubr.f32.gmra.mxu0 %v203_v55  ;;  %v5069_v54 = vsub.s32 %v663_v50, %v4884_v25 }
 0x12b   :  { %511 = vmatpush1.msra.mxu1 %v232_v59  ;;  %588 = vmatpush1.msra.mxu0 %v234_v60 }
 0x12c   :  { %512 = vmatprep.subr.mxu1 %v225_v61  ;;  %589 = vmatprep.subr.mxu0 %v227_v62 }
 0x12d   :  { %513 = vmatpush1.msra.mxu1 %v224_v63  ;;  %590 = vmatpush1.msra.mxu0 %v226_v1 }
 0x12e   :  { %514 = vmatprep.subr.mxu1 %v217_v2  ;;  %591 = vmatprep.subr.mxu0 %v219_v3 }
 0x12f   :  { %515 = vmatpush1.msra.mxu1 %v216_v4  ;;  %592 = vmatpush1.msra.mxu0 %v218_v5 }
 0x130   :  { %516 = vmatprep.subr.mxu1 %v209_v6  ;;  %593 = vmatprep.subr.mxu0 %v211_v7  ;;  %v640_v6 = vld [vmem:[%s5843_s6] ss:$2 sm:$0xf] }
 0x131   :  { %517 = vmatpush1.msra.mxu1 %v208_v8  ;;  %550 = vmatprep.mubr.f32.mxu1 %v4716_v0  ;;  %v830_v49 = vrot.slane %v640_v6, %v829_v30  ;;  %v834_v51 = vrot.slane %v640_v6, %v833_v31  ;;  %v826_v50 = vrot.slane %v640_v6, %v4908_v48 }
 0x132   :  { %594 = vmatpush1.msra.mxu0 %v210_v9  ;;  %627 = vmatprep.mubr.f32.mxu0 %v4716_v0  ;;  %v822_v9 = vrot.slane %v640_v6, %v4902_v46 }
 0x133   :  { %551 = vmatmul.mubr.f32.vlgmr.msra.gmra.mxu1 %v4918_v57  ;;  %628 = vmatmul.mubr.f32.vlgmr.msra.gmra.mxu0 %v4918_v57  ;;  %v4952_v57 = vld [vmem:[#allocation10 + $0xa4] ss:$16 sps:$4 sm:$0xff]   ;;  %v836_v5 = vcombine.low %v830_v49, %v834_v51 }
 0x134   :  { %1076 = vmatprep.subr.bf16.mxu1 %v4926_v10  ;;  %1117 = vmatprep.subr.bf16.mxu0 %v4928_v11  ;;  %v835_v30 = vcombine.low %v822_v9, %v826_v50 }
 0x135   :  { %1077 = vmatpush1.bf16.msra.mxu1 %v4931_v12  ;;  %1118 = vmatpush1.bf16.msra.mxu0 %v4933_v13 }
 0x136   :  { %556 = vmatprep.mubr.f32.mxu1 %v4716_v0  ;;  %633 = vmatprep.mubr.f32.mxu0 %v4716_v0  ;;  %v4966_v0 = vld [vmem:[#allocation10 + $0x84] ss:$16 sps:$4 sm:$0xff]  }
 0x137   :  { %557 = vmatmul.mubr.f32.gmra.mxu1 %v203_v55  ;;  %634 = vmatmul.mubr.f32.gmra.mxu0 %v203_v55 }
 0x138   :  { %1078 = vmatprep.subr.bf16.mxu1 %v4940_v14  ;;  %1119 = vmatprep.subr.bf16.mxu0 %v4942_v15 }
 0x139   :  { %1079 = vmatpush1.bf16.msra.mxu1 %v4946_v16  ;;  %1120 = vmatpush1.bf16.msra.mxu0 %v4948_v17 }
 0x13a   :  { %1080 = vmatprep.subr.bf16.mxu1 %v4952_v57  ;;  %1121 = vmatprep.subr.bf16.mxu0 %v4954_v18 }
 0x13b   :  { %1108 = vmatprep.mubr.bf16.mxu1 %v5847_v22  ;;  %1149 = vmatprep.mubr.bf16.mxu0 %v5847_v22 }
 0x13d   :  { %1081 = vmatpush1.bf16.msra.mxu1 %v4960_v19  ;;  %1122 = vmatpush1.bf16.msra.mxu0 %v4962_v20 }
 0x13e   :  { %1082 = vmatprep.subr.bf16.mxu1 %v4966_v0  ;;  %1123 = vmatprep.subr.bf16.mxu0 %v4968_v21 }
 0x141   :  { %1083 = vmatpush1.bf16.msra.mxu1 %v4974_v23  ;;  %1124 = vmatpush1.bf16.msra.mxu0 %v4976_v24 }
 0x142   :  { %1084 = vmatprep.subr.bf16.mxu1 %v4980_v26  ;;  %1125 = vmatprep.subr.bf16.mxu0 %v4982_v27 }
 0x145   :  { %1085 = vmatpush1.bf16.msra.mxu1 %v4986_v28  ;;  %1126 = vmatpush1.bf16.msra.mxu0 %v4988_v29 }
 0x146   :  { %1086 = vmatprep.subr.bf16.mxu1 %v4992_v32  ;;  %1127 = vmatprep.subr.bf16.mxu0 %v4994_v33 }
 0x149   :  { %1087 = vmatpush1.bf16.msra.mxu1 %v4998_v34  ;;  %1128 = vmatpush1.bf16.msra.mxu0 %v5000_v36 }
 0x14a   :  { %1088 = vmatprep.subr.bf16.mxu1 %v5004_v37  ;;  %1129 = vmatprep.subr.bf16.mxu0 %v5006_v38 }
 0x14d   :  { %1089 = vmatpush1.bf16.msra.mxu1 %v5010_v40  ;;  %1130 = vmatpush1.bf16.msra.mxu0 %v5012_v41 }
 0x14e   :  { %1090 = vmatprep.subr.bf16.mxu1 %v5016_v42  ;;  %1131 = vmatprep.subr.bf16.mxu0 %v5018_v43 }
 0x151   :  { %1091 = vmatpush1.bf16.msra.mxu1 %v5022_v44  ;;  %1132 = vmatpush1.bf16.msra.mxu0 %v5024_v47 }
 0x152   :  { %1206 = vmatprep.subr.bf16.mxu1 %v4926_v10  ;;  %1247 = vmatprep.subr.bf16.mxu0 %v4928_v11 }
 0x154   :  { %1109 = vmatmul.mubr.bf16.vlgmr.msra.gmra.mxu1 %v5847_v22  ;;  %1150 = vmatmul.mubr.bf16.vlgmr.msra.gmra.mxu0 %v5847_v22 }
 0x155   :  { %1207 = vmatpush1.bf16.msra.mxu1 %v4931_v12  ;;  %1248 = vmatpush1.bf16.msra.mxu0 %v4933_v13 }
 0x156   :  { %1208 = vmatprep.subr.bf16.mxu1 %v4940_v14  ;;  %1249 = vmatprep.subr.bf16.mxu0 %v4942_v15 }
 0x157   :  { %1238 = vmatprep.mubr.bf16.mxu1 %v5847_v22  ;;  %1279 = vmatprep.mubr.bf16.mxu0 %v5847_v22 }
 0x159   :  { %1209 = vmatpush1.bf16.msra.mxu1 %v4946_v16  ;;  %1250 = vmatpush1.bf16.msra.mxu0 %v4948_v17 }
 0x15a   :  { %1210 = vmatprep.subr.bf16.mxu1 %v4952_v57  ;;  %1251 = vmatprep.subr.bf16.mxu0 %v4954_v18 }
 0x15d   :  { %1211 = vmatpush1.bf16.msra.mxu1 %v4960_v19  ;;  %1252 = vmatpush1.bf16.msra.mxu0 %v4962_v20 }
 0x15e   :  { %1212 = vmatprep.subr.bf16.mxu1 %v4966_v0  ;;  %1253 = vmatprep.subr.bf16.mxu0 %v4968_v21 }
 0x161   :  { %1213 = vmatpush1.bf16.msra.mxu1 %v4974_v23  ;;  %1254 = vmatpush1.bf16.msra.mxu0 %v4976_v24 }
 0x162   :  { %1214 = vmatprep.subr.bf16.mxu1 %v4980_v26  ;;  %1255 = vmatprep.subr.bf16.mxu0 %v4982_v27 }
 0x165   :  { %1215 = vmatpush1.bf16.msra.mxu1 %v4986_v28  ;;  %1256 = vmatpush1.bf16.msra.mxu0 %v4988_v29 }
 0x166   :  { %1216 = vmatprep.subr.bf16.mxu1 %v4992_v32  ;;  %1257 = vmatprep.subr.bf16.mxu0 %v4994_v33 }
 0x169   :  { %1217 = vmatpush1.bf16.msra.mxu1 %v4998_v34  ;;  %1258 = vmatpush1.bf16.msra.mxu0 %v5000_v36 }
 0x16a   :  { %1218 = vmatprep.subr.bf16.mxu1 %v5004_v37  ;;  %1259 = vmatprep.subr.bf16.mxu0 %v5006_v38 }
 0x16d   :  { %1219 = vmatpush1.bf16.msra.mxu1 %v5010_v40  ;;  %1260 = vmatpush1.bf16.msra.mxu0 %v5012_v41 }
 0x16e   :  { %1220 = vmatprep.subr.bf16.mxu1 %v5016_v42  ;;  %1261 = vmatprep.subr.bf16.mxu0 %v5018_v43 }
 0x171   :  { %1221 = vmatpush1.bf16.msra.mxu1 %v5022_v44  ;;  %1262 = vmatpush1.bf16.msra.mxu0 %v5024_v47 }
 0x172   :  { %1337 = vmatprep.subr.bf16.mxu1 %v4926_v10  ;;  %1378 = vmatprep.subr.bf16.mxu0 %v4928_v11 }
 0x1d0   :  { %v398_v52 = vpop.f32.mrf.mxu1  ;;  %v475_v53 = vpop.f32.mrf.mxu0 }
 0x1d2   :  { %v400_v55 = vpop.f32.mrf.mxu1  ;;  %v477_v56 = vpop.f32.mrf.mxu0 }
 0x1d3   :  { %v657_v58 = vcombine.low %v398_v52, %v400_v55  ;;  %v658_v59 = vcombine.high %v398_v52, %v400_v55  ;;  %v659_v60 = vcombine.low %v475_v53, %v477_v56  ;;  %v660_v61 = vcombine.high %v475_v53, %v477_v56 }
 0x1d5   :  { %v5072_v62 = vrot.slane %v657_v58, %v5069_v54  ;;  %v5075_v63 = vrot.slane %v658_v59, %v5069_v54  ;;  %v5078_v1 = vrot.slane %v659_v60, %v5069_v54  ;;  %v5081_v2 = vrot.slane %v660_v61, %v5069_v54 }
 0x1ea   :  { %v404_v7 = vpop.f32.mrf.mxu1  ;;  %v481_v8 = vpop.f32.mrf.mxu0 }
 0x1ec   :  { %v406_v52 = vpop.f32.mrf.mxu1  ;;  %v483_v53 = vpop.f32.mrf.mxu0 }
 0x1ed   :  { %v729_v55 = vcombine.low %v404_v7, %v406_v52  ;;  %v730_v56 = vcombine.high %v404_v7, %v406_v52  ;;  %v731_v58 = vcombine.low %v481_v8, %v483_v53  ;;  %v732_v59 = vcombine.high %v481_v8, %v483_v53 }
 0x1ee   :  { %v843_v7 = vrot.slane %v835_v30, %v5069_v54  ;;  %v850_v8 = vrot.slane %v836_v5, %v5069_v54 }
 0x1ef   :  { %v739_v60 = vrot.slane %v729_v55, %v5069_v54  ;;  %v746_v61 = vrot.slane %v730_v56, %v5069_v54  ;;  %v753_v45 = vrot.slane %v731_v58, %v5069_v54  ;;  %v760_v22 = vrot.slane %v732_v59, %v5069_v54 }
 0x1f0   :  { %v851_v51 = vcombine.low %v843_v7, %v850_v8 }
 0x1f1   :  { %v761_v25 = vcombine.low %v739_v60, %v753_v45  ;;  %v762_v31 = vcombine.high %v739_v60, %v753_v45  ;;  %v763_v4 = vcombine.low %v746_v61, %v760_v22  ;;  %v764_v6 = vcombine.high %v746_v61, %v760_v22 }
 0x1f3   :  { %v552_v3 = vpop.f32.mrf.mxu1  ;;  %v629_v39 = vpop.f32.mrf.mxu0 }
 0x1f5   :  { %v554_v52 = vpop.f32.mrf.mxu1  ;;  %v631_v53 = vpop.f32.mrf.mxu0 }
 0x1f6   :  { %v693_v55 = vcombine.low %v552_v3, %v554_v52  ;;  %v694_v56 = vcombine.high %v552_v3, %v554_v52  ;;  %v695_v35 = vcombine.low %v629_v39, %v631_v53  ;;  %v696_v58 = vcombine.high %v629_v39, %v631_v53 }
 0x1f7   :  { %v558_v48 = vpop.f32.mrf.mxu1  ;;  %v635_v59 = vpop.f32.mrf.mxu0 }
 0x1f8   :  { %v703_v9 = vrot.slane %v693_v55, %v5069_v54  ;;  %v710_v45 = vrot.slane %v694_v56, %v5069_v54  ;;  %v717_v22 = vrot.slane %v695_v35, %v5069_v54  ;;  %v724_v49 = vrot.slane %v696_v58, %v5069_v54 }
 0x1f9   :  { %v560_v50 = vpop.f32.mrf.mxu1  ;;  %v637_v60 = vpop.f32.mrf.mxu0 }
 0x1fa   :  { %v725_v5 = vcombine.low %v703_v9, %v717_v22  ;;  %v726_v61 = vcombine.high %v703_v9, %v717_v22  ;;  %v727_v30 = vcombine.low %v710_v45, %v724_v49  ;;  %v728_v46 = vcombine.high %v710_v45, %v724_v49 }
 0x1fb   :  { %v765_v3 = vcombine.low %v558_v48, %v560_v50  ;;  %v766_v52 = vcombine.high %v558_v48, %v560_v50  ;;  %v767_v39 = vcombine.low %v635_v59, %v637_v60  ;;  %v768_v53 = vcombine.high %v635_v59, %v637_v60 }
 0x1fc   :  { %v867_v11 = vadd.f32 %v761_v25, %v728_v46  ;;  %v871_v10 = vadd.f32 %v762_v31, %v727_v30  ;;  %v875_v55 = vadd.f32 %v763_v4, %v726_v61  ;;  %v879_v47 = vadd.f32 %v764_v6, %v725_v5 }
 0x1fd   :  { %v775_v56 = vrot.slane %v765_v3, %v5069_v54  ;;  %v782_v35 = vrot.slane %v766_v52, %v5069_v54  ;;  %v789_v7 = vrot.slane %v767_v39, %v5069_v54  ;;  %v796_v8 = vrot.slane %v768_v53, %v5069_v54 }
 0x1fe   :  { %v5112_v58 = vadd.f32 %v867_v11, %v851_v51  ;;  %v5114_v9 = vadd.f32 %v871_v10, %v851_v51  ;;  %v5116_v45 = vadd.f32 %v875_v55, %v851_v51  ;;  %v5118_v48 = vadd.f32 %v879_v47, %v851_v51 }
 0x1ff   :  { %v797_v46 = vcombine.low %v775_v56, %v789_v7  ;;  %v798_v25 = vcombine.high %v775_v56, %v789_v7  ;;  %v799_v4 = vcombine.low %v782_v35, %v796_v8  ;;  %v5876_v31 = vcombine.high %v5072_v62, %v5078_v1 }
 0x200   :  { %v5877_v59 = vcombine.low %v5075_v63, %v5081_v2  ;;  %v5878_v11 = vcombine.high %v5075_v63, %v5081_v2  ;;  %v800_v60 = vcombine.high %v782_v35, %v796_v8  ;;  %v689_v30 = vcombine.low %v5072_v62, %v5078_v1 }
 0x201   :  { %v855_v6 = vadd.f32 %v799_v4, %v5876_v31 }
 0x202   :  { %v859_v22 = vadd.f32 %v798_v25, %v5877_v59  ;;  %v863_v10 = vadd.f32 %v797_v46, %v5878_v11  ;;  %v817_v39 = vadd.f32 %v800_v60, %v689_v30 }
 0x203   :  { %v5129_v49 = vadd.f32 %v855_v6, %v851_v51 }
 0x204   :  { %v5131_v50 = vadd.f32 %v859_v22, %v851_v51  ;;  %v5133_v47 = vadd.f32 %v863_v10, %v851_v51  ;;  %v853_v4 = vadd.f32 %v851_v51, %v817_v39  ;;  %v5879_v39 = vmov 0  }
 0x214   :  { %v1110_v5 = vpop.f32.mrf.mxu1  ;;  %v1151_v61 = vpop.f32.mrf.mxu0 }
 0x216   :  { %v1112_v3 = vpop.f32.mrf.mxu1  ;;  %v1153_v52 = vpop.f32.mrf.mxu0 }
 0x217   :  { %v1162_v53 = vcombine.low %v1110_v5, %v1112_v3  ;;  %v1163_v55 = vcombine.low %v1151_v61, %v1153_v52 }
 0x218   :  { %v1114_v56 = vpop.f32.mrf.mxu1  ;;  %v1155_v63 = vpop.f32.mrf.mxu0 }
 0x219   :  { %v1170_v2 = vrot.slane %v1162_v53, %v5069_v54  ;;  %v1177_v7 = vrot.slane %v1163_v55, %v5069_v54  ;;  %v5880_v53 = vld [vmem:[#allocation19_spill] sm:$0xff]  ;;  %v5881_v55 = vld [vmem:[#allocation17_spill] sm:$0xff]  ;;  %v5882_v56 = vld [vmem:[#allocation18_spill] sm:$0xff] }
 0x21a   :  { %v1115_v46 = vpop.f32.mrf.mxu1  ;;  %v1156_v25 = vpop.f32.mrf.mxu0 }
 0x21b   :  { %v1178_v35 = vcombine.low %v1170_v2, %v1177_v7 }
 0x21d   :  { %v1180_v8 = vadd.f32 %v1178_v35, %v853_v4 }
 0x21f   :  { %v4313_v31 = vmul.f32 -1.442695, %v1180_v8 }
 0x221   :  { %4484 = vpow2.f32 %v4313_v31 }
 0x22e   :  { %v4485_v6 = vpop.eup %4484 }
 0x22f   :  { %v1184_v62 = vadd.f32 1.0, %v4485_v6 }
 0x231   :  { %4486 = vrcp.f32 %v1184_v62 }
 0x23e   :  { %v4487_v1 = vpop.eup %4486 }
 0x23f   :  { %v1188_v59 = vrot.slane %v4487_v1, 4  ;;  %v1192_v11 = vrot.slane %v4487_v1, 2  ;;  %v1198_v30 = vrot.slane %v4487_v1, 6 }
 0x241   :  { %v1190_v22 = vmul.f32 2.0, %v1188_v59  ;;  %v1194_v60 = vmul.f32 0.0, %v1192_v11 }
 0x243   :  { %v4314_v10 = vadd.f32 -1.0, %v1190_v22 }
 0x245   :  { %v1195_v5 = vmul.f32 %v4487_v1, %v4314_v10 }
 0x247   :  { %v5139_v61 = vadd.f32 %v1195_v5, %v1194_v60 }
 0x249   :  { %4488 = vtanh.f32 %v5139_v61 }
 0x256   :  { %v4489_v51 = vpop.eup %4488 }
 0x257   :  { %v1200_v3 = vmul.f32 %v4489_v51, %v1198_v30 }
 0x259   :  { %1201 = vst [vmem:[#allocation3] sm:$0x3] %v1200_v3  ;;  %1203 = vst [vmem:[#allocation4 + $0xe] sm:$0x3] %v1200_v3  ;;  %v1205_v52 = vpack.c.bf16 %v1200_v3, %v1200_v3 }
 0x25b   :  { %1239 = vmatmul.mubr.bf16.vlgmr.msra.gmra.mxu1 %v1205_v52  ;;  %1280 = vmatmul.mubr.bf16.vlgmr.msra.gmra.mxu0 %v1205_v52 }
 0x25c   :  { %1338 = vmatpush1.bf16.msra.mxu1 %v4931_v12  ;;  %1379 = vmatpush1.bf16.msra.mxu0 %v4933_v13 }
 0x25d   :  { %1339 = vmatprep.subr.bf16.mxu1 %v4940_v14  ;;  %1380 = vmatprep.subr.bf16.mxu0 %v4942_v15 }
 0x25e   :  { %1369 = vmatprep.mubr.bf16.mxu1 %v5879_v39  ;;  %1410 = vmatprep.mubr.bf16.mxu0 %v5879_v39 }
 0x260   :  { %1340 = vmatpush1.bf16.msra.mxu1 %v4946_v16  ;;  %1381 = vmatpush1.bf16.msra.mxu0 %v4948_v17 }
 0x261   :  { %1341 = vmatprep.subr.bf16.mxu1 %v4952_v57  ;;  %1382 = vmatprep.subr.bf16.mxu0 %v4954_v18 }
 0x264   :  { %1342 = vmatpush1.bf16.msra.mxu1 %v4960_v19  ;;  %1383 = vmatpush1.bf16.msra.mxu0 %v4962_v20 }
 0x265   :  { %1343 = vmatprep.subr.bf16.mxu1 %v4966_v0  ;;  %1384 = vmatprep.subr.bf16.mxu0 %v4968_v21 }
 0x268   :  { %1344 = vmatpush1.bf16.msra.mxu1 %v4974_v23  ;;  %1385 = vmatpush1.bf16.msra.mxu0 %v4976_v24 }
 0x269   :  { %1345 = vmatprep.subr.bf16.mxu1 %v4980_v26  ;;  %1386 = vmatprep.subr.bf16.mxu0 %v4982_v27 }
 0x26c   :  { %1346 = vmatpush1.bf16.msra.mxu1 %v4986_v28  ;;  %1387 = vmatpush1.bf16.msra.mxu0 %v4988_v29 }
 0x26d   :  { %1347 = vmatprep.subr.bf16.mxu1 %v4992_v32  ;;  %1388 = vmatprep.subr.bf16.mxu0 %v4994_v33 }
 0x270   :  { %1348 = vmatpush1.bf16.msra.mxu1 %v4998_v34  ;;  %1389 = vmatpush1.bf16.msra.mxu0 %v5000_v36 }
 0x271   :  { %1349 = vmatprep.subr.bf16.mxu1 %v5004_v37  ;;  %1390 = vmatprep.subr.bf16.mxu0 %v5006_v38 }
 0x274   :  { %1350 = vmatpush1.bf16.msra.mxu1 %v5010_v40  ;;  %1391 = vmatpush1.bf16.msra.mxu0 %v5012_v41 }
 0x275   :  { %1351 = vmatprep.subr.bf16.mxu1 %v5016_v42  ;;  %1392 = vmatprep.subr.bf16.mxu0 %v5018_v43 }
 0x278   :  { %1352 = vmatpush1.bf16.msra.mxu1 %v5022_v44  ;;  %1393 = vmatpush1.bf16.msra.mxu0 %v5880_v53 }
 0x279   :  { %1468 = vmatprep.subr.bf16.mxu1 %v5881_v55  ;;  %1509 = vmatprep.subr.bf16.mxu0 %v5882_v56 }
 0x31b   :  { %v1240_v63 = vpop.f32.mrf.mxu1  ;;  %v1281_v2 = vpop.f32.mrf.mxu0 }
 0x31d   :  { %v1242_v7 = vpop.f32.mrf.mxu1  ;;  %v1283_v46 = vpop.f32.mrf.mxu0 }
 0x31e   :  { %v1292_v25 = vcombine.low %v1240_v63, %v1242_v7  ;;  %v1293_v4 = vcombine.low %v1281_v2, %v1283_v46 }
 0x31f   :  { %v1244_v35 = vpop.f32.mrf.mxu1  ;;  %v1285_v8 = vpop.f32.mrf.mxu0 }
 0x320   :  { %v1300_v31 = vrot.slane %v1292_v25, %v5069_v54  ;;  %v1307_v6 = vrot.slane %v1293_v4, %v5069_v54 }
 0x321   :  { %v1245_v62 = vpop.f32.mrf.mxu1  ;;  %v1286_v1 = vpop.f32.mrf.mxu0 }
 0x322   :  { %v1308_v59 = vcombine.low %v1300_v31, %v1307_v6 }
 0x324   :  { %v1310_v22 = vadd.f32 %v1308_v59, %v5129_v49 }
 0x326   :  { %v4315_v11 = vmul.f32 -1.442695, %v1310_v22 }
 0x328   :  { %4490 = vpow2.f32 %v4315_v11 }
 0x335   :  { %v4491_v10 = vpop.eup %4490 }
 0x336   :  { %v1314_v60 = vadd.f32 1.0, %v4491_v10 }
 0x338   :  { %4492 = vrcp.f32 %v1314_v60 }
 0x345   :  { %v4493_v5 = vpop.eup %4492 }
 0x346   :  { %v1318_v30 = vrot.slane %v4493_v5, 4  ;;  %v1322_v3 = vrot.slane %v4493_v5, 2  ;;  %v1328_v46 = vrot.slane %v4493_v5, 6 }
 0x348   :  { %v1320_v51 = vmul.f32 2.0, %v1318_v30  ;;  %v1324_v63 = vmul.f32 %v1322_v3, %v5139_v61 }
 0x34a   :  { %v4316_v52 = vadd.f32 -1.0, %v1320_v51 }
 0x34c   :  { %v1325_v2 = vmul.f32 %v4493_v5, %v4316_v52 }
 0x34e   :  { %v5180_v7 = vadd.f32 %v1325_v2, %v1324_v63 }
 0x350   :  { %4494 = vtanh.f32 %v5180_v7 }
 0x35d   :  { %v4495_v25 = vpop.eup %4494 }
 0x35e   :  { %v1330_v49 = vmul.f32 %v4495_v25, %v1328_v46 }
 0x360   :  { %1332 = vst [vmem:[#allocation3 + $0x2] sm:$0x3] %v1330_v49  ;;  %1334 = vst [vmem:[#allocation4 + $0xc] sm:$0x3] %v1330_v49  ;;  %v1336_v4 = vpack.c.bf16 %v1330_v49, %v1330_v49 }
 0x362   :  { %1370 = vmatmul.mubr.bf16.vlgmr.msra.gmra.mxu1 %v1336_v4  ;;  %1411 = vmatmul.mubr.bf16.vlgmr.msra.gmra.mxu0 %v1336_v4 }
 0x363   :  { %1469 = vmatpush1.bf16.msra.mxu1 %v4931_v12  ;;  %1510 = vmatpush1.bf16.msra.mxu0 %v4933_v13 }
 0x364   :  { %1470 = vmatprep.subr.bf16.mxu1 %v4940_v14  ;;  %1511 = vmatprep.subr.bf16.mxu0 %v4942_v15 }
 0x365   :  { %1500 = vmatprep.mubr.bf16.mxu1 %v5879_v39  ;;  %1541 = vmatprep.mubr.bf16.mxu0 %v5879_v39 }
 0x367   :  { %1471 = vmatpush1.bf16.msra.mxu1 %v4946_v16  ;;  %1512 = vmatpush1.bf16.msra.mxu0 %v4948_v17 }
 0x368   :  { %1472 = vmatprep.subr.bf16.mxu1 %v4952_v57  ;;  %1513 = vmatprep.subr.bf16.mxu0 %v4954_v18 }
 0x36b   :  { %1473 = vmatpush1.bf16.msra.mxu1 %v4960_v19  ;;  %1514 = vmatpush1.bf16.msra.mxu0 %v4962_v20 }
 0x36c   :  { %1474 = vmatprep.subr.bf16.mxu1 %v4966_v0  ;;  %1515 = vmatprep.subr.bf16.mxu0 %v4968_v21 }
 0x36f   :  { %1475 = vmatpush1.bf16.msra.mxu1 %v4974_v23  ;;  %1516 = vmatpush1.bf16.msra.mxu0 %v4976_v24 }
 0x370   :  { %1476 = vmatprep.subr.bf16.mxu1 %v4980_v26  ;;  %1517 = vmatprep.subr.bf16.mxu0 %v4982_v27 }
 0x373   :  { %1477 = vmatpush1.bf16.msra.mxu1 %v4986_v28  ;;  %1518 = vmatpush1.bf16.msra.mxu0 %v4988_v29 }
 0x374   :  { %1478 = vmatprep.subr.bf16.mxu1 %v4992_v32  ;;  %1519 = vmatprep.subr.bf16.mxu0 %v4994_v33 }
 0x377   :  { %1479 = vmatpush1.bf16.msra.mxu1 %v4998_v34  ;;  %1520 = vmatpush1.bf16.msra.mxu0 %v5000_v36 }
 0x378   :  { %1480 = vmatprep.subr.bf16.mxu1 %v5004_v37  ;;  %1521 = vmatprep.subr.bf16.mxu0 %v5006_v38 }
 0x37b   :  { %1481 = vmatpush1.bf16.msra.mxu1 %v5010_v40  ;;  %1522 = vmatpush1.bf16.msra.mxu0 %v5012_v41 }
 0x37c   :  { %1482 = vmatprep.subr.bf16.mxu1 %v5016_v42  ;;  %1523 = vmatprep.subr.bf16.mxu0 %v5018_v43 }
 0x37f   :  { %1483 = vmatpush1.bf16.msra.mxu1 %v5022_v44  ;;  %1524 = vmatpush1.bf16.msra.mxu0 %v5880_v53 }
 0x380   :  { %1599 = vmatprep.subr.bf16.mxu1 %v5881_v55  ;;  %1640 = vmatprep.subr.bf16.mxu0 %v5882_v56 }
 0x422   :  { %v1371_v61 = vpop.f32.mrf.mxu1  ;;  %v1412_v35 = vpop.f32.mrf.mxu0 }
 0x424   :  { %v1373_v8 = vpop.f32.mrf.mxu1  ;;  %v1414_v31 = vpop.f32.mrf.mxu0 }
 0x425   :  { %v1423_v6 = vcombine.low %v1371_v61, %v1373_v8  ;;  %v1424_v62 = vcombine.low %v1412_v35, %v1414_v31 }
 0x426   :  { %v1375_v1 = vpop.f32.mrf.mxu1  ;;  %v1416_v59 = vpop.f32.mrf.mxu0 }
 0x427   :  { %v1431_v22 = vrot.slane %v1423_v6, %v5069_v54  ;;  %v1438_v11 = vrot.slane %v1424_v62, %v5069_v54 }
 0x428   :  { %v1376_v10 = vpop.f32.mrf.mxu1  ;;  %v1417_v60 = vpop.f32.mrf.mxu0 }
 0x429   :  { %v1439_v5 = vcombine.low %v1431_v22, %v1438_v11 }
 0x42b   :  { %v1441_v30 = vadd.f32 %v1439_v5, %v5131_v50 }
 0x42d   :  { %v4317_v51 = vmul.f32 -1.442695, %v1441_v30 }
 0x42f   :  { %4496 = vpow2.f32 %v4317_v51 }
 0x43c   :  { %v4497_v3 = vpop.eup %4496 }
 0x43d   :  { %v1445_v52 = vadd.f32 1.0, %v4497_v3 }
 0x43f   :  { %4498 = vrcp.f32 %v1445_v52 }
 0x44c   :  { %v4499_v63 = vpop.eup %4498 }
 0x44d   :  { %v1449_v2 = vrot.slane %v4499_v63, 4  ;;  %v1453_v25 = vrot.slane %v4499_v63, 2  ;;  %v1459_v8 = vrot.slane %v4499_v63, 6 }
 0x44f   :  { %v1451_v46 = vmul.f32 2.0, %v1449_v2  ;;  %v1455_v4 = vmul.f32 %v1453_v25, %v5180_v7 }
 0x451   :  { %v4318_v49 = vadd.f32 -1.0, %v1451_v46 }
 0x453   :  { %v1456_v61 = vmul.f32 %v4499_v63, %v4318_v49 }
 0x455   :  { %v5221_v35 = vadd.f32 %v1456_v61, %v1455_v4 }
 0x457   :  { %4500 = vtanh.f32 %v5221_v35 }
 0x464   :  { %v4501_v31 = vpop.eup %4500 }
 0x465   :  { %v1461_v50 = vmul.f32 %v4501_v31, %v1459_v8 }
 0x467   :  { %1463 = vst [vmem:[#allocation3 + $0x4] sm:$0x3] %v1461_v50  ;;  %1465 = vst [vmem:[#allocation4 + $0xa] sm:$0x3] %v1461_v50  ;;  %v1467_v6 = vpack.c.bf16 %v1461_v50, %v1461_v50 }
 0x469   :  { %1501 = vmatmul.mubr.bf16.vlgmr.msra.gmra.mxu1 %v1467_v6  ;;  %1542 = vmatmul.mubr.bf16.vlgmr.msra.gmra.mxu0 %v1467_v6 }
 0x46a   :  { %1600 = vmatpush1.bf16.msra.mxu1 %v4931_v12  ;;  %1641 = vmatpush1.bf16.msra.mxu0 %v4933_v13 }
 0x46b   :  { %1601 = vmatprep.subr.bf16.mxu1 %v4940_v14  ;;  %1642 = vmatprep.subr.bf16.mxu0 %v4942_v15 }
 0x46c   :  { %1631 = vmatprep.mubr.bf16.mxu1 %v5879_v39  ;;  %1672 = vmatprep.mubr.bf16.mxu0 %v5879_v39 }
 0x46e   :  { %1602 = vmatpush1.bf16.msra.mxu1 %v4946_v16  ;;  %1643 = vmatpush1.bf16.msra.mxu0 %v4948_v17 }
 0x46f   :  { %1603 = vmatprep.subr.bf16.mxu1 %v4952_v57  ;;  %1644 = vmatprep.subr.bf16.mxu0 %v4954_v18 }
 0x472   :  { %1604 = vmatpush1.bf16.msra.mxu1 %v4960_v19  ;;  %1645 = vmatpush1.bf16.msra.mxu0 %v4962_v20 }
 0x473   :  { %1605 = vmatprep.subr.bf16.mxu1 %v4966_v0  ;;  %1646 = vmatprep.subr.bf16.mxu0 %v4968_v21 }
 0x476   :  { %1606 = vmatpush1.bf16.msra.mxu1 %v4974_v23  ;;  %1647 = vmatpush1.bf16.msra.mxu0 %v4976_v24 }
 0x477   :  { %1607 = vmatprep.subr.bf16.mxu1 %v4980_v26  ;;  %1648 = vmatprep.subr.bf16.mxu0 %v4982_v27 }
 0x47a   :  { %1608 = vmatpush1.bf16.msra.mxu1 %v4986_v28  ;;  %1649 = vmatpush1.bf16.msra.mxu0 %v4988_v29 }
 0x47b   :  { %1609 = vmatprep.subr.bf16.mxu1 %v4992_v32  ;;  %1650 = vmatprep.subr.bf16.mxu0 %v4994_v33 }
 0x47e   :  { %1610 = vmatpush1.bf16.msra.mxu1 %v4998_v34  ;;  %1651 = vmatpush1.bf16.msra.mxu0 %v5000_v36 }
 0x47f   :  { %1611 = vmatprep.subr.bf16.mxu1 %v5004_v37  ;;  %1652 = vmatprep.subr.bf16.mxu0 %v5006_v38 }
 0x482   :  { %1612 = vmatpush1.bf16.msra.mxu1 %v5010_v40  ;;  %1653 = vmatpush1.bf16.msra.mxu0 %v5012_v41 }
 0x483   :  { %1613 = vmatprep.subr.bf16.mxu1 %v5016_v42  ;;  %1654 = vmatprep.subr.bf16.mxu0 %v5018_v43 }
 0x486   :  { %1614 = vmatpush1.bf16.msra.mxu1 %v5022_v44  ;;  %1655 = vmatpush1.bf16.msra.mxu0 %v5880_v53 }
 0x487   :  { %1730 = vmatprep.subr.bf16.mxu1 %v5881_v55  ;;  %1771 = vmatprep.subr.bf16.mxu0 %v5882_v56 }
 0x529   :  { %v1502_v7 = vpop.f32.mrf.mxu1  ;;  %v1543_v62 = vpop.f32.mrf.mxu0 }
 0x52b   :  { %v1504_v1 = vpop.f32.mrf.mxu1  ;;  %v1545_v59 = vpop.f32.mrf.mxu0 }
 0x52c   :  { %v1554_v22 = vcombine.low %v1502_v7, %v1504_v1  ;;  %v1555_v11 = vcombine.low %v1543_v62, %v1545_v59 }
 0x52d   :  { %v1506_v10 = vpop.f32.mrf.mxu1  ;;  %v1547_v60 = vpop.f32.mrf.mxu0 }
 0x52e   :  { %v1562_v5 = vrot.slane %v1554_v22, %v5069_v54  ;;  %v1569_v30 = vrot.slane %v1555_v11, %v5069_v54 }
 0x52f   :  { %v1507_v51 = vpop.f32.mrf.mxu1  ;;  %v1548_v3 = vpop.f32.mrf.mxu0 }
 0x530   :  { %v1570_v52 = vcombine.low %v1562_v5, %v1569_v30 }
 0x532   :  { %v1572_v63 = vadd.f32 %v1570_v52, %v5133_v47 }
 0x534   :  { %v4319_v2 = vmul.f32 -1.442695, %v1572_v63 }
 0x536   :  { %4502 = vpow2.f32 %v4319_v2 }
 0x543   :  { %v4503_v46 = vpop.eup %4502 }
 0x544   :  { %v1576_v25 = vadd.f32 1.0, %v4503_v46 }
 0x546   :  { %4504 = vrcp.f32 %v1576_v25 }
 0x553   :  { %v4505_v49 = vpop.eup %4504 }
 0x554   :  { %v1580_v4 = vrot.slane %v4505_v49, 4  ;;  %v1584_v8 = vrot.slane %v4505_v49, 2  ;;  %v1590_v62 = vrot.slane %v4505_v49, 6 }
 0x556   :  { %v1582_v61 = vmul.f32 2.0, %v1580_v4  ;;  %v1586_v50 = vmul.f32 %v1584_v8, %v5221_v35 }
 0x558   :  { %v4320_v31 = vadd.f32 -1.0, %v1582_v61 }
 0x55a   :  { %v1587_v6 = vmul.f32 %v4505_v49, %v4320_v31  ;;  %v5306_v31 = vld [vmem:[#allocation10 + $0xe0] ss:$16 sps:$4 sm:$0xff]  }
 0x55c   :  { %v5262_v7 = vadd.f32 %v1587_v6, %v1586_v50  ;;  %v5309_v50 = vld [vmem:[#allocation10 + $0xe8] ss:$16 sps:$4 sm:$0xff]   ;;  %v5312_v6 = vld [vmem:[#allocation10 + $0xc4] ss:$16 sps:$4 sm:$0xff]  }
 0x55e   :  { %4506 = vtanh.f32 %v5262_v7 }
 0x56b   :  { %v4507_v1 = vpop.eup %4506 }
 0x56c   :  { %v1592_v47 = vmul.f32 %v4507_v1, %v1590_v62  ;;  %v5320_v62 = vld [vmem:[#allocation10 + $0xc0] ss:$16 sps:$4 sm:$0xff]   ;;  %v5323_v1 = vld [vmem:[#allocation10 + $0xc8] ss:$16 sps:$4 sm:$0xff]  }
 0x56e   :  { %1594 = vst [vmem:[#allocation3 + $0x6] sm:$0x3] %v1592_v47  ;;  %1596 = vst [vmem:[#allocation4 + $0x8] sm:$0x3] %v1592_v47  ;;  %v1598_v59 = vpack.c.bf16 %v1592_v47, %v1592_v47  ;;  %v5326_v47 = vld [vmem:[#allocation10 + $0xa4] ss:$16 sps:$4 sm:$0xff]  }
 0x570   :  { %1632 = vmatmul.mubr.bf16.vlgmr.msra.gmra.mxu1 %v1598_v59  ;;  %1673 = vmatmul.mubr.bf16.vlgmr.msra.gmra.mxu0 %v1598_v59  ;;  %v5329_v59 = vld [vmem:[#allocation10 + $0xac] ss:$16 sps:$4 sm:$0xff]  }
 0x571   :  { %1731 = vmatpush1.bf16.msra.mxu1 %v4931_v12  ;;  %1772 = vmatpush1.bf16.msra.mxu0 %v4933_v13 }
 0x572   :  { %1732 = vmatprep.subr.bf16.mxu1 %v4940_v14  ;;  %1773 = vmatprep.subr.bf16.mxu0 %v4942_v15 }
 0x573   :  { %1762 = vmatprep.mubr.bf16.mxu1 %v5879_v39  ;;  %1803 = vmatprep.mubr.bf16.mxu0 %v5879_v39 }
 0x575   :  { %1733 = vmatpush1.bf16.msra.mxu1 %v4946_v16  ;;  %1774 = vmatpush1.bf16.msra.mxu0 %v4948_v17 }
 0x576   :  { %1734 = vmatprep.subr.bf16.mxu1 %v4952_v57  ;;  %1775 = vmatprep.subr.bf16.mxu0 %v4954_v18 }
 0x579   :  { %1735 = vmatpush1.bf16.msra.mxu1 %v4960_v19  ;;  %1776 = vmatpush1.bf16.msra.mxu0 %v4962_v20 }
 0x57a   :  { %1736 = vmatprep.subr.bf16.mxu1 %v4966_v0  ;;  %1777 = vmatprep.subr.bf16.mxu0 %v4968_v21 }
 0x57d   :  { %1737 = vmatpush1.bf16.msra.mxu1 %v4974_v23  ;;  %1778 = vmatpush1.bf16.msra.mxu0 %v4976_v24 }
 0x57e   :  { %1738 = vmatprep.subr.bf16.mxu1 %v4980_v26  ;;  %1779 = vmatprep.subr.bf16.mxu0 %v4982_v27 }
 0x581   :  { %1739 = vmatpush1.bf16.msra.mxu1 %v4986_v28  ;;  %1780 = vmatpush1.bf16.msra.mxu0 %v4988_v29 }
 0x582   :  { %1740 = vmatprep.subr.bf16.mxu1 %v4992_v32  ;;  %1781 = vmatprep.subr.bf16.mxu0 %v4994_v33 }
 0x585   :  { %1741 = vmatpush1.bf16.msra.mxu1 %v4998_v34  ;;  %1782 = vmatpush1.bf16.msra.mxu0 %v5000_v36 }
 0x586   :  { %1742 = vmatprep.subr.bf16.mxu1 %v5004_v37  ;;  %1783 = vmatprep.subr.bf16.mxu0 %v5006_v38 }
 0x589   :  { %1743 = vmatpush1.bf16.msra.mxu1 %v5010_v40  ;;  %1784 = vmatpush1.bf16.msra.mxu0 %v5012_v41 }
 0x58a   :  { %1744 = vmatprep.subr.bf16.mxu1 %v5016_v42  ;;  %1785 = vmatprep.subr.bf16.mxu0 %v5018_v43 }
 0x58d   :  { %1745 = vmatpush1.bf16.msra.mxu1 %v5022_v44  ;;  %1786 = vmatpush1.bf16.msra.mxu0 %v5880_v53 }
 0x58e   :  { %1861 = vmatprep.subr.bf16.mxu1 %v5881_v55  ;;  %1902 = vmatprep.subr.bf16.mxu0 %v5882_v56 }
 0x630   :  { %v1633_v12 = vpop.f32.mrf.mxu1  ;;  %v1674_v13 = vpop.f32.mrf.mxu0 }
 0x632   :  { %v1635_v14 = vpop.f32.mrf.mxu1  ;;  %v1676_v15 = vpop.f32.mrf.mxu0 }
 0x633   :  { %v1685_v16 = vcombine.low %v1633_v12, %v1635_v14  ;;  %v1686_v17 = vcombine.low %v1674_v13, %v1676_v15 }
 0x634   :  { %v1637_v57 = vpop.f32.mrf.mxu1  ;;  %v1678_v18 = vpop.f32.mrf.mxu0 }
 0x635   :  { %v1693_v35 = vrot.slane %v1685_v16, %v5069_v54  ;;  %v1700_v22 = vrot.slane %v1686_v17, %v5069_v54 }
 0x636   :  { %v1638_v11 = vpop.f32.mrf.mxu1  ;;  %v1679_v10 = vpop.f32.mrf.mxu0 }
 0x637   :  { %v1701_v60 = vcombine.low %v1693_v35, %v1700_v22  ;;  %v4590_v35 = vld [vmem:[#allocation10 + $0xa0] ss:$16 sps:$4 sm:$0xff]   ;;  %v4591_v22 = vld [vmem:[#allocation10 + $0xa8] ss:$16 sps:$4 sm:$0xff]   ;;  %v4592_v11 = vld [vmem:[#allocation10 + $0x84] ss:$16 sps:$4 sm:$0xff]  }
 0x638   :  { %v4593_v10 = vld [vmem:[#allocation10 + $0x8c] ss:$16 sps:$4 sm:$0xff]  }
 0x639   :  { %v1703_v5 = vadd.f32 %v1701_v60, %v5112_v58  ;;  %v4594_v60 = vld [vmem:[#allocation10 + $0x80] ss:$16 sps:$4 sm:$0xff]  }
 0x63b   :  { %v4321_v55 = vmul.f32 -1.442695, %v1703_v5  ;;  %v4595_v5 = vld [vmem:[#allocation10 + $0x88] ss:$16 sps:$4 sm:$0xff]  }
 0x63d   :  { %4508 = vpow2.f32 %v4321_v55  ;;  %v4596_v55 = vld [vmem:[#allocation10 + $0x64] ss:$16 sps:$4 sm:$0xff]  }
 0x64a   :  { %v4509_v56 = vpop.eup %4508 }
 0x64b   :  { %v1707_v30 = vadd.f32 1.0, %v4509_v56  ;;  %v4597_v56 = vld [vmem:[#allocation10 + $0x6c] ss:$16 sps:$4 sm:$0xff]  }
 0x64d   :  { %4510 = vrcp.f32 %v1707_v30  ;;  %v4598_v30 = vld [vmem:[#allocation10 + $0x60] ss:$16 sps:$4 sm:$0xff]  }
 0x65a   :  { %v4511_v51 = vpop.eup %4510 }
 0x65b   :  { %v1711_v3 = vrot.slane %v4511_v51, 4  ;;  %v1715_v63 = vrot.slane %v4511_v51, 2  ;;  %v1721_v4 = vrot.slane %v4511_v51, 6 }
 0x65d   :  { %v1713_v52 = vmul.f32 2.0, %v1711_v3  ;;  %v1717_v46 = vmul.f32 %v1715_v63, %v5262_v7  ;;  %v5315_v7 = vld [vmem:[#allocation10 + $0xcc] ss:$16 sps:$4 sm:$0xff]   ;;  %v4600_v3 = vld [vmem:[#allocation10 + $0x44] ss:$16 sps:$4 sm:$0xff]  }
 0x65e   :  { %v4602_v63 = vld [vmem:[#allocation10 + $0x40] ss:$16 sps:$4 sm:$0xff]  }
 0x65f   :  { %v4322_v2 = vadd.f32 -1.0, %v1713_v52  ;;  %v4601_v52 = vld [vmem:[#allocation10 + $0x4c] ss:$16 sps:$4 sm:$0xff]  }
 0x661   :  { %v1718_v25 = vmul.f32 %v4511_v51, %v4322_v2  ;;  %v4599_v51 = vld [vmem:[#allocation10 + $0x68] ss:$16 sps:$4 sm:$0xff]  }
 0x662   :  { %v4603_v2 = vld [vmem:[#allocation10 + $0x48] ss:$16 sps:$4 sm:$0xff]  }
 0x663   :  { %v5303_v49 = vadd.f32 %v1718_v25, %v1717_v46  ;;  %v4604_v46 = vld [vmem:[#allocation10 + $0x24] ss:$16 sps:$4 sm:$0xff]   ;;  %v4605_v25 = vld [vmem:[#allocation10 + $0x2c] ss:$16 sps:$4 sm:$0xff]  }
 0x665   :  { %4512 = vtanh.f32 %v5303_v49 }
 0x672   :  { %v4513_v61 = vpop.eup %4512 }
 0x673   :  { %v1723_v58 = vmul.f32 %v4513_v61, %v1721_v4  ;;  %v4607_v4 = vld [vmem:[#allocation10 + $0x28] ss:$16 sps:$4 sm:$0xff]   ;;  %v4608_v61 = vld [vmem:[#allocation10 + $0x4] ss:$16 sps:$4 sm:$0xff]  }
 0x675   :  { %1725 = vst [vmem:[#allocation3 + $0x8] sm:$0x3] %v1723_v58  ;;  %1727 = vst [vmem:[#allocation4 + $0x6] sm:$0x3] %v1723_v58  ;;  %v1729_v8 = vpack.c.bf16 %v1723_v58, %v1723_v58  ;;  %v4609_v58 = vld [vmem:[#allocation10 + $0xc] ss:$16 sps:$4 sm:$0xff]  }
 0x677   :  { %1763 = vmatmul.mubr.bf16.vlgmr.msra.gmra.mxu1 %v1729_v8  ;;  %1804 = vmatmul.mubr.bf16.vlgmr.msra.gmra.mxu0 %v1729_v8  ;;  %v4610_v8 = vld [vmem:[#allocation10] ss:$16 sps:$4 sm:$0xff]  }
 0x678   :  { %1862 = vmatpush1.bf16.msra.mxu1 %v5306_v31  ;;  %1903 = vmatpush1.bf16.msra.mxu0 %v5309_v50 }
 0x679   :  { %1863 = vmatprep.subr.bf16.mxu1 %v5312_v6  ;;  %1904 = vmatprep.subr.bf16.mxu0 %v5315_v7 }
 0x67a   :  { %1893 = vmatprep.mubr.bf16.mxu1 %v5879_v39  ;;  %1934 = vmatprep.mubr.bf16.mxu0 %v5879_v39 }
 0x67c   :  { %1864 = vmatpush1.bf16.msra.mxu1 %v5320_v62  ;;  %1905 = vmatpush1.bf16.msra.mxu0 %v5323_v1 }
 0x67d   :  { %1865 = vmatprep.subr.bf16.mxu1 %v5326_v47  ;;  %1906 = vmatprep.subr.bf16.mxu0 %v5329_v59 }
 0x680   :  { %1866 = vmatpush1.bf16.msra.mxu1 %v4960_v19  ;;  %1907 = vmatpush1.bf16.msra.mxu0 %v4962_v20  ;;  %v4588_v19 = vld [vmem:[#allocation10 + $0xe4] ss:$16 sps:$4 sm:$0xff]   ;;  %v4589_v20 = vld [vmem:[#allocation10 + $0xec] ss:$16 sps:$4 sm:$0xff]  }
 0x681   :  { %1867 = vmatprep.subr.bf16.mxu1 %v4966_v0  ;;  %1908 = vmatprep.subr.bf16.mxu0 %v4968_v21 }
 0x684   :  { %1868 = vmatpush1.bf16.msra.mxu1 %v4974_v23  ;;  %1909 = vmatpush1.bf16.msra.mxu0 %v4976_v24 }
 0x685   :  { %1869 = vmatprep.subr.bf16.mxu1 %v4980_v26  ;;  %1910 = vmatprep.subr.bf16.mxu0 %v4982_v27 }
 0x688   :  { %1870 = vmatpush1.bf16.msra.mxu1 %v4986_v28  ;;  %1911 = vmatpush1.bf16.msra.mxu0 %v4988_v29 }
 0x689   :  { %1871 = vmatprep.subr.bf16.mxu1 %v4992_v32  ;;  %1912 = vmatprep.subr.bf16.mxu0 %v4994_v33 }
 0x68c   :  { %1872 = vmatpush1.bf16.msra.mxu1 %v4998_v34  ;;  %1913 = vmatpush1.bf16.msra.mxu0 %v5000_v36 }
 0x68d   :  { %1873 = vmatprep.subr.bf16.mxu1 %v5004_v37  ;;  %1914 = vmatprep.subr.bf16.mxu0 %v5006_v38 }
 0x690   :  { %1874 = vmatpush1.bf16.msra.mxu1 %v5010_v40  ;;  %1915 = vmatpush1.bf16.msra.mxu0 %v5012_v41 }
 0x691   :  { %1875 = vmatprep.subr.bf16.mxu1 %v5016_v42  ;;  %1916 = vmatprep.subr.bf16.mxu0 %v5018_v43 }
 0x694   :  { %1876 = vmatpush1.bf16.msra.mxu1 %v5022_v44  ;;  %1917 = vmatpush1.bf16.msra.mxu0 %v5880_v53 }
 0x695   :  { %1992 = vmatprep.subr.bf16.mxu1 %v4588_v19  ;;  %2033 = vmatprep.subr.bf16.mxu0 %v4589_v20 }
 0x737   :  { %v1764_v0 = vpop.f32.mrf.mxu1  ;;  %v1805_v21 = vpop.f32.mrf.mxu0 }
 0x739   :  { %v1766_v23 = vpop.f32.mrf.mxu1  ;;  %v1807_v24 = vpop.f32.mrf.mxu0 }
 0x73a   :  { %v1816_v26 = vcombine.low %v1764_v0, %v1766_v23  ;;  %v1817_v27 = vcombine.low %v1805_v21, %v1807_v24 }
 0x73b   :  { %v1768_v28 = vpop.f32.mrf.mxu1  ;;  %v1809_v29 = vpop.f32.mrf.mxu0 }
 0x73c   :  { %v1824_v32 = vrot.slane %v1816_v26, %v5069_v54  ;;  %v1831_v33 = vrot.slane %v1817_v27, %v5069_v54 }
 0x73d   :  { %v1769_v34 = vpop.f32.mrf.mxu1  ;;  %v1810_v36 = vpop.f32.mrf.mxu0 }
 0x73e   :  { %v1832_v37 = vcombine.low %v1824_v32, %v1831_v33 }
 0x740   :  { %v1834_v38 = vadd.f32 %v1832_v37, %v5114_v9 }
 0x742   :  { %v4323_v40 = vmul.f32 -1.442695, %v1834_v38 }
 0x744   :  { %4514 = vpow2.f32 %v4323_v40 }
 0x751   :  { %v4515_v41 = vpop.eup %4514 }
 0x752   :  { %v1838_v42 = vadd.f32 1.0, %v4515_v41 }
 0x754   :  { %4516 = vrcp.f32 %v1838_v42 }
 0x761   :  { %v4517_v43 = vpop.eup %4516 }
 0x762   :  { %v1842_v44 = vrot.slane %v4517_v43, 4  ;;  %v1846_v12 = vrot.slane %v4517_v43, 2  ;;  %v1852_v17 = vrot.slane %v4517_v43, 6 }
 0x764   :  { %v1844_v53 = vmul.f32 2.0, %v1842_v44  ;;  %v1848_v14 = vmul.f32 %v1846_v12, %v5303_v49  ;;  %v4606_v49 = vld [vmem:[#allocation10 + $0x20] ss:$16 sps:$4 sm:$0xff]   ;;  %v2347_v12 = vld [vmem:[#allocation8 + $0x3d8] sm:$0xff] }
 0x766   :  { %v4324_v13 = vadd.f32 -1.0, %v1844_v53  ;;  %v2345_v53 = vld [vmem:[#allocation8 + $0x3c8] sm:$0xff] }
 0x768   :  { %v1849_v15 = vmul.f32 %v4517_v43, %v4324_v13  ;;  %v2344_v13 = vld [vmem:[#allocation8 + $0x3c0] sm:$0xff] }
 0x76a   :  { %v5358_v16 = vadd.f32 %v1849_v15, %v1848_v14  ;;  %v2346_v14 = vld [vmem:[#allocation8 + $0x3d0] sm:$0xff]  ;;  %v2337_v15 = vld [vmem:[#allocation8 + $0x388] sm:$0xff] }
 0x76c   :  { %4518 = vtanh.f32 %v5358_v16 }
 0x779   :  { %v4519_v57 = vpop.eup %4518 }
 0x77a   :  { %v1854_v9 = vmul.f32 %v4519_v57, %v1852_v17  ;;  %v2336_v17 = vld [vmem:[#allocation8 + $0x380] sm:$0xff]  ;;  %v2338_v57 = vld [vmem:[#allocation8 + $0x390] sm:$0xff] }
 0x77c   :  { %1856 = vst [vmem:[#allocation3 + $0xa] sm:$0x3] %v1854_v9  ;;  %1858 = vst [vmem:[#allocation4 + $0x4] sm:$0x3] %v1854_v9  ;;  %v1860_v18 = vpack.c.bf16 %v1854_v9, %v1854_v9  ;;  %v2329_v9 = vld [vmem:[#allocation8 + $0x348] sm:$0xff] }
 0x77e   :  { %1894 = vmatmul.mubr.bf16.vlgmr.msra.gmra.mxu1 %v1860_v18  ;;  %1935 = vmatmul.mubr.bf16.vlgmr.msra.gmra.mxu0 %v1860_v18  ;;  %v2331_v18 = vld [vmem:[#allocation8 + $0x358] sm:$0xff] }
 0x77f   :  { %1993 = vmatpush1.bf16.msra.mxu1 %v5306_v31  ;;  %2034 = vmatpush1.bf16.msra.mxu0 %v5309_v50  ;;  %v4611_v31 = vld [vmem:[#allocation10 + $0x8] ss:$16 sps:$4 sm:$0xff]  }
 0x780   :  { %1994 = vmatprep.subr.bf16.mxu1 %v5312_v6  ;;  %2035 = vmatprep.subr.bf16.mxu0 %v5315_v7 }
 0x781   :  { %2024 = vmatprep.mubr.bf16.mxu1 %v5879_v39  ;;  %2065 = vmatprep.mubr.bf16.mxu0 %v5879_v39 }
 0x783   :  { %1995 = vmatpush1.bf16.msra.mxu1 %v5320_v62  ;;  %2036 = vmatpush1.bf16.msra.mxu0 %v5323_v1 }
 0x784   :  { %1996 = vmatprep.subr.bf16.mxu1 %v5326_v47  ;;  %2037 = vmatprep.subr.bf16.mxu0 %v5329_v59 }
 0x787   :  { %1997 = vmatpush1.bf16.msra.mxu1 %v4590_v35  ;;  %2038 = vmatpush1.bf16.msra.mxu0 %v4591_v22  ;;  %v2328_v35 = vld [vmem:[#allocation8 + $0x340] sm:$0xff]  ;;  %v2330_v22 = vld [vmem:[#allocation8 + $0x350] sm:$0xff] }
 0x788   :  { %1998 = vmatprep.subr.bf16.mxu1 %v4592_v11  ;;  %2039 = vmatprep.subr.bf16.mxu0 %v4593_v10  ;;  %v2321_v11 = vld [vmem:[#allocation8 + $0x308] sm:$0xff]  ;;  %v2323_v10 = vld [vmem:[#allocation8 + $0x318] sm:$0xff] }
 0x78b   :  { %1999 = vmatpush1.bf16.msra.mxu1 %v4594_v60  ;;  %2040 = vmatpush1.bf16.msra.mxu0 %v4595_v5  ;;  %v2320_v60 = vld [vmem:[#allocation8 + $0x300] sm:$0xff]  ;;  %v2322_v5 = vld [vmem:[#allocation8 + $0x310] sm:$0xff] }
 0x78c   :  { %2000 = vmatprep.subr.bf16.mxu1 %v4596_v55  ;;  %2041 = vmatprep.subr.bf16.mxu0 %v4597_v56  ;;  %v2313_v55 = vld [vmem:[#allocation8 + $0x2c8] sm:$0xff]  ;;  %v2315_v56 = vld [vmem:[#allocation8 + $0x2d8] sm:$0xff] }
 0x78f   :  { %2001 = vmatpush1.bf16.msra.mxu1 %v4598_v30  ;;  %2042 = vmatpush1.bf16.msra.mxu0 %v4599_v51  ;;  %v2312_v30 = vld [vmem:[#allocation8 + $0x2c0] sm:$0xff]  ;;  %v2314_v51 = vld [vmem:[#allocation8 + $0x2d0] sm:$0xff] }
 0x790   :  { %2002 = vmatprep.subr.bf16.mxu1 %v4600_v3  ;;  %2043 = vmatprep.subr.bf16.mxu0 %v4601_v52  ;;  %v2305_v3 = vld [vmem:[#allocation8 + $0x288] sm:$0xff]  ;;  %v2307_v52 = vld [vmem:[#allocation8 + $0x298] sm:$0xff] }
 0x793   :  { %2003 = vmatpush1.bf16.msra.mxu1 %v4602_v63  ;;  %2044 = vmatpush1.bf16.msra.mxu0 %v4603_v2  ;;  %v2304_v63 = vld [vmem:[#allocation8 + $0x280] sm:$0xff]  ;;  %v2306_v2 = vld [vmem:[#allocation8 + $0x290] sm:$0xff] }
 0x794   :  { %2004 = vmatprep.subr.bf16.mxu1 %v4604_v46  ;;  %2045 = vmatprep.subr.bf16.mxu0 %v4605_v25  ;;  %v2297_v46 = vld [vmem:[#allocation8 + $0x248] sm:$0xff]  ;;  %v2299_v25 = vld [vmem:[#allocation8 + $0x258] sm:$0xff] }
 0x797   :  { %2005 = vmatpush1.bf16.msra.mxu1 %v4606_v49  ;;  %2046 = vmatpush1.bf16.msra.mxu0 %v4607_v4  ;;  %v2296_v49 = vld [vmem:[#allocation8 + $0x240] sm:$0xff]  ;;  %v2298_v4 = vld [vmem:[#allocation8 + $0x250] sm:$0xff] }
 0x798   :  { %2006 = vmatprep.subr.bf16.mxu1 %v4608_v61  ;;  %2047 = vmatprep.subr.bf16.mxu0 %v4609_v58  ;;  %v2289_v61 = vld [vmem:[#allocation8 + $0x208] sm:$0xff]  ;;  %v2291_v58 = vld [vmem:[#allocation8 + $0x218] sm:$0xff] }
 0x79b   :  { %2007 = vmatpush1.bf16.msra.mxu1 %v4610_v8  ;;  %2048 = vmatpush1.bf16.msra.mxu0 %v4611_v31  ;;  %v2288_v8 = vld [vmem:[#allocation8 + $0x200] sm:$0xff]  ;;  %v2290_v31 = vld [vmem:[#allocation8 + $0x210] sm:$0xff] }
 0x79c   :  { %2480 = vmatprep.subr.mxu1 %v2345_v53  ;;  %2557 = vmatprep.subr.mxu0 %v2347_v12  ;;  %v2225_v53 = vld [vmem:[#allocation8 + $0x8] sm:$0xff]  ;;  %v2227_v12 = vld [vmem:[#allocation8 + $0x18] sm:$0xff] }
 0x83e   :  { %v1895_v50 = vpop.f32.mrf.mxu1  ;;  %v1936_v6 = vpop.f32.mrf.mxu0 }
 0x840   :  { %v1897_v7 = vpop.f32.mrf.mxu1  ;;  %v1938_v62 = vpop.f32.mrf.mxu0 }
 0x841   :  { %v1947_v1 = vcombine.low %v1895_v50, %v1897_v7  ;;  %v1948_v47 = vcombine.low %v1936_v6, %v1938_v62  ;;  %v2281_v50 = vld [vmem:[#allocation8 + $0x1c8] sm:$0xff]  ;;  %v2283_v6 = vld [vmem:[#allocation8 + $0x1d8] sm:$0xff]  ;;  %v2280_v7 = vld [vmem:[#allocation8 + $0x1c0] sm:$0xff] }
 0x842   :  { %v1899_v59 = vpop.f32.mrf.mxu1  ;;  %v1940_v19 = vpop.f32.mrf.mxu0  ;;  %v2282_v62 = vld [vmem:[#allocation8 + $0x1d0] sm:$0xff] }
 0x843   :  { %v1955_v20 = vrot.slane %v1947_v1, %v5069_v54  ;;  %v1962_v0 = vrot.slane %v1948_v47, %v5069_v54  ;;  %v2273_v1 = vld [vmem:[#allocation8 + $0x188] sm:$0xff]  ;;  %v2275_v47 = vld [vmem:[#allocation8 + $0x198] sm:$0xff]  ;;  %v2272_v59 = vld [vmem:[#allocation8 + $0x180] sm:$0xff] }
 0x844   :  { %v1900_v21 = vpop.f32.mrf.mxu1  ;;  %v1941_v23 = vpop.f32.mrf.mxu0  ;;  %v2274_v19 = vld [vmem:[#allocation8 + $0x190] sm:$0xff] }
 0x845   :  { %v1963_v24 = vcombine.low %v1955_v20, %v1962_v0  ;;  %v2265_v20 = vld [vmem:[#allocation8 + $0x148] sm:$0xff]  ;;  %v2267_v0 = vld [vmem:[#allocation8 + $0x158] sm:$0xff]  ;;  %v2264_v21 = vld [vmem:[#allocation8 + $0x140] sm:$0xff] }
 0x846   :  { %v2266_v23 = vld [vmem:[#allocation8 + $0x150] sm:$0xff] }
 0x847   :  { %v1965_v26 = vadd.f32 %v1963_v24, %v5116_v45  ;;  %v2257_v24 = vld [vmem:[#allocation8 + $0x108] sm:$0xff] }
 0x849   :  { %v4325_v27 = vmul.f32 -1.442695, %v1965_v26  ;;  %v2259_v26 = vld [vmem:[#allocation8 + $0x118] sm:$0xff] }
 0x84b   :  { %4520 = vpow2.f32 %v4325_v27  ;;  %v2256_v27 = vld [vmem:[#allocation8 + $0x100] sm:$0xff] }
 0x858   :  { %v4521_v28 = vpop.eup %4520 }
 0x859   :  { %v1969_v29 = vadd.f32 1.0, %v4521_v28  ;;  %v2258_v28 = vld [vmem:[#allocation8 + $0x110] sm:$0xff] }
 0x85b   :  { %4522 = vrcp.f32 %v1969_v29  ;;  %v2249_v29 = vld [vmem:[#allocation8 + $0xc8] sm:$0xff] }
 0x868   :  { %v4523_v32 = vpop.eup %4522 }
 0x869   :  { %v1973_v33 = vrot.slane %v4523_v32, 4  ;;  %v1977_v36 = vrot.slane %v4523_v32, 2  ;;  %v1983_v42 = vrot.slane %v4523_v32, 6 }
 0x86b   :  { %v1975_v34 = vmul.f32 2.0, %v1973_v33  ;;  %v1979_v38 = vmul.f32 %v1977_v36, %v5358_v16  ;;  %v2339_v16 = vld [vmem:[#allocation8 + $0x398] sm:$0xff]  ;;  %v2248_v33 = vld [vmem:[#allocation8 + $0xc0] sm:$0xff]  ;;  %v2241_v36 = vld [vmem:[#allocation8 + $0x88] sm:$0xff] }
 0x86d   :  { %v4326_v37 = vadd.f32 -1.0, %v1975_v34  ;;  %v2250_v34 = vld [vmem:[#allocation8 + $0xd0] sm:$0xff] }
 0x86f   :  { %v1980_v40 = vmul.f32 %v4523_v32, %v4326_v37  ;;  %v2251_v32 = vld [vmem:[#allocation8 + $0xd8] sm:$0xff] }
 0x870   :  { %v2243_v37 = vld [vmem:[#allocation8 + $0x98] sm:$0xff] }
 0x871   :  { %v5375_v41 = vadd.f32 %v1980_v40, %v1979_v38  ;;  %v2240_v38 = vld [vmem:[#allocation8 + $0x80] sm:$0xff]  ;;  %v2242_v40 = vld [vmem:[#allocation8 + $0x90] sm:$0xff] }
 0x873   :  { %4524 = vtanh.f32 %v5375_v41 }
 0x880   :  { %v4525_v43 = vpop.eup %4524 }
 0x881   :  { %v1985_v45 = vmul.f32 %v4525_v43, %v1983_v42  ;;  %v2233_v42 = vld [vmem:[#allocation8 + $0x48] sm:$0xff]  ;;  %v2235_v43 = vld [vmem:[#allocation8 + $0x58] sm:$0xff] }
 0x883   :  { %1987 = vst [vmem:[#allocation3 + $0xc] sm:$0x3] %v1985_v45  ;;  %1989 = vst [vmem:[#allocation4 + $0x2] sm:$0x3] %v1985_v45  ;;  %v1991_v44 = vpack.c.bf16 %v1985_v45, %v1985_v45  ;;  %v2232_v45 = vld [vmem:[#allocation8 + $0x40] sm:$0xff] }
 0x885   :  { %2025 = vmatmul.mubr.bf16.vlgmr.msra.gmra.mxu1 %v1991_v44  ;;  %2066 = vmatmul.mubr.bf16.vlgmr.msra.gmra.mxu0 %v1991_v44  ;;  %v2234_v44 = vld [vmem:[#allocation8 + $0x50] sm:$0xff] }
 0x886   :  { %2481 = vmatpush1.msra.mxu1 %v2344_v13  ;;  %2558 = vmatpush1.msra.mxu0 %v2346_v14  ;;  %v2224_v13 = vld [vmem:[#allocation8] sm:$0xff]  ;;  %v2226_v14 = vld [vmem:[#allocation8 + $0x10] sm:$0xff] }
 0x887   :  { %2482 = vmatprep.subr.mxu1 %v2337_v15  ;;  %2559 = vmatprep.subr.mxu0 %v2339_v16  ;;  %v2473_v15 = vld [vmem:[#allocation8 + $0x7c8] sm:$0xff]  ;;  %v2475_v16 = vld [vmem:[#allocation8 + $0x7d8] sm:$0xff] }
 0x888   :  { %2483 = vmatpush1.msra.mxu1 %v2336_v17  ;;  %2560 = vmatpush1.msra.mxu0 %v2338_v57  ;;  %v2472_v17 = vld [vmem:[#allocation8 + $0x7c0] sm:$0xff]  ;;  %v2474_v57 = vld [vmem:[#allocation8 + $0x7d0] sm:$0xff] }
 0x889   :  { %2484 = vmatprep.subr.mxu1 %v2329_v9  ;;  %2561 = vmatprep.subr.mxu0 %v2331_v18  ;;  %v2465_v9 = vld [vmem:[#allocation8 + $0x788] sm:$0xff]  ;;  %v2467_v18 = vld [vmem:[#allocation8 + $0x798] sm:$0xff] }
 0x88a   :  { %2485 = vmatpush1.msra.mxu1 %v2328_v35  ;;  %2562 = vmatpush1.msra.mxu0 %v2330_v22  ;;  %v2464_v35 = vld [vmem:[#allocation8 + $0x780] sm:$0xff]  ;;  %v2466_v22 = vld [vmem:[#allocation8 + $0x790] sm:$0xff] }
 0x88b   :  { %2486 = vmatprep.subr.mxu1 %v2321_v11  ;;  %2563 = vmatprep.subr.mxu0 %v2323_v10  ;;  %v2457_v11 = vld [vmem:[#allocation8 + $0x748] sm:$0xff]  ;;  %v2459_v10 = vld [vmem:[#allocation8 + $0x758] sm:$0xff] }
 0x88c   :  { %2487 = vmatpush1.msra.mxu1 %v2320_v60  ;;  %2564 = vmatpush1.msra.mxu0 %v2322_v5  ;;  %v2456_v60 = vld [vmem:[#allocation8 + $0x740] sm:$0xff]  ;;  %v2458_v5 = vld [vmem:[#allocation8 + $0x750] sm:$0xff] }
 0x88d   :  { %2488 = vmatprep.subr.mxu1 %v2313_v55  ;;  %2565 = vmatprep.subr.mxu0 %v2315_v56  ;;  %v2449_v55 = vld [vmem:[#allocation8 + $0x708] sm:$0xff]  ;;  %v2451_v56 = vld [vmem:[#allocation8 + $0x718] sm:$0xff] }
 0x88e   :  { %2489 = vmatpush1.msra.mxu1 %v2312_v30  ;;  %2566 = vmatpush1.msra.mxu0 %v2314_v51  ;;  %v2448_v30 = vld [vmem:[#allocation8 + $0x700] sm:$0xff]  ;;  %v2450_v51 = vld [vmem:[#allocation8 + $0x710] sm:$0xff] }
 0x88f   :  { %2490 = vmatprep.subr.mxu1 %v2305_v3  ;;  %2567 = vmatprep.subr.mxu0 %v2307_v52  ;;  %v2441_v3 = vld [vmem:[#allocation8 + $0x6c8] sm:$0xff]  ;;  %v2443_v52 = vld [vmem:[#allocation8 + $0x6d8] sm:$0xff] }
 0x890   :  { %2491 = vmatpush1.msra.mxu1 %v2304_v63  ;;  %2568 = vmatpush1.msra.mxu0 %v2306_v2  ;;  %v2440_v63 = vld [vmem:[#allocation8 + $0x6c0] sm:$0xff]  ;;  %v2442_v2 = vld [vmem:[#allocation8 + $0x6d0] sm:$0xff] }
 0x891   :  { %2492 = vmatprep.subr.mxu1 %v2297_v46  ;;  %2569 = vmatprep.subr.mxu0 %v2299_v25  ;;  %v2433_v46 = vld [vmem:[#allocation8 + $0x688] sm:$0xff]  ;;  %v2435_v25 = vld [vmem:[#allocation8 + $0x698] sm:$0xff] }
 0x892   :  { %2493 = vmatpush1.msra.mxu1 %v2296_v49  ;;  %2570 = vmatpush1.msra.mxu0 %v2298_v4  ;;  %v2432_v49 = vld [vmem:[#allocation8 + $0x680] sm:$0xff]  ;;  %v2434_v4 = vld [vmem:[#allocation8 + $0x690] sm:$0xff] }
 0x893   :  { %2494 = vmatprep.subr.mxu1 %v2289_v61  ;;  %2571 = vmatprep.subr.mxu0 %v2291_v58  ;;  %v2425_v61 = vld [vmem:[#allocation8 + $0x648] sm:$0xff]  ;;  %v2427_v58 = vld [vmem:[#allocation8 + $0x658] sm:$0xff] }
 0x894   :  { %2495 = vmatpush1.msra.mxu1 %v2288_v8  ;;  %2572 = vmatpush1.msra.mxu0 %v2290_v31  ;;  %v2424_v8 = vld [vmem:[#allocation8 + $0x640] sm:$0xff]  ;;  %v2426_v31 = vld [vmem:[#allocation8 + $0x650] sm:$0xff] }
 0x895   :  { %2496 = vmatprep.subr.mxu1 %v2281_v50  ;;  %2573 = vmatprep.subr.mxu0 %v2283_v6  ;;  %v2417_v50 = vld [vmem:[#allocation8 + $0x608] sm:$0xff]  ;;  %v2419_v6 = vld [vmem:[#allocation8 + $0x618] sm:$0xff] }
 0x896   :  { %2497 = vmatpush1.msra.mxu1 %v2280_v7  ;;  %2574 = vmatpush1.msra.mxu0 %v2282_v62  ;;  %v2416_v7 = vld [vmem:[#allocation8 + $0x600] sm:$0xff]  ;;  %v2418_v62 = vld [vmem:[#allocation8 + $0x610] sm:$0xff] }
 0x897   :  { %2498 = vmatprep.subr.mxu1 %v2273_v1  ;;  %2575 = vmatprep.subr.mxu0 %v2275_v47  ;;  %v2409_v1 = vld [vmem:[#allocation8 + $0x5c8] sm:$0xff]  ;;  %v2411_v47 = vld [vmem:[#allocation8 + $0x5d8] sm:$0xff] }
 0x898   :  { %2499 = vmatpush1.msra.mxu1 %v2272_v59  ;;  %2576 = vmatpush1.msra.mxu0 %v2274_v19  ;;  %v2408_v59 = vld [vmem:[#allocation8 + $0x5c0] sm:$0xff]  ;;  %v2410_v19 = vld [vmem:[#allocation8 + $0x5d0] sm:$0xff] }
 0x899   :  { %2500 = vmatprep.subr.mxu1 %v2265_v20  ;;  %2577 = vmatprep.subr.mxu0 %v2267_v0  ;;  %v2401_v20 = vld [vmem:[#allocation8 + $0x588] sm:$0xff]  ;;  %v2403_v0 = vld [vmem:[#allocation8 + $0x598] sm:$0xff] }
 0x89a   :  { %2501 = vmatpush1.msra.mxu1 %v2264_v21  ;;  %2578 = vmatpush1.msra.mxu0 %v2266_v23  ;;  %v2400_v21 = vld [vmem:[#allocation8 + $0x580] sm:$0xff]  ;;  %v2402_v23 = vld [vmem:[#allocation8 + $0x590] sm:$0xff] }
 0x89b   :  { %2502 = vmatprep.subr.mxu1 %v2257_v24  ;;  %2579 = vmatprep.subr.mxu0 %v2259_v26  ;;  %v2393_v24 = vld [vmem:[#allocation8 + $0x548] sm:$0xff]  ;;  %v2395_v26 = vld [vmem:[#allocation8 + $0x558] sm:$0xff] }
 0x89c   :  { %2503 = vmatpush1.msra.mxu1 %v2256_v27  ;;  %2580 = vmatpush1.msra.mxu0 %v2258_v28  ;;  %v2392_v27 = vld [vmem:[#allocation8 + $0x540] sm:$0xff]  ;;  %v2394_v28 = vld [vmem:[#allocation8 + $0x550] sm:$0xff] }
 0x89d   :  { %2504 = vmatprep.subr.mxu1 %v2249_v29  ;;  %2581 = vmatprep.subr.mxu0 %v2251_v32  ;;  %v2385_v29 = vld [vmem:[#allocation8 + $0x508] sm:$0xff]  ;;  %v2387_v32 = vld [vmem:[#allocation8 + $0x518] sm:$0xff] }
 0x89e   :  { %2505 = vmatpush1.msra.mxu1 %v2248_v33  ;;  %2582 = vmatpush1.msra.mxu0 %v2250_v34  ;;  %v2384_v33 = vld [vmem:[#allocation8 + $0x500] sm:$0xff]  ;;  %v2386_v34 = vld [vmem:[#allocation8 + $0x510] sm:$0xff] }
 0x89f   :  { %2506 = vmatprep.subr.mxu1 %v2241_v36  ;;  %2583 = vmatprep.subr.mxu0 %v2243_v37  ;;  %v2377_v36 = vld [vmem:[#allocation8 + $0x4c8] sm:$0xff]  ;;  %v2379_v37 = vld [vmem:[#allocation8 + $0x4d8] sm:$0xff] }
 0x8a0   :  { %2507 = vmatpush1.msra.mxu1 %v2240_v38  ;;  %2584 = vmatpush1.msra.mxu0 %v2242_v40  ;;  %v2376_v38 = vld [vmem:[#allocation8 + $0x4c0] sm:$0xff]  ;;  %v2378_v40 = vld [vmem:[#allocation8 + $0x4d0] sm:$0xff] }
 0x8a1   :  { %2508 = vmatprep.subr.mxu1 %v2233_v42  ;;  %2585 = vmatprep.subr.mxu0 %v2235_v43  ;;  %v2369_v42 = vld [vmem:[#allocation8 + $0x488] sm:$0xff]  ;;  %v2371_v43 = vld [vmem:[#allocation8 + $0x498] sm:$0xff] }
 0x8a2   :  { %2509 = vmatpush1.msra.mxu1 %v2232_v45  ;;  %2586 = vmatpush1.msra.mxu0 %v2234_v44  ;;  %v2368_v45 = vld [vmem:[#allocation8 + $0x480] sm:$0xff]  ;;  %v2370_v44 = vld [vmem:[#allocation8 + $0x490] sm:$0xff] }
 0x8a3   :  { %2510 = vmatprep.subr.mxu1 %v2225_v53  ;;  %2587 = vmatprep.subr.mxu0 %v2227_v12  ;;  %v2361_v53 = vld [vmem:[#allocation8 + $0x448] sm:$0xff]  ;;  %v2363_v12 = vld [vmem:[#allocation8 + $0x458] sm:$0xff] }
 0x8a4   :  { %2511 = vmatpush1.msra.mxu1 %v2224_v13  ;;  %2588 = vmatpush1.msra.mxu0 %v2226_v14  ;;  %v2360_v13 = vld [vmem:[#allocation8 + $0x440] sm:$0xff]  ;;  %v2362_v14 = vld [vmem:[#allocation8 + $0x450] sm:$0xff] }
 0x8a5   :  { %2512 = vmatprep.subr.mxu1 %v2473_v15  ;;  %2589 = vmatprep.subr.mxu0 %v2475_v16  ;;  %v2353_v15 = vld [vmem:[#allocation8 + $0x408] sm:$0xff]  ;;  %v2355_v16 = vld [vmem:[#allocation8 + $0x418] sm:$0xff] }
 0x8a6   :  { %2513 = vmatpush2.msra.mxu1 %v2472_v17  ;;  %2590 = vmatpush2.msra.mxu0 %v2474_v57  ;;  %v2352_v17 = vld [vmem:[#allocation8 + $0x400] sm:$0xff]  ;;  %v2354_v57 = vld [vmem:[#allocation8 + $0x410] sm:$0xff] }
 0x8a7   :  { %2514 = vmatprep.subr.mxu1 %v2465_v9  ;;  %2591 = vmatprep.subr.mxu0 %v2467_v18  ;;  %v2349_v9 = vld [vmem:[#allocation8 + $0x3e8] sm:$0xff]  ;;  %v2351_v18 = vld [vmem:[#allocation8 + $0x3f8] sm:$0xff] }
 0x8a8   :  { %2515 = vmatpush2.msra.mxu1 %v2464_v35  ;;  %2592 = vmatpush2.msra.mxu0 %v2466_v22 }
 0x8a9   :  { %2516 = vmatprep.subr.mxu1 %v2457_v11  ;;  %2593 = vmatprep.subr.mxu0 %v2459_v10 }
 0x8aa   :  { %2517 = vmatpush2.msra.mxu1 %v2456_v60  ;;  %2594 = vmatpush2.msra.mxu0 %v2458_v5 }
 0x8ab   :  { %2518 = vmatprep.subr.mxu1 %v2449_v55  ;;  %2595 = vmatprep.subr.mxu0 %v2451_v56 }
 0x8ac   :  { %2519 = vmatpush2.msra.mxu1 %v2448_v30  ;;  %2596 = vmatpush2.msra.mxu0 %v2450_v51 }
 0x8ad   :  { %2520 = vmatprep.subr.mxu1 %v2441_v3  ;;  %2597 = vmatprep.subr.mxu0 %v2443_v52 }
 0x8ae   :  { %2521 = vmatpush2.msra.mxu1 %v2440_v63  ;;  %2598 = vmatpush2.msra.mxu0 %v2442_v2 }
 0x8af   :  { %2522 = vmatprep.subr.mxu1 %v2433_v46  ;;  %2599 = vmatprep.subr.mxu0 %v2435_v25 }
 0x8b0   :  { %2523 = vmatpush2.msra.mxu1 %v2432_v49  ;;  %2600 = vmatpush2.msra.mxu0 %v2434_v4 }
 0x8b1   :  { %2524 = vmatprep.subr.mxu1 %v2425_v61  ;;  %2601 = vmatprep.subr.mxu0 %v2427_v58 }
 0x8b2   :  { %2525 = vmatpush2.msra.mxu1 %v2424_v8  ;;  %2602 = vmatpush2.msra.mxu0 %v2426_v31 }
 0x8b3   :  { %2526 = vmatprep.subr.mxu1 %v2417_v50  ;;  %2603 = vmatprep.subr.mxu0 %v2419_v6 }
 0x8b4   :  { %2527 = vmatpush2.msra.mxu1 %v2416_v7  ;;  %2604 = vmatpush2.msra.mxu0 %v2418_v62 }
 0x8b5   :  { %2528 = vmatprep.subr.mxu1 %v2409_v1  ;;  %2605 = vmatprep.subr.mxu0 %v2411_v47 }
 0x8b6   :  { %2529 = vmatpush2.msra.mxu1 %v2408_v59  ;;  %2606 = vmatpush2.msra.mxu0 %v2410_v19  ;;  %v2130_v59 = vld [vmem:[#allocation4 + $0x4] sm:$0x3]  ;;  %v2121_v19 = vld [vmem:[#allocation3 + $0x2] sm:$0x3] }
 0x8b7   :  { %2530 = vmatprep.subr.mxu1 %v2401_v20  ;;  %2607 = vmatprep.subr.mxu0 %v2403_v0  ;;  %v2122_v20 = vld [vmem:[#allocation3 + $0x4] sm:$0x3]  ;;  %v2132_v0 = vld [vmem:[#allocation4 + $0x8] sm:$0x3] }
 0x8b8   :  { %2531 = vmatpush2.msra.mxu1 %v2400_v21  ;;  %2608 = vmatpush2.msra.mxu0 %v2402_v23  ;;  %v2131_v21 = vld [vmem:[#allocation4 + $0x6] sm:$0x3] }
 0x8b9   :  { %2532 = vmatprep.subr.mxu1 %v2393_v24  ;;  %2609 = vmatprep.subr.mxu0 %v2395_v26  ;;  %v2189_v24 = vcombine.low %v2130_v59, %v2131_v21  ;;  %v2120_v26 = vld [vmem:[#allocation3] sm:$0x3]  ;;  %v2295_v59 = vld [vmem:[#allocation8 + $0x238] sm:$0xff] }
 0x8ba   :  { %2533 = vmatpush2.msra.mxu1 %v2392_v27  ;;  %2610 = vmatpush2.msra.mxu0 %v2394_v28  ;;  %v2133_v27 = vld [vmem:[#allocation4 + $0xa] sm:$0x3]  ;;  %v2134_v28 = vld [vmem:[#allocation4 + $0xc] sm:$0x3] }
 0x8bb   :  { %2534 = vmatprep.subr.mxu1 %v2385_v29  ;;  %2611 = vmatprep.subr.mxu0 %v2387_v32  ;;  %v2129_v29 = vld [vmem:[#allocation4 + $0x2] sm:$0x3]  ;;  %v2144_v32 = vcombine.low %v2120_v26, %v2121_v19  ;;  %v2292_v19 = vld [vmem:[#allocation8 + $0x220] sm:$0xff]  ;;  %v2287_v21 = vld [vmem:[#allocation8 + $0x1f8] sm:$0xff] }
 0x8bc   :  { %2535 = vmatpush2.msra.mxu1 %v2384_v33  ;;  %2612 = vmatpush2.msra.mxu0 %v2386_v34  ;;  %v2205_v33 = vcombine.low %v2132_v0, %v2133_v27  ;;  %v2285_v0 = vld [vmem:[#allocation8 + $0x1e8] sm:$0xff]  ;;  %v2279_v27 = vld [vmem:[#allocation8 + $0x1b8] sm:$0xff] }
 0x8bd   :  { %2536 = vmatprep.subr.mxu1 %v2377_v36  ;;  %2613 = vmatprep.subr.mxu0 %v2379_v37  ;;  %v2135_v36 = vld [vmem:[#allocation4 + $0xe] sm:$0x3]  ;;  %v2277_v26 = vld [vmem:[#allocation8 + $0x1a8] sm:$0xff] }
 0x8be   :  { %2537 = vmatpush2.msra.mxu1 %v2376_v38  ;;  %2614 = vmatpush2.msra.mxu0 %v2378_v40  ;;  %v2206_v40 = vcombine.low %v2134_v28, %v2135_v36  ;;  %v2276_v28 = vld [vmem:[#allocation8 + $0x1a0] sm:$0xff]  ;;  %v2261_v36 = vld [vmem:[#allocation8 + $0x128] sm:$0xff] }
 0x8bf   :  { %2538 = vmatprep.subr.mxu1 %v2369_v42  ;;  %2615 = vmatprep.subr.mxu0 %v2371_v43  ;;  %v2203_v43 = vrot.slane %v2189_v24, %v5069_v54  ;;  %v2286_v24 = vld [vmem:[#allocation8 + $0x1f0] sm:$0xff] }
 0x8c0   :  { %2539 = vmatpush2.msra.mxu1 %v2368_v45  ;;  %2616 = vmatpush2.msra.mxu0 %v2370_v44  ;;  %v2125_v45 = vld [vmem:[#allocation3 + $0xa] sm:$0x3]  ;;  %v2126_v44 = vld [vmem:[#allocation3 + $0xc] sm:$0x3] }
 0x8c1   :  { %2540 = vmatprep.subr.mxu1 %v2361_v53  ;;  %2617 = vmatprep.subr.mxu0 %v2363_v12  ;;  %v2152_v53 = vrot.slane %v2144_v32, %v5069_v54  ;;  %v2213_v12 = vrot.slane %v2205_v33, %v5069_v54  ;;  %v2271_v32 = vld [vmem:[#allocation8 + $0x178] sm:$0xff]  ;;  %v2268_v33 = vld [vmem:[#allocation8 + $0x160] sm:$0xff] }
 0x8c2   :  { %2541 = vmatpush2.msra.mxu1 %v2360_v13  ;;  %2618 = vmatpush2.msra.mxu0 %v2362_v14 }
 0x8c3   :  { %2542 = vmatprep.subr.mxu1 %v2353_v15  ;;  %2619 = vmatprep.subr.mxu0 %v2355_v16  ;;  %v2124_v15 = vld [vmem:[#allocation3 + $0x8] sm:$0x3] }
 0x8c4   :  { %2543 = vmatpush2.msra.mxu1 %v2352_v17  ;;  %2620 = vmatpush2.msra.mxu0 %v2354_v57  ;;  %v2348_v17 = vld [vmem:[#allocation8 + $0x3e0] sm:$0xff]  ;;  %v2350_v57 = vld [vmem:[#allocation8 + $0x3f0] sm:$0xff] }
 0x8c5   :  { %2634 = vmatprep.subr.mxu1 %v2349_v9  ;;  %2711 = vmatprep.subr.mxu0 %v2351_v18  ;;  %v2220_v9 = vrot.slane %v2206_v40, %v5069_v54  ;;  %v2161_v18 = vcombine.low %v2124_v15, %v2125_v45  ;;  %v2262_v40 = vld [vmem:[#allocation8 + $0x130] sm:$0xff]  ;;  %v2252_v45 = vld [vmem:[#allocation8 + $0xe0] sm:$0xff]  ;;  %v2237_v15 = vld [vmem:[#allocation8 + $0x68] sm:$0xff] }
 0x945   :  { %v2026_v35 = vpop.f32.mrf.mxu1  ;;  %v2067_v22 = vpop.f32.mrf.mxu0 }
 0x947   :  { %v2028_v11 = vpop.f32.mrf.mxu1  ;;  %v2069_v10 = vpop.f32.mrf.mxu0 }
 0x948   :  { %v2078_v60 = vcombine.low %v2026_v35, %v2028_v11  ;;  %v2079_v5 = vcombine.low %v2067_v22, %v2069_v10  ;;  %v5392_v35 = vcombine.low %v2213_v12, %v2220_v9  ;;  %v2341_v22 = vld [vmem:[#allocation8 + $0x3a8] sm:$0xff]  ;;  %v2343_v11 = vld [vmem:[#allocation8 + $0x3b8] sm:$0xff]  ;;  %v2238_v9 = vld [vmem:[#allocation8 + $0x70] sm:$0xff] }
 0x949   :  { %v2030_v55 = vpop.f32.mrf.mxu1  ;;  %v2071_v56 = vpop.f32.mrf.mxu0  ;;  %v2247_v12 = vld [vmem:[#allocation8 + $0xb8] sm:$0xff] }
 0x94a   :  { %v2086_v30 = vrot.slane %v2078_v60, %v5069_v54  ;;  %v2093_v51 = vrot.slane %v2079_v5, %v5069_v54  ;;  %v2340_v60 = vld [vmem:[#allocation8 + $0x3a0] sm:$0xff]  ;;  %v2342_v5 = vld [vmem:[#allocation8 + $0x3b0] sm:$0xff]  ;;  %v2333_v55 = vld [vmem:[#allocation8 + $0x368] sm:$0xff] }
 0x94b   :  { %v2031_v3 = vpop.f32.mrf.mxu1  ;;  %v2072_v52 = vpop.f32.mrf.mxu0  ;;  %v2335_v56 = vld [vmem:[#allocation8 + $0x378] sm:$0xff] }
 0x94c   :  { %v2094_v63 = vcombine.low %v2086_v30, %v2093_v51  ;;  %v2169_v30 = vrot.slane %v2161_v18, %v5069_v54  ;;  %v2332_v3 = vld [vmem:[#allocation8 + $0x360] sm:$0xff]  ;;  %v2334_v52 = vld [vmem:[#allocation8 + $0x370] sm:$0xff]  ;;  %v2229_v18 = vld [vmem:[#allocation8 + $0x28] sm:$0xff] }
 0x94e   :  { %v2096_v2 = vadd.f32 %v2094_v63, %v5118_v48  ;;  %v2123_v48 = vld [vmem:[#allocation3 + $0x6] sm:$0x3]  ;;  %v2325_v63 = vld [vmem:[#allocation8 + $0x328] sm:$0xff] }
 0x94f   :  { %v2145_v23 = vcombine.low %v2122_v20, %v2123_v48  ;;  %v2293_v48 = vld [vmem:[#allocation8 + $0x228] sm:$0xff]  ;;  %v2294_v20 = vld [vmem:[#allocation8 + $0x230] sm:$0xff] }
 0x950   :  { %v4327_v46 = vmul.f32 -1.442695, %v2096_v2  ;;  %v2327_v2 = vld [vmem:[#allocation8 + $0x338] sm:$0xff] }
 0x951   :  { %v2159_v38 = vrot.slane %v2145_v23, %v5069_v54  ;;  %v2284_v23 = vld [vmem:[#allocation8 + $0x1e0] sm:$0xff] }
 0x952   :  { %4526 = vpow2.f32 %v4327_v46  ;;  %v2324_v46 = vld [vmem:[#allocation8 + $0x320] sm:$0xff] }
 0x953   :  { %v5387_v16 = vcombine.low %v2152_v53, %v2159_v38  ;;  %v2260_v38 = vld [vmem:[#allocation8 + $0x120] sm:$0xff]  ;;  %v2245_v53 = vld [vmem:[#allocation8 + $0xa8] sm:$0xff] }
 0x95f   :  { %v4527_v25 = vpop.eup %4526 }
 0x960   :  { %v2100_v49 = vadd.f32 1.0, %v4527_v25  ;;  %v2326_v25 = vld [vmem:[#allocation8 + $0x330] sm:$0xff] }
 0x962   :  { %4528 = vrcp.f32 %v2100_v49  ;;  %v2317_v49 = vld [vmem:[#allocation8 + $0x2e8] sm:$0xff] }
 0x96f   :  { %v4529_v4 = vpop.eup %4528 }
 0x970   :  { %v2104_v61 = vrot.slane %v4529_v4, 4  ;;  %v2108_v8 = vrot.slane %v4529_v4, 2  ;;  %v2114_v62 = vrot.slane %v4529_v4, 6 }
 0x972   :  { %v2106_v58 = vmul.f32 2.0, %v2104_v61  ;;  %v2110_v50 = vmul.f32 %v2108_v8, %v5375_v41  ;;  %v2316_v61 = vld [vmem:[#allocation8 + $0x2e0] sm:$0xff]  ;;  %v2309_v8 = vld [vmem:[#allocation8 + $0x2a8] sm:$0xff] }
 0x974   :  { %v4328_v31 = vadd.f32 -1.0, %v2106_v58  ;;  %v2318_v58 = vld [vmem:[#allocation8 + $0x2f0] sm:$0xff] }
 0x976   :  { %v2111_v6 = vmul.f32 %v4529_v4, %v4328_v31  ;;  %v2319_v4 = vld [vmem:[#allocation8 + $0x2f8] sm:$0xff] }
 0x977   :  { %v2311_v31 = vld [vmem:[#allocation8 + $0x2b8] sm:$0xff] }
 0x978   :  { %v2112_v7 = vadd.f32 %v2111_v6, %v2110_v50  ;;  %v2308_v50 = vld [vmem:[#allocation8 + $0x2a0] sm:$0xff]  ;;  %v2310_v6 = vld [vmem:[#allocation8 + $0x2b0] sm:$0xff] }
 0x97a   :  { %4530 = vtanh.f32 %v2112_v7  ;;  %v2301_v7 = vld [vmem:[#allocation8 + $0x268] sm:$0xff] }
 0x987   :  { %v4531_v1 = vpop.eup %4530 }
 0x988   :  { %v2116_v47 = vmul.f32 %v4531_v1, %v2114_v62  ;;  %v2303_v62 = vld [vmem:[#allocation8 + $0x278] sm:$0xff]  ;;  %v2300_v1 = vld [vmem:[#allocation8 + $0x260] sm:$0xff] }
 0x98a   :  { %2119 = vst [vmem:[#allocation4] sm:$0x3] %v2116_v47  ;;  %2118 = vst [vmem:[#allocation3 + $0xe] sm:$0x3] %v2116_v47  ;;  %v2302_v47 = vld [vmem:[#allocation8 + $0x270] sm:$0xff] }
 0x991   :  { %v2128_v41 = vld [vmem:[#allocation4] sm:$0x3]  ;;  %v2127_v37 = vld [vmem:[#allocation3 + $0xe] sm:$0x3] }
 0x992   :  { %v2188_v34 = vcombine.low %v2128_v41, %v2129_v29  ;;  %v2162_v13 = vcombine.low %v2126_v44, %v2127_v37  ;;  %v2278_v41 = vld [vmem:[#allocation8 + $0x1b0] sm:$0xff]  ;;  %v2269_v29 = vld [vmem:[#allocation8 + $0x168] sm:$0xff]  ;;  %v2263_v37 = vld [vmem:[#allocation8 + $0x138] sm:$0xff] }
 0x993   :  { %v2254_v44 = vld [vmem:[#allocation8 + $0xf0] sm:$0xff] }
 0x994   :  { %v2196_v42 = vrot.slane %v2188_v34, %v5069_v54  ;;  %v2176_v10 = vrot.slane %v2162_v13, %v5069_v54  ;;  %v2270_v34 = vld [vmem:[#allocation8 + $0x170] sm:$0xff]  ;;  %v2244_v13 = vld [vmem:[#allocation8 + $0xa0] sm:$0xff] }
 0x996   :  { %v2204_v14 = vcombine.low %v2196_v42, %v2203_v43  ;;  %v5398_v51 = vcombine.low %v2169_v30, %v2176_v10  ;;  %v2253_v42 = vld [vmem:[#allocation8 + $0xe8] sm:$0xff]  ;;  %v2255_v43 = vld [vmem:[#allocation8 + $0xf8] sm:$0xff]  ;;  %v2230_v10 = vld [vmem:[#allocation8 + $0x30] sm:$0xff] }
 0x997   :  { %v2469_v30 = vld [vmem:[#allocation8 + $0x7a8] sm:$0xff] }
 0x998   :  { %2544 = vmatprep.mubr.f32.mxu1 %v2204_v14  ;;  %2621 = vmatprep.mubr.f32.mxu0 %v2204_v14 }
 0x999   :  { %2545 = vmatmul.mubr.f32.vlgmr.msra.gmra.mxu1 %v5387_v16  ;;  %2622 = vmatmul.mubr.f32.vlgmr.msra.gmra.mxu0 %v5387_v16 }
 0x99a   :  { %2635 = vmatpush1.msra.mxu1 %v2348_v17  ;;  %2712 = vmatpush1.msra.mxu0 %v2350_v57  ;;  %v2239_v17 = vld [vmem:[#allocation8 + $0x78] sm:$0xff]  ;;  %v2236_v57 = vld [vmem:[#allocation8 + $0x60] sm:$0xff] }
 0x99b   :  { %2550 = vmatprep.mubr.f32.mxu1 %v5392_v35  ;;  %2627 = vmatprep.mubr.f32.mxu0 %v5392_v35 }
 0x99c   :  { %2636 = vmatprep.subr.mxu1 %v2341_v22  ;;  %2713 = vmatprep.subr.mxu0 %v2343_v11  ;;  %v2231_v22 = vld [vmem:[#allocation8 + $0x38] sm:$0xff]  ;;  %v2228_v11 = vld [vmem:[#allocation8 + $0x20] sm:$0xff] }
 0x99d   :  { %2637 = vmatpush1.msra.mxu1 %v2340_v60  ;;  %2714 = vmatpush1.msra.mxu0 %v2342_v5  ;;  %v2477_v60 = vld [vmem:[#allocation8 + $0x7e8] sm:$0xff]  ;;  %v2479_v5 = vld [vmem:[#allocation8 + $0x7f8] sm:$0xff] }
 0x99e   :  { %2638 = vmatprep.subr.mxu1 %v2333_v55  ;;  %2715 = vmatprep.subr.mxu0 %v2335_v56  ;;  %v2476_v55 = vld [vmem:[#allocation8 + $0x7e0] sm:$0xff]  ;;  %v2478_v56 = vld [vmem:[#allocation8 + $0x7f0] sm:$0xff] }
 0x99f   :  { %2551 = vmatmul.mubr.f32.gmra.mxu1 %v5398_v51  ;;  %2628 = vmatmul.mubr.f32.gmra.mxu0 %v5398_v51 }
 0x9a0   :  { %2639 = vmatpush1.msra.mxu1 %v2332_v3  ;;  %2716 = vmatpush1.msra.mxu0 %v2334_v52  ;;  %v2471_v3 = vld [vmem:[#allocation8 + $0x7b8] sm:$0xff]  ;;  %v2468_v52 = vld [vmem:[#allocation8 + $0x7a0] sm:$0xff] }
 0x9a1   :  { %2640 = vmatprep.subr.mxu1 %v2325_v63  ;;  %2698 = vmatprep.mubr.f32.mxu1 %v2204_v14  ;;  %v2470_v63 = vld [vmem:[#allocation8 + $0x7b0] sm:$0xff] }
 0x9a2   :  { %2717 = vmatprep.subr.mxu0 %v2327_v2  ;;  %2775 = vmatprep.mubr.f32.mxu0 %v2204_v14  ;;  %v2246_v14 = vld [vmem:[#allocation8 + $0xb0] sm:$0xff]  ;;  %v2461_v2 = vld [vmem:[#allocation8 + $0x768] sm:$0xff] }
 0x9a3   :  { %2641 = vmatpush1.msra.mxu1 %v2324_v46  ;;  %2718 = vmatpush1.msra.mxu0 %v2326_v25  ;;  %v2463_v46 = vld [vmem:[#allocation8 + $0x778] sm:$0xff]  ;;  %v2460_v25 = vld [vmem:[#allocation8 + $0x760] sm:$0xff] }
 0x9a4   :  { %2642 = vmatprep.subr.mxu1 %v2317_v49  ;;  %2719 = vmatprep.subr.mxu0 %v2319_v4  ;;  %v2462_v49 = vld [vmem:[#allocation8 + $0x770] sm:$0xff]  ;;  %v2453_v4 = vld [vmem:[#allocation8 + $0x728] sm:$0xff] }
 0x9a5   :  { %2643 = vmatpush1.msra.mxu1 %v2316_v61  ;;  %2720 = vmatpush1.msra.mxu0 %v2318_v58  ;;  %v2455_v61 = vld [vmem:[#allocation8 + $0x738] sm:$0xff]  ;;  %v2452_v58 = vld [vmem:[#allocation8 + $0x720] sm:$0xff] }
 0x9a6   :  { %2644 = vmatprep.subr.mxu1 %v2309_v8  ;;  %2721 = vmatprep.subr.mxu0 %v2311_v31  ;;  %v2454_v8 = vld [vmem:[#allocation8 + $0x730] sm:$0xff]  ;;  %v2445_v31 = vld [vmem:[#allocation8 + $0x6e8] sm:$0xff] }
 0x9a7   :  { %2645 = vmatpush1.msra.mxu1 %v2308_v50  ;;  %2722 = vmatpush1.msra.mxu0 %v2310_v6  ;;  %v2447_v50 = vld [vmem:[#allocation8 + $0x6f8] sm:$0xff]  ;;  %v2444_v6 = vld [vmem:[#allocation8 + $0x6e0] sm:$0xff] }
 0x9a8   :  { %2646 = vmatprep.subr.mxu1 %v2301_v7  ;;  %2723 = vmatprep.subr.mxu0 %v2303_v62  ;;  %v2446_v7 = vld [vmem:[#allocation8 + $0x6f0] sm:$0xff]  ;;  %v2437_v62 = vld [vmem:[#allocation8 + $0x6a8] sm:$0xff] }
 0x9a9   :  { %2647 = vmatpush1.msra.mxu1 %v2300_v1  ;;  %2724 = vmatpush1.msra.mxu0 %v2302_v47  ;;  %v2439_v1 = vld [vmem:[#allocation8 + $0x6b8] sm:$0xff]  ;;  %v2436_v47 = vld [vmem:[#allocation8 + $0x6a0] sm:$0xff] }
 0x9aa   :  { %2648 = vmatprep.subr.mxu1 %v2293_v48  ;;  %2725 = vmatprep.subr.mxu0 %v2295_v59  ;;  %v2438_v48 = vld [vmem:[#allocation8 + $0x6b0] sm:$0xff]  ;;  %v2429_v59 = vld [vmem:[#allocation8 + $0x668] sm:$0xff] }
 0x9ab   :  { %2649 = vmatpush1.msra.mxu1 %v2292_v19  ;;  %2726 = vmatpush1.msra.mxu0 %v2294_v20  ;;  %v2431_v19 = vld [vmem:[#allocation8 + $0x678] sm:$0xff]  ;;  %v2428_v20 = vld [vmem:[#allocation8 + $0x660] sm:$0xff] }
 0x9ac   :  { %2650 = vmatprep.subr.mxu1 %v2285_v0  ;;  %2727 = vmatprep.subr.mxu0 %v2287_v21  ;;  %v2430_v0 = vld [vmem:[#allocation8 + $0x670] sm:$0xff]  ;;  %v2421_v21 = vld [vmem:[#allocation8 + $0x628] sm:$0xff] }
 0x9ad   :  { %2651 = vmatpush1.msra.mxu1 %v2284_v23  ;;  %2728 = vmatpush1.msra.mxu0 %v2286_v24  ;;  %v2423_v23 = vld [vmem:[#allocation8 + $0x638] sm:$0xff]  ;;  %v2420_v24 = vld [vmem:[#allocation8 + $0x620] sm:$0xff] }
 0x9ae   :  { %2652 = vmatprep.subr.mxu1 %v2277_v26  ;;  %2729 = vmatprep.subr.mxu0 %v2279_v27  ;;  %v2422_v26 = vld [vmem:[#allocation8 + $0x630] sm:$0xff]  ;;  %v2413_v27 = vld [vmem:[#allocation8 + $0x5e8] sm:$0xff] }
 0x9af   :  { %2653 = vmatpush1.msra.mxu1 %v2276_v28  ;;  %2730 = vmatpush1.msra.mxu0 %v2278_v41  ;;  %v2415_v28 = vld [vmem:[#allocation8 + $0x5f8] sm:$0xff]  ;;  %v2412_v41 = vld [vmem:[#allocation8 + $0x5e0] sm:$0xff] }
 0x9b0   :  { %2654 = vmatprep.subr.mxu1 %v2269_v29  ;;  %2731 = vmatprep.subr.mxu0 %v2271_v32  ;;  %v2414_v29 = vld [vmem:[#allocation8 + $0x5f0] sm:$0xff]  ;;  %v2405_v32 = vld [vmem:[#allocation8 + $0x5a8] sm:$0xff] }
 0x9b1   :  { %2655 = vmatpush1.msra.mxu1 %v2268_v33  ;;  %2732 = vmatpush1.msra.mxu0 %v2270_v34  ;;  %v2407_v33 = vld [vmem:[#allocation8 + $0x5b8] sm:$0xff]  ;;  %v2404_v34 = vld [vmem:[#allocation8 + $0x5a0] sm:$0xff] }
 0x9b2   :  { %2656 = vmatprep.subr.mxu1 %v2261_v36  ;;  %2733 = vmatprep.subr.mxu0 %v2263_v37  ;;  %v2406_v36 = vld [vmem:[#allocation8 + $0x5b0] sm:$0xff]  ;;  %v2397_v37 = vld [vmem:[#allocation8 + $0x568] sm:$0xff] }
 0x9b3   :  { %2657 = vmatpush1.msra.mxu1 %v2260_v38  ;;  %2734 = vmatpush1.msra.mxu0 %v2262_v40  ;;  %v2399_v38 = vld [vmem:[#allocation8 + $0x578] sm:$0xff]  ;;  %v2396_v40 = vld [vmem:[#allocation8 + $0x560] sm:$0xff] }
 0x9b4   :  { %2658 = vmatprep.subr.mxu1 %v2253_v42  ;;  %2735 = vmatprep.subr.mxu0 %v2255_v43  ;;  %v2398_v42 = vld [vmem:[#allocation8 + $0x570] sm:$0xff]  ;;  %v2389_v43 = vld [vmem:[#allocation8 + $0x528] sm:$0xff] }
 0x9b5   :  { %2659 = vmatpush1.msra.mxu1 %v2252_v45  ;;  %2736 = vmatpush1.msra.mxu0 %v2254_v44  ;;  %v2391_v45 = vld [vmem:[#allocation8 + $0x538] sm:$0xff]  ;;  %v2388_v44 = vld [vmem:[#allocation8 + $0x520] sm:$0xff] }
 0x9b6   :  { %2660 = vmatprep.subr.mxu1 %v2245_v53  ;;  %2737 = vmatprep.subr.mxu0 %v2247_v12  ;;  %v2390_v53 = vld [vmem:[#allocation8 + $0x530] sm:$0xff]  ;;  %v2381_v12 = vld [vmem:[#allocation8 + $0x4e8] sm:$0xff] }
 0x9b7   :  { %2661 = vmatpush1.msra.mxu1 %v2244_v13  ;;  %2738 = vmatpush1.msra.mxu0 %v2246_v14  ;;  %v2383_v13 = vld [vmem:[#allocation8 + $0x4f8] sm:$0xff]  ;;  %v2380_v14 = vld [vmem:[#allocation8 + $0x4e0] sm:$0xff] }
 0x9b8   :  { %2662 = vmatprep.subr.mxu1 %v2237_v15  ;;  %2739 = vmatprep.subr.mxu0 %v2239_v17  ;;  %v2382_v15 = vld [vmem:[#allocation8 + $0x4f0] sm:$0xff]  ;;  %v2373_v17 = vld [vmem:[#allocation8 + $0x4a8] sm:$0xff] }
 0x9b9   :  { %2663 = vmatpush1.msra.mxu1 %v2236_v57  ;;  %2740 = vmatpush1.msra.mxu0 %v2238_v9  ;;  %v2375_v57 = vld [vmem:[#allocation8 + $0x4b8] sm:$0xff]  ;;  %v2372_v9 = vld [vmem:[#allocation8 + $0x4a0] sm:$0xff] }
 0x9ba   :  { %2664 = vmatprep.subr.mxu1 %v2229_v18  ;;  %2741 = vmatprep.subr.mxu0 %v2231_v22  ;;  %v2374_v18 = vld [vmem:[#allocation8 + $0x4b0] sm:$0xff]  ;;  %v2365_v22 = vld [vmem:[#allocation8 + $0x468] sm:$0xff] }
 0x9bb   :  { %2665 = vmatpush1.msra.mxu1 %v2228_v11  ;;  %2742 = vmatpush1.msra.mxu0 %v2230_v10  ;;  %v2367_v11 = vld [vmem:[#allocation8 + $0x478] sm:$0xff]  ;;  %v2364_v10 = vld [vmem:[#allocation8 + $0x460] sm:$0xff] }
 0x9bc   :  { %2666 = vmatprep.subr.mxu1 %v2477_v60  ;;  %2743 = vmatprep.subr.mxu0 %v2479_v5  ;;  %v2366_v60 = vld [vmem:[#allocation8 + $0x470] sm:$0xff]  ;;  %v2357_v5 = vld [vmem:[#allocation8 + $0x428] sm:$0xff] }
 0x9bd   :  { %2667 = vmatpush2.msra.mxu1 %v2476_v55  ;;  %2744 = vmatpush2.msra.mxu0 %v2478_v56  ;;  %v2359_v55 = vld [vmem:[#allocation8 + $0x438] sm:$0xff]  ;;  %v2356_v56 = vld [vmem:[#allocation8 + $0x420] sm:$0xff] }
 0x9be   :  { %2668 = vmatprep.subr.mxu1 %v2469_v30  ;;  %2745 = vmatprep.subr.mxu0 %v2471_v3  ;;  %v2358_v30 = vld [vmem:[#allocation8 + $0x430] sm:$0xff] }
 0x9bf   :  { %2669 = vmatpush2.msra.mxu1 %v2468_v52  ;;  %2746 = vmatpush2.msra.mxu0 %v2470_v63  ;;  %v5402_v3 = vld [vmem:[#allocation10 + $0x1e4] ss:$16 sps:$4 sm:$0xff]   ;;  %v5404_v52 = vld [vmem:[#allocation10 + $0x1ec] ss:$16 sps:$4 sm:$0xff]   ;;  %v5406_v63 = vld [vmem:[#allocation10 + $0x1e0] ss:$16 sps:$4 sm:$0xff]  }
 0x9c0   :  { %2670 = vmatprep.subr.mxu1 %v2461_v2  ;;  %2747 = vmatprep.subr.mxu0 %v2463_v46  ;;  %5883 = vst [vmem:[#allocation19_spill] sm:$0xff] %v5402_v3  ;;  %5884 = vst [vmem:[#allocation17_spill] sm:$0xff] %v5404_v52  ;;  %v5408_v2 = vld [vmem:[#allocation10 + $0x1e8] ss:$16 sps:$4 sm:$0xff]   ;;  %v5414_v46 = vld [vmem:[#allocation10 + $0x1c4] ss:$16 sps:$4 sm:$0xff]  }
 0x9c1   :  { %2671 = vmatpush2.msra.mxu1 %v2460_v25  ;;  %2748 = vmatpush2.msra.mxu0 %v2462_v49  ;;  %v5416_v25 = vld [vmem:[#allocation10 + $0x1cc] ss:$16 sps:$4 sm:$0xff]   ;;  %v5422_v49 = vld [vmem:[#allocation10 + $0x1c0] ss:$16 sps:$4 sm:$0xff]  }
 0x9c2   :  { %2672 = vmatprep.subr.mxu1 %v2453_v4  ;;  %2749 = vmatprep.subr.mxu0 %v2455_v61  ;;  %v5424_v4 = vld [vmem:[#allocation10 + $0x1c8] ss:$16 sps:$4 sm:$0xff]   ;;  %v5430_v61 = vld [vmem:[#allocation10 + $0x1ac] ss:$16 sps:$4 sm:$0xff]  }
 0x9c3   :  { %2673 = vmatpush2.msra.mxu1 %v2452_v58  ;;  %2750 = vmatpush2.msra.mxu0 %v2454_v8  ;;  %v5440_v58 = vld [vmem:[#allocation10 + $0x1a8] ss:$16 sps:$4 sm:$0xff]   ;;  %v5446_v8 = vld [vmem:[#allocation10 + $0x18c] ss:$16 sps:$4 sm:$0xff]  }
 0x9c4   :  { %2674 = vmatprep.subr.mxu1 %v2445_v31  ;;  %2751 = vmatprep.subr.mxu0 %v2447_v50  ;;  %v5450_v31 = vld [vmem:[#allocation10 + $0x180] ss:$16 sps:$4 sm:$0xff]   ;;  %v5452_v50 = vld [vmem:[#allocation10 + $0x188] ss:$16 sps:$4 sm:$0xff]  }
 0x9c5   :  { %2675 = vmatpush2.msra.mxu1 %v2444_v6  ;;  %2752 = vmatpush2.msra.mxu0 %v2446_v7  ;;  %v5456_v6 = vld [vmem:[#allocation10 + $0x164] ss:$16 sps:$4 sm:$0xff]   ;;  %v5458_v7 = vld [vmem:[#allocation10 + $0x16c] ss:$16 sps:$4 sm:$0xff]  }
 0x9c6   :  { %2676 = vmatprep.subr.mxu1 %v2437_v62  ;;  %2753 = vmatprep.subr.mxu0 %v2439_v1  ;;  %v5462_v62 = vld [vmem:[#allocation10 + $0x160] ss:$16 sps:$4 sm:$0xff]   ;;  %v5464_v1 = vld [vmem:[#allocation10 + $0x168] ss:$16 sps:$4 sm:$0xff]  }
 0x9c7   :  { %2677 = vmatpush2.msra.mxu1 %v2436_v47  ;;  %2754 = vmatpush2.msra.mxu0 %v2438_v48  ;;  %v5468_v47 = vld [vmem:[#allocation10 + $0x144] ss:$16 sps:$4 sm:$0xff]   ;;  %v5470_v48 = vld [vmem:[#allocation10 + $0x14c] ss:$16 sps:$4 sm:$0xff]  }
 0x9c8   :  { %2678 = vmatprep.subr.mxu1 %v2429_v59  ;;  %2755 = vmatprep.subr.mxu0 %v2431_v19  ;;  %v5474_v59 = vld [vmem:[#allocation10 + $0x140] ss:$16 sps:$4 sm:$0xff]   ;;  %v5476_v19 = vld [vmem:[#allocation10 + $0x148] ss:$16 sps:$4 sm:$0xff]  }
 0x9c9   :  { %2679 = vmatpush2.msra.mxu1 %v2428_v20  ;;  %2756 = vmatpush2.msra.mxu0 %v2430_v0  ;;  %v5480_v20 = vld [vmem:[#allocation10 + $0x124] ss:$16 sps:$4 sm:$0xff]   ;;  %v5482_v0 = vld [vmem:[#allocation10 + $0x12c] ss:$16 sps:$4 sm:$0xff]  }
 0x9ca   :  { %2680 = vmatprep.subr.mxu1 %v2421_v21  ;;  %2757 = vmatprep.subr.mxu0 %v2423_v23  ;;  %v5486_v21 = vld [vmem:[#allocation10 + $0x120] ss:$16 sps:$4 sm:$0xff]   ;;  %v5488_v23 = vld [vmem:[#allocation10 + $0x128] ss:$16 sps:$4 sm:$0xff]  }
 0x9cb   :  { %2681 = vmatpush2.msra.mxu1 %v2420_v24  ;;  %2758 = vmatpush2.msra.mxu0 %v2422_v26  ;;  %v5492_v24 = vld [vmem:[#allocation10 + $0x104] ss:$16 sps:$4 sm:$0xff]   ;;  %v5494_v26 = vld [vmem:[#allocation10 + $0x10c] ss:$16 sps:$4 sm:$0xff]  }
 0x9cc   :  { %2682 = vmatprep.subr.mxu1 %v2413_v27  ;;  %2759 = vmatprep.subr.mxu0 %v2415_v28  ;;  %v5498_v27 = vld [vmem:[#allocation10 + $0x100] ss:$16 sps:$4 sm:$0xff]   ;;  %v5500_v28 = vld [vmem:[#allocation10 + $0x108] ss:$16 sps:$4 sm:$0xff]  }
 0x9cd   :  { %2683 = vmatpush2.msra.mxu1 %v2412_v41  ;;  %2760 = vmatpush2.msra.mxu0 %v2414_v29  ;;  %5885 = vst [vmem:[#allocation18_spill] sm:$0xff] %v5498_v27  ;;  %5886 = vst [vmem:[#allocation20_spill] sm:$0xff] %v5500_v28 }
 0x9ce   :  { %2684 = vmatprep.subr.mxu1 %v2405_v32  ;;  %2761 = vmatprep.subr.mxu0 %v2407_v33 }
 0x9cf   :  { %2685 = vmatpush2.msra.mxu1 %v2404_v34  ;;  %2762 = vmatpush2.msra.mxu0 %v2406_v36 }
 0x9d0   :  { %2686 = vmatprep.subr.mxu1 %v2397_v37  ;;  %2763 = vmatprep.subr.mxu0 %v2399_v38 }
 0x9d1   :  { %2687 = vmatpush2.msra.mxu1 %v2396_v40  ;;  %2764 = vmatpush2.msra.mxu0 %v2398_v42 }
 0x9d2   :  { %2688 = vmatprep.subr.mxu1 %v2389_v43  ;;  %2765 = vmatprep.subr.mxu0 %v2391_v45 }
 0x9d3   :  { %2689 = vmatpush2.msra.mxu1 %v2388_v44  ;;  %2766 = vmatpush2.msra.mxu0 %v2390_v53 }
 0x9d4   :  { %2690 = vmatprep.subr.mxu1 %v2381_v12  ;;  %2767 = vmatprep.subr.mxu0 %v2383_v13 }
 0x9d5   :  { %2691 = vmatpush2.msra.mxu1 %v2380_v14  ;;  %2768 = vmatpush2.msra.mxu0 %v2382_v15 }
 0x9d6   :  { %2692 = vmatprep.subr.mxu1 %v2373_v17  ;;  %2769 = vmatprep.subr.mxu0 %v2375_v57 }
 0x9d7   :  { %2693 = vmatpush2.msra.mxu1 %v2372_v9  ;;  %2770 = vmatpush2.msra.mxu0 %v2374_v18 }
 0x9d8   :  { %2694 = vmatprep.subr.mxu1 %v2365_v22  ;;  %2771 = vmatprep.subr.mxu0 %v2367_v11 }
 0x9d9   :  { %2695 = vmatpush2.msra.mxu1 %v2364_v10  ;;  %2772 = vmatpush2.msra.mxu0 %v2366_v60 }
 0x9da   :  { %2696 = vmatprep.subr.mxu1 %v2357_v5  ;;  %2773 = vmatprep.subr.mxu0 %v2359_v55 }
 0x9db   :  { %2697 = vmatpush2.msra.mxu1 %v2356_v56  ;;  %2774 = vmatpush2.msra.mxu0 %v2358_v30 }
 0x9dc   :  { %2699 = vmatmul.mubr.f32.vlgmr.msra.gmra.mxu1 %v5387_v16  ;;  %2776 = vmatmul.mubr.f32.vlgmr.msra.gmra.mxu0 %v5387_v16  ;;  %v5428_v16 = vld [vmem:[#allocation10 + $0x1a4] ss:$16 sps:$4 sm:$0xff]  }
 0x9dd   :  { %3218 = vmatprep.subr.bf16.mxu1 %v5402_v3  ;;  %3259 = vmatprep.subr.bf16.mxu0 %v5404_v52 }
 0x9de   :  { %2704 = vmatprep.mubr.f32.mxu1 %v5392_v35  ;;  %2781 = vmatprep.mubr.f32.mxu0 %v5392_v35  ;;  %v5438_v35 = vld [vmem:[#allocation10 + $0x1a0] ss:$16 sps:$4 sm:$0xff]  }
 0x9df   :  { %3219 = vmatpush1.bf16.msra.mxu1 %v5406_v63  ;;  %3260 = vmatpush1.bf16.msra.mxu0 %v5408_v2 }
 0x9e0   :  { %2705 = vmatmul.mubr.f32.gmra.mxu1 %v5398_v51  ;;  %2782 = vmatmul.mubr.f32.gmra.mxu0 %v5398_v51  ;;  %v5444_v51 = vld [vmem:[#allocation10 + $0x184] ss:$16 sps:$4 sm:$0xff]  }
 0x9e1   :  { %3220 = vmatprep.subr.bf16.mxu1 %v5414_v46  ;;  %3261 = vmatprep.subr.bf16.mxu0 %v5416_v25 }
 0x9e2   :  { %3250 = vmatprep.mubr.bf16.mxu1 %v5879_v39  ;;  %3291 = vmatprep.mubr.bf16.mxu0 %v5879_v39 }
 0x9e3   :  { %3221 = vmatpush1.bf16.msra.mxu1 %v5422_v49  ;;  %3262 = vmatpush1.bf16.msra.mxu0 %v5424_v4 }
 0x9e4   :  { %3222 = vmatprep.subr.bf16.mxu1 %v5428_v16  ;;  %3263 = vmatprep.subr.bf16.mxu0 %v5430_v61 }
 0x9e7   :  { %3223 = vmatpush1.bf16.msra.mxu1 %v5438_v35  ;;  %3264 = vmatpush1.bf16.msra.mxu0 %v5440_v58 }
 0x9e8   :  { %3224 = vmatprep.subr.bf16.mxu1 %v5444_v51  ;;  %3265 = vmatprep.subr.bf16.mxu0 %v5446_v8 }
 0x9eb   :  { %3225 = vmatpush1.bf16.msra.mxu1 %v5450_v31  ;;  %3266 = vmatpush1.bf16.msra.mxu0 %v5452_v50 }
 0x9ec   :  { %3226 = vmatprep.subr.bf16.mxu1 %v5456_v6  ;;  %3267 = vmatprep.subr.bf16.mxu0 %v5458_v7 }
 0x9ef   :  { %3227 = vmatpush1.bf16.msra.mxu1 %v5462_v62  ;;  %3268 = vmatpush1.bf16.msra.mxu0 %v5464_v1 }
 0x9f0   :  { %3228 = vmatprep.subr.bf16.mxu1 %v5468_v47  ;;  %3269 = vmatprep.subr.bf16.mxu0 %v5470_v48 }
 0x9f3   :  { %3229 = vmatpush1.bf16.msra.mxu1 %v5474_v59  ;;  %3270 = vmatpush1.bf16.msra.mxu0 %v5476_v19 }
 0x9f4   :  { %3230 = vmatprep.subr.bf16.mxu1 %v5480_v20  ;;  %3271 = vmatprep.subr.bf16.mxu0 %v5482_v0 }
 0x9f7   :  { %3231 = vmatpush1.bf16.msra.mxu1 %v5486_v21  ;;  %3272 = vmatpush1.bf16.msra.mxu0 %v5488_v23 }
 0x9f8   :  { %3232 = vmatprep.subr.bf16.mxu1 %v5492_v24  ;;  %3273 = vmatprep.subr.bf16.mxu0 %v5494_v26 }
 0x9fb   :  { %3233 = vmatpush1.bf16.msra.mxu1 %v5498_v27  ;;  %3274 = vmatpush1.bf16.msra.mxu0 %v5500_v28 }
 0x9fc   :  { %3347 = vmatprep.subr.bf16.mxu1 %v5402_v3  ;;  %3388 = vmatprep.subr.bf16.mxu0 %v5404_v52 }
 0x9fe   :  { %3251 = vmatmul.mubr.bf16.vlgmr.msra.gmra.mxu1 %v5879_v39  ;;  %3292 = vmatmul.mubr.bf16.vlgmr.msra.gmra.mxu0 %v5879_v39 }
 0x9ff   :  { %3348 = vmatpush1.bf16.msra.mxu1 %v5406_v63  ;;  %3389 = vmatpush1.bf16.msra.mxu0 %v5408_v2 }
 0xa00   :  { %3349 = vmatprep.subr.bf16.mxu1 %v5414_v46  ;;  %3390 = vmatprep.subr.bf16.mxu0 %v5416_v25 }
 0xa01   :  { %3379 = vmatprep.mubr.bf16.mxu1 %v5879_v39  ;;  %3420 = vmatprep.mubr.bf16.mxu0 %v5879_v39 }
 0xa03   :  { %3350 = vmatpush1.bf16.msra.mxu1 %v5422_v49  ;;  %3391 = vmatpush1.bf16.msra.mxu0 %v5424_v4 }
 0xa04   :  { %3351 = vmatprep.subr.bf16.mxu1 %v5428_v16  ;;  %3392 = vmatprep.subr.bf16.mxu0 %v5430_v61 }
 0xa07   :  { %3352 = vmatpush1.bf16.msra.mxu1 %v5438_v35  ;;  %3393 = vmatpush1.bf16.msra.mxu0 %v5440_v58 }
 0xa08   :  { %3353 = vmatprep.subr.bf16.mxu1 %v5444_v51  ;;  %3394 = vmatprep.subr.bf16.mxu0 %v5446_v8 }
 0xa0b   :  { %3354 = vmatpush1.bf16.msra.mxu1 %v5450_v31  ;;  %3395 = vmatpush1.bf16.msra.mxu0 %v5452_v50 }
 0xa0c   :  { %3355 = vmatprep.subr.bf16.mxu1 %v5456_v6  ;;  %3396 = vmatprep.subr.bf16.mxu0 %v5458_v7 }
 0xa0f   :  { %3356 = vmatpush1.bf16.msra.mxu1 %v5462_v62  ;;  %3397 = vmatpush1.bf16.msra.mxu0 %v5464_v1 }
 0xa10   :  { %3357 = vmatprep.subr.bf16.mxu1 %v5468_v47  ;;  %3398 = vmatprep.subr.bf16.mxu0 %v5470_v48 }
 0xa13   :  { %3358 = vmatpush1.bf16.msra.mxu1 %v5474_v59  ;;  %3399 = vmatpush1.bf16.msra.mxu0 %v5476_v19 }
 0xa14   :  { %3359 = vmatprep.subr.bf16.mxu1 %v5480_v20  ;;  %3400 = vmatprep.subr.bf16.mxu0 %v5482_v0 }
 0xa17   :  { %3360 = vmatpush1.bf16.msra.mxu1 %v5486_v21  ;;  %3401 = vmatpush1.bf16.msra.mxu0 %v5488_v23 }
 0xa18   :  { %3361 = vmatprep.subr.bf16.mxu1 %v5492_v24  ;;  %3402 = vmatprep.subr.bf16.mxu0 %v5494_v26 }
 0xa1b   :  { %3362 = vmatpush1.bf16.msra.mxu1 %v5498_v27  ;;  %3403 = vmatpush1.bf16.msra.mxu0 %v5500_v28 }
 0xa1c   :  { %3476 = vmatprep.subr.bf16.mxu1 %v5402_v3  ;;  %3517 = vmatprep.subr.bf16.mxu0 %v5404_v52 }
 0xa59   :  { %v2546_v41 = vpop.f32.mrf.mxu1  ;;  %v2623_v29 = vpop.f32.mrf.mxu0 }
 0xa5b   :  { %v2548_v32 = vpop.f32.mrf.mxu1  ;;  %v2625_v33 = vpop.f32.mrf.mxu0 }
 0xa5c   :  { %v2806_v34 = vcombine.low %v2546_v41, %v2548_v32  ;;  %v2807_v36 = vcombine.high %v2546_v41, %v2548_v32  ;;  %v2808_v37 = vcombine.low %v2623_v29, %v2625_v33  ;;  %v2809_v38 = vcombine.high %v2623_v29, %v2625_v33  ;;  %v4612_v29 = vld [vmem:[%s5843_s6 + $0x1] ss:$2 sm:$0xf]  ;;  %v5887_v32 = vld [vmem:[#allocation15_spill] sm:$0xff] }
 0xa5d   :  { %v2971_v33 = vrot.slane %v4612_v29, %v5887_v32 }
 0xa5e   :  { %v5545_v40 = vrot.slane %v2806_v34, %v5069_v54  ;;  %v5548_v42 = vrot.slane %v2807_v36, %v5069_v54  ;;  %v5551_v43 = vrot.slane %v2808_v37, %v5069_v54  ;;  %v5554_v45 = vrot.slane %v2809_v38, %v5069_v54  ;;  %v5888_v34 = vld [vmem:[#allocation16_spill] sm:$0xff] }
 0xa5f   :  { %v2552_v44 = vpop.f32.mrf.mxu1  ;;  %v2629_v53 = vpop.f32.mrf.mxu0  ;;  %v2975_v36 = vrot.slane %v4612_v29, %v5888_v34 }
 0xa61   :  { %v2554_v15 = vpop.f32.mrf.mxu1  ;;  %v2631_v17 = vpop.f32.mrf.mxu0  ;;  %v2984_v37 = vcombine.low %v2971_v33, %v2975_v36 }
 0xa62   :  { %v2878_v57 = vcombine.low %v2552_v44, %v2554_v15  ;;  %v2879_v9 = vcombine.high %v2552_v44, %v2554_v15  ;;  %v2880_v18 = vcombine.low %v2629_v53, %v2631_v17  ;;  %v2881_v22 = vcombine.high %v2629_v53, %v2631_v17  ;;  %v5889_v15 = vld [vmem:[#allocation13_spill] sm:$0xff]  ;;  %v5890_v17 = vld [vmem:[#allocation14_spill] sm:$0xff] }
 0xa63   :  { %v2992_v53 = vrot.slane %v2984_v37, %v5069_v54 }
 0xa64   :  { %v2888_v11 = vrot.slane %v2878_v57, %v5069_v54  ;;  %v2895_v10 = vrot.slane %v2879_v9, %v5069_v54  ;;  %v2902_v60 = vrot.slane %v2880_v18, %v5069_v54  ;;  %v2909_v5 = vrot.slane %v2881_v22, %v5069_v54 }
 0xa65   :  { %v5891_v57 = vcombine.low %v5889_v15, %v5890_v17 }
 0xa66   :  { %v2910_v55 = vcombine.low %v2888_v11, %v2902_v60  ;;  %v2911_v56 = vcombine.high %v2888_v11, %v2902_v60  ;;  %v2912_v30 = vcombine.low %v2895_v10, %v2909_v5  ;;  %v2913_v41 = vcombine.high %v2895_v10, %v2909_v5 }
 0xa67   :  { %v2999_v9 = vrot.slane %v5891_v57, %v5069_v54 }
 0xa69   :  { %v3000_v12 = vcombine.low %v2992_v53, %v2999_v9 }
 0xa9c   :  { %v2700_v38 = vpop.f32.mrf.mxu1  ;;  %v2777_v44 = vpop.f32.mrf.mxu0 }
 0xa9e   :  { %v2702_v18 = vpop.f32.mrf.mxu1  ;;  %v2779_v22 = vpop.f32.mrf.mxu0 }
 0xa9f   :  { %v2842_v11 = vcombine.low %v2700_v38, %v2702_v18  ;;  %v2843_v10 = vcombine.high %v2700_v38, %v2702_v18  ;;  %v2844_v60 = vcombine.low %v2777_v44, %v2779_v22  ;;  %v2845_v5 = vcombine.high %v2777_v44, %v2779_v22 }
 0xaa0   :  { %v2706_v14 = vpop.f32.mrf.mxu1  ;;  %v2783_v13 = vpop.f32.mrf.mxu0 }
 0xaa1   :  { %v2852_v29 = vrot.slane %v2842_v11, %v5069_v54  ;;  %v2859_v33 = vrot.slane %v2843_v10, %v5069_v54  ;;  %v2866_v36 = vrot.slane %v2844_v60, %v5069_v54  ;;  %v2873_v37 = vrot.slane %v2845_v5, %v5069_v54 }
 0xaa2   :  { %v2708_v32 = vpop.f32.mrf.mxu1  ;;  %v2785_v15 = vpop.f32.mrf.mxu0 }
 0xaa3   :  { %v2874_v17 = vcombine.low %v2852_v29, %v2866_v36  ;;  %v2875_v57 = vcombine.high %v2852_v29, %v2866_v36  ;;  %v2876_v34 = vcombine.low %v2859_v33, %v2873_v37  ;;  %v2877_v52 = vcombine.high %v2859_v33, %v2873_v37 }
 0xaa4   :  { %v2914_v38 = vcombine.low %v2706_v14, %v2708_v32  ;;  %v2915_v18 = vcombine.high %v2706_v14, %v2708_v32  ;;  %v2916_v44 = vcombine.low %v2783_v13, %v2785_v15  ;;  %v2917_v22 = vcombine.high %v2783_v13, %v2785_v15 }
 0xaa5   :  { %v3013_v3 = vadd.f32 %v2910_v55, %v2877_v52  ;;  %v3016_v28 = vadd.f32 %v2911_v56, %v2876_v34  ;;  %v3019_v11 = vadd.f32 %v2912_v30, %v2875_v57  ;;  %v3022_v27 = vadd.f32 %v2913_v41, %v2874_v17 }
 0xaa6   :  { %v2924_v10 = vrot.slane %v2914_v38, %v5069_v54  ;;  %v2931_v60 = vrot.slane %v2915_v18, %v5069_v54  ;;  %v2938_v53 = vrot.slane %v2916_v44, %v5069_v54  ;;  %v2945_v9 = vrot.slane %v2917_v22, %v5069_v54 }
 0xaa7   :  { %v5584_v5 = vadd.f32 %v3013_v3, %v3000_v12  ;;  %v5586_v29 = vadd.f32 %v3016_v28, %v3000_v12  ;;  %v5588_v33 = vadd.f32 %v3019_v11, %v3000_v12  ;;  %v5590_v14 = vadd.f32 %v3022_v27, %v3000_v12 }
 0xaa8   :  { %v2946_v52 = vcombine.low %v2924_v10, %v2938_v53  ;;  %v2947_v13 = vcombine.high %v2924_v10, %v2938_v53  ;;  %v2948_v55 = vcombine.low %v2931_v60, %v2945_v9  ;;  %v5892_v56 = vcombine.high %v5545_v40, %v5551_v43 }
 0xaa9   :  { %v5893_v41 = vcombine.low %v5548_v42, %v5554_v45  ;;  %v5894_v3 = vcombine.high %v5548_v42, %v5554_v45  ;;  %v2949_v37 = vcombine.high %v2931_v60, %v2945_v9  ;;  %v2838_v57 = vcombine.low %v5545_v40, %v5551_v43 }
 0xaaa   :  { %v3004_v30 = vadd.f32 %v2948_v55, %v5892_v56 }
 0xaab   :  { %v3007_v32 = vadd.f32 %v2947_v13, %v5893_v41  ;;  %v3010_v28 = vadd.f32 %v2946_v52, %v5894_v3  ;;  %v2966_v44 = vadd.f32 %v2949_v37, %v2838_v57 }
 0xaac   :  { %v5601_v34 = vadd.f32 %v3004_v30, %v3000_v12 }
 0xaad   :  { %v5603_v36 = vadd.f32 %v3007_v32, %v3000_v12  ;;  %v5605_v27 = vadd.f32 %v3010_v28, %v3000_v12  ;;  %v3002_v55 = vadd.f32 %v3000_v12, %v2966_v44  ;;  %v5895_v44 = vld [vmem:[#allocation18_spill] sm:$0xff] }
 0xabe   :  { %v3252_v15 = vpop.f32.mrf.mxu1  ;;  %v3293_v17 = vpop.f32.mrf.mxu0 }
 0xac0   :  { %v3254_v38 = vpop.f32.mrf.mxu1  ;;  %v3295_v18 = vpop.f32.mrf.mxu0 }
 0xac1   :  { %v3304_v22 = vcombine.low %v3252_v15, %v3254_v38  ;;  %v3305_v11 = vcombine.low %v3293_v17, %v3295_v18 }
 0xac2   :  { %v3256_v10 = vpop.f32.mrf.mxu1  ;;  %v3297_v42 = vpop.f32.mrf.mxu0 }
 0xac3   :  { %v3312_v45 = vrot.slane %v3304_v22, %v5069_v54  ;;  %v3319_v53 = vrot.slane %v3305_v11, %v5069_v54  ;;  %v5896_v22 = vld [vmem:[#allocation20_spill] sm:$0xff]  ;;  %v5897_v11 = vld [vmem:[#allocation19_spill] sm:$0xff]  ;;  %v5898_v10 = vld [vmem:[#allocation17_spill] sm:$0xff] }
 0xac4   :  { %v3257_v52 = vpop.f32.mrf.mxu1  ;;  %v3298_v13 = vpop.f32.mrf.mxu0 }
 0xac5   :  { %v3320_v60 = vcombine.low %v3312_v45, %v3319_v53 }
 0xac7   :  { %v3322_v9 = vadd.f32 %v3320_v60, %v3002_v55 }
 0xac9   :  { %v4362_v56 = vmul.f32 -1.442695, %v3322_v9 }
 0xacb   :  { %4532 = vpow2.f32 %v4362_v56 }
 0xad8   :  { %v4533_v30 = vpop.eup %4532 }
 0xad9   :  { %v3326_v40 = vadd.f32 1.0, %v4533_v30 }
 0xadb   :  { %4534 = vrcp.f32 %v3326_v40 }
 0xae8   :  { %v4535_v43 = vpop.eup %4534 }
 0xae9   :  { %v3330_v41 = vrot.slane %v4535_v43, 4  ;;  %v3334_v3 = vrot.slane %v4535_v43, 2  ;;  %v3340_v57 = vrot.slane %v4535_v43, 6 }
 0xaeb   :  { %v3332_v32 = vmul.f32 2.0, %v3330_v41  ;;  %v3336_v37 = vmul.f32 0.0, %v3334_v3 }
 0xaed   :  { %v4363_v28 = vadd.f32 -1.0, %v3332_v32 }
 0xaef   :  { %v3337_v15 = vmul.f32 %v4535_v43, %v4363_v28 }
 0xaf1   :  { %v5611_v17 = vadd.f32 %v3337_v15, %v3336_v37 }
 0xaf3   :  { %4536 = vtanh.f32 %v5611_v17 }
 0xb00   :  { %v4537_v12 = vpop.eup %4536 }
 0xb01   :  { %v3342_v38 = vmul.f32 %v4537_v12, %v3340_v57 }
 0xb03   :  { %3343 = vst [vmem:[#allocation3] sm:$0x3] %v3342_v38  ;;  %3344 = vst [vmem:[#allocation4 + $0xe] sm:$0x3] %v3342_v38  ;;  %v3346_v18 = vpack.c.bf16 %v3342_v38, %v3342_v38 }
 0xb05   :  { %3380 = vmatmul.mubr.bf16.vlgmr.msra.gmra.mxu1 %v3346_v18  ;;  %3421 = vmatmul.mubr.bf16.vlgmr.msra.gmra.mxu0 %v3346_v18 }
 0xb06   :  { %3477 = vmatpush1.bf16.msra.mxu1 %v5406_v63  ;;  %3518 = vmatpush1.bf16.msra.mxu0 %v5408_v2 }
 0xb07   :  { %3478 = vmatprep.subr.bf16.mxu1 %v5414_v46  ;;  %3519 = vmatprep.subr.bf16.mxu0 %v5416_v25 }
 0xb08   :  { %3508 = vmatprep.mubr.bf16.mxu1 %v5879_v39  ;;  %3549 = vmatprep.mubr.bf16.mxu0 %v5879_v39 }
 0xb0a   :  { %3479 = vmatpush1.bf16.msra.mxu1 %v5422_v49  ;;  %3520 = vmatpush1.bf16.msra.mxu0 %v5424_v4 }
 0xb0b   :  { %3480 = vmatprep.subr.bf16.mxu1 %v5428_v16  ;;  %3521 = vmatprep.subr.bf16.mxu0 %v5430_v61 }
 0xb0e   :  { %3481 = vmatpush1.bf16.msra.mxu1 %v5438_v35  ;;  %3522 = vmatpush1.bf16.msra.mxu0 %v5440_v58 }
 0xb0f   :  { %3482 = vmatprep.subr.bf16.mxu1 %v5444_v51  ;;  %3523 = vmatprep.subr.bf16.mxu0 %v5446_v8 }
 0xb12   :  { %3483 = vmatpush1.bf16.msra.mxu1 %v5450_v31  ;;  %3524 = vmatpush1.bf16.msra.mxu0 %v5452_v50 }
 0xb13   :  { %3484 = vmatprep.subr.bf16.mxu1 %v5456_v6  ;;  %3525 = vmatprep.subr.bf16.mxu0 %v5458_v7 }
 0xb16   :  { %3485 = vmatpush1.bf16.msra.mxu1 %v5462_v62  ;;  %3526 = vmatpush1.bf16.msra.mxu0 %v5464_v1 }
 0xb17   :  { %3486 = vmatprep.subr.bf16.mxu1 %v5468_v47  ;;  %3527 = vmatprep.subr.bf16.mxu0 %v5470_v48 }
 0xb1a   :  { %3487 = vmatpush1.bf16.msra.mxu1 %v5474_v59  ;;  %3528 = vmatpush1.bf16.msra.mxu0 %v5476_v19 }
 0xb1b   :  { %3488 = vmatprep.subr.bf16.mxu1 %v5480_v20  ;;  %3529 = vmatprep.subr.bf16.mxu0 %v5482_v0 }
 0xb1e   :  { %3489 = vmatpush1.bf16.msra.mxu1 %v5486_v21  ;;  %3530 = vmatpush1.bf16.msra.mxu0 %v5488_v23 }
 0xb1f   :  { %3490 = vmatprep.subr.bf16.mxu1 %v5492_v24  ;;  %3531 = vmatprep.subr.bf16.mxu0 %v5494_v26 }
 0xb22   :  { %3491 = vmatpush1.bf16.msra.mxu1 %v5895_v44  ;;  %3532 = vmatpush1.bf16.msra.mxu0 %v5896_v22 }
 0xb23   :  { %3605 = vmatprep.subr.bf16.mxu1 %v5897_v11  ;;  %3646 = vmatprep.subr.bf16.mxu0 %v5898_v10 }
 0xbc5   :  { %v3381_v42 = vpop.f32.mrf.mxu1  ;;  %v3422_v45 = vpop.f32.mrf.mxu0 }
 0xbc7   :  { %v3383_v53 = vpop.f32.mrf.mxu1  ;;  %v3424_v52 = vpop.f32.mrf.mxu0 }
 0xbc8   :  { %v3433_v13 = vcombine.low %v3381_v42, %v3383_v53  ;;  %v3434_v55 = vcombine.low %v3422_v45, %v3424_v52 }
 0xbc9   :  { %v3385_v60 = vpop.f32.mrf.mxu1  ;;  %v3426_v9 = vpop.f32.mrf.mxu0 }
 0xbca   :  { %v3441_v56 = vrot.slane %v3433_v13, %v5069_v54  ;;  %v3448_v30 = vrot.slane %v3434_v55, %v5069_v54 }
 0xbcb   :  { %v3386_v40 = vpop.f32.mrf.mxu1  ;;  %v3427_v43 = vpop.f32.mrf.mxu0 }
 0xbcc   :  { %v3449_v41 = vcombine.low %v3441_v56, %v3448_v30 }
 0xbce   :  { %v3451_v32 = vadd.f32 %v3449_v41, %v5601_v34 }
 0xbd0   :  { %v4364_v3 = vmul.f32 -1.442695, %v3451_v32 }
 0xbd2   :  { %4538 = vpow2.f32 %v4364_v3 }
 0xbdf   :  { %v4539_v28 = vpop.eup %4538 }
 0xbe0   :  { %v3455_v37 = vadd.f32 1.0, %v4539_v28 }
 0xbe2   :  { %4540 = vrcp.f32 %v3455_v37 }
 0xbef   :  { %v4541_v15 = vpop.eup %4540 }
 0xbf0   :  { %v3459_v57 = vrot.slane %v4541_v15, 4  ;;  %v3463_v38 = vrot.slane %v4541_v15, 2  ;;  %v3469_v52 = vrot.slane %v4541_v15, 6 }
 0xbf2   :  { %v3461_v12 = vmul.f32 2.0, %v3459_v57  ;;  %v3465_v42 = vmul.f32 %v3463_v38, %v5611_v17 }
 0xbf4   :  { %v4365_v18 = vadd.f32 -1.0, %v3461_v12 }
 0xbf6   :  { %v3466_v45 = vmul.f32 %v4541_v15, %v4365_v18 }
 0xbf8   :  { %v5652_v53 = vadd.f32 %v3466_v45, %v3465_v42 }
 0xbfa   :  { %4542 = vtanh.f32 %v5652_v53 }
 0xc07   :  { %v4543_v13 = vpop.eup %4542 }
 0xc08   :  { %v3471_v34 = vmul.f32 %v4543_v13, %v3469_v52 }
 0xc0a   :  { %3472 = vst [vmem:[#allocation3 + $0x2] sm:$0x3] %v3471_v34  ;;  %3473 = vst [vmem:[#allocation4 + $0xc] sm:$0x3] %v3471_v34  ;;  %v3475_v55 = vpack.c.bf16 %v3471_v34, %v3471_v34 }
 0xc0c   :  { %3509 = vmatmul.mubr.bf16.vlgmr.msra.gmra.mxu1 %v3475_v55  ;;  %3550 = vmatmul.mubr.bf16.vlgmr.msra.gmra.mxu0 %v3475_v55 }
 0xc0d   :  { %3606 = vmatpush1.bf16.msra.mxu1 %v5406_v63  ;;  %3647 = vmatpush1.bf16.msra.mxu0 %v5408_v2 }
 0xc0e   :  { %3607 = vmatprep.subr.bf16.mxu1 %v5414_v46  ;;  %3648 = vmatprep.subr.bf16.mxu0 %v5416_v25 }
 0xc0f   :  { %3637 = vmatprep.mubr.bf16.mxu1 %v5879_v39  ;;  %3678 = vmatprep.mubr.bf16.mxu0 %v5879_v39 }
 0xc11   :  { %3608 = vmatpush1.bf16.msra.mxu1 %v5422_v49  ;;  %3649 = vmatpush1.bf16.msra.mxu0 %v5424_v4 }
 0xc12   :  { %3609 = vmatprep.subr.bf16.mxu1 %v5428_v16  ;;  %3650 = vmatprep.subr.bf16.mxu0 %v5430_v61 }
 0xc15   :  { %3610 = vmatpush1.bf16.msra.mxu1 %v5438_v35  ;;  %3651 = vmatpush1.bf16.msra.mxu0 %v5440_v58 }
 0xc16   :  { %3611 = vmatprep.subr.bf16.mxu1 %v5444_v51  ;;  %3652 = vmatprep.subr.bf16.mxu0 %v5446_v8 }
 0xc19   :  { %3612 = vmatpush1.bf16.msra.mxu1 %v5450_v31  ;;  %3653 = vmatpush1.bf16.msra.mxu0 %v5452_v50 }
 0xc1a   :  { %3613 = vmatprep.subr.bf16.mxu1 %v5456_v6  ;;  %3654 = vmatprep.subr.bf16.mxu0 %v5458_v7 }
 0xc1d   :  { %3614 = vmatpush1.bf16.msra.mxu1 %v5462_v62  ;;  %3655 = vmatpush1.bf16.msra.mxu0 %v5464_v1 }
 0xc1e   :  { %3615 = vmatprep.subr.bf16.mxu1 %v5468_v47  ;;  %3656 = vmatprep.subr.bf16.mxu0 %v5470_v48 }
 0xc21   :  { %3616 = vmatpush1.bf16.msra.mxu1 %v5474_v59  ;;  %3657 = vmatpush1.bf16.msra.mxu0 %v5476_v19 }
 0xc22   :  { %3617 = vmatprep.subr.bf16.mxu1 %v5480_v20  ;;  %3658 = vmatprep.subr.bf16.mxu0 %v5482_v0 }
 0xc25   :  { %3618 = vmatpush1.bf16.msra.mxu1 %v5486_v21  ;;  %3659 = vmatpush1.bf16.msra.mxu0 %v5488_v23 }
 0xc26   :  { %3619 = vmatprep.subr.bf16.mxu1 %v5492_v24  ;;  %3660 = vmatprep.subr.bf16.mxu0 %v5494_v26 }
 0xc29   :  { %3620 = vmatpush1.bf16.msra.mxu1 %v5895_v44  ;;  %3661 = vmatpush1.bf16.msra.mxu0 %v5896_v22 }
 0xc2a   :  { %3734 = vmatprep.subr.bf16.mxu1 %v5897_v11  ;;  %3775 = vmatprep.subr.bf16.mxu0 %v5898_v10 }
 0xccc   :  { %v3510_v17 = vpop.f32.mrf.mxu1  ;;  %v3551_v60 = vpop.f32.mrf.mxu0 }
 0xcce   :  { %v3512_v9 = vpop.f32.mrf.mxu1  ;;  %v3553_v56 = vpop.f32.mrf.mxu0 }
 0xccf   :  { %v3562_v30 = vcombine.low %v3510_v17, %v3512_v9  ;;  %v3563_v40 = vcombine.low %v3551_v60, %v3553_v56 }
 0xcd0   :  { %v3514_v43 = vpop.f32.mrf.mxu1  ;;  %v3555_v41 = vpop.f32.mrf.mxu0 }
 0xcd1   :  { %v3570_v32 = vrot.slane %v3562_v30, %v5069_v54  ;;  %v3577_v3 = vrot.slane %v3563_v40, %v5069_v54 }
 0xcd2   :  { %v3515_v28 = vpop.f32.mrf.mxu1  ;;  %v3556_v37 = vpop.f32.mrf.mxu0 }
 0xcd3   :  { %v3578_v15 = vcombine.low %v3570_v32, %v3577_v3 }
 0xcd5   :  { %v3580_v57 = vadd.f32 %v3578_v15, %v5603_v36 }
 0xcd7   :  { %v4366_v12 = vmul.f32 -1.442695, %v3580_v57 }
 0xcd9   :  { %4544 = vpow2.f32 %v4366_v12 }
 0xce6   :  { %v4545_v38 = vpop.eup %4544 }
 0xce7   :  { %v3584_v18 = vadd.f32 1.0, %v4545_v38 }
 0xce9   :  { %4546 = vrcp.f32 %v3584_v18 }
 0xcf6   :  { %v4547_v42 = vpop.eup %4546 }
 0xcf7   :  { %v3588_v45 = vrot.slane %v4547_v42, 4  ;;  %v3592_v13 = vrot.slane %v4547_v42, 2  ;;  %v3598_v9 = vrot.slane %v4547_v42, 6 }
 0xcf9   :  { %v3590_v52 = vmul.f32 2.0, %v3588_v45  ;;  %v3594_v55 = vmul.f32 %v3592_v13, %v5652_v53 }
 0xcfb   :  { %v4367_v34 = vadd.f32 -1.0, %v3590_v52 }
 0xcfd   :  { %v3595_v17 = vmul.f32 %v4547_v42, %v4367_v34 }
 0xcff   :  { %v5693_v60 = vadd.f32 %v3595_v17, %v3594_v55 }
 0xd01   :  { %4548 = vtanh.f32 %v5693_v60 }
 0xd0e   :  { %v4549_v56 = vpop.eup %4548 }
 0xd0f   :  { %v3600_v36 = vmul.f32 %v4549_v56, %v3598_v9 }
 0xd11   :  { %3601 = vst [vmem:[#allocation3 + $0x4] sm:$0x3] %v3600_v36  ;;  %3602 = vst [vmem:[#allocation4 + $0xa] sm:$0x3] %v3600_v36  ;;  %v3604_v30 = vpack.c.bf16 %v3600_v36, %v3600_v36 }
 0xd13   :  { %3638 = vmatmul.mubr.bf16.vlgmr.msra.gmra.mxu1 %v3604_v30  ;;  %3679 = vmatmul.mubr.bf16.vlgmr.msra.gmra.mxu0 %v3604_v30 }
 0xd14   :  { %3735 = vmatpush1.bf16.msra.mxu1 %v5406_v63  ;;  %3776 = vmatpush1.bf16.msra.mxu0 %v5408_v2 }
 0xd15   :  { %3736 = vmatprep.subr.bf16.mxu1 %v5414_v46  ;;  %3777 = vmatprep.subr.bf16.mxu0 %v5416_v25 }
 0xd16   :  { %3766 = vmatprep.mubr.bf16.mxu1 %v5879_v39  ;;  %3807 = vmatprep.mubr.bf16.mxu0 %v5879_v39 }
 0xd18   :  { %3737 = vmatpush1.bf16.msra.mxu1 %v5422_v49  ;;  %3778 = vmatpush1.bf16.msra.mxu0 %v5424_v4 }
 0xd19   :  { %3738 = vmatprep.subr.bf16.mxu1 %v5428_v16  ;;  %3779 = vmatprep.subr.bf16.mxu0 %v5430_v61 }
 0xd1c   :  { %3739 = vmatpush1.bf16.msra.mxu1 %v5438_v35  ;;  %3780 = vmatpush1.bf16.msra.mxu0 %v5440_v58 }
 0xd1d   :  { %3740 = vmatprep.subr.bf16.mxu1 %v5444_v51  ;;  %3781 = vmatprep.subr.bf16.mxu0 %v5446_v8 }
 0xd20   :  { %3741 = vmatpush1.bf16.msra.mxu1 %v5450_v31  ;;  %3782 = vmatpush1.bf16.msra.mxu0 %v5452_v50 }
 0xd21   :  { %3742 = vmatprep.subr.bf16.mxu1 %v5456_v6  ;;  %3783 = vmatprep.subr.bf16.mxu0 %v5458_v7 }
 0xd24   :  { %3743 = vmatpush1.bf16.msra.mxu1 %v5462_v62  ;;  %3784 = vmatpush1.bf16.msra.mxu0 %v5464_v1 }
 0xd25   :  { %3744 = vmatprep.subr.bf16.mxu1 %v5468_v47  ;;  %3785 = vmatprep.subr.bf16.mxu0 %v5470_v48 }
 0xd28   :  { %3745 = vmatpush1.bf16.msra.mxu1 %v5474_v59  ;;  %3786 = vmatpush1.bf16.msra.mxu0 %v5476_v19 }
 0xd29   :  { %3746 = vmatprep.subr.bf16.mxu1 %v5480_v20  ;;  %3787 = vmatprep.subr.bf16.mxu0 %v5482_v0 }
 0xd2c   :  { %3747 = vmatpush1.bf16.msra.mxu1 %v5486_v21  ;;  %3788 = vmatpush1.bf16.msra.mxu0 %v5488_v23 }
 0xd2d   :  { %3748 = vmatprep.subr.bf16.mxu1 %v5492_v24  ;;  %3789 = vmatprep.subr.bf16.mxu0 %v5494_v26 }
 0xd30   :  { %3749 = vmatpush1.bf16.msra.mxu1 %v5895_v44  ;;  %3790 = vmatpush1.bf16.msra.mxu0 %v5896_v22 }
 0xd31   :  { %3863 = vmatprep.subr.bf16.mxu1 %v5897_v11  ;;  %3904 = vmatprep.subr.bf16.mxu0 %v5898_v10 }
 0xdd3   :  { %v3639_v53 = vpop.f32.mrf.mxu1  ;;  %v3680_v40 = vpop.f32.mrf.mxu0 }
 0xdd5   :  { %v3641_v43 = vpop.f32.mrf.mxu1  ;;  %v3682_v41 = vpop.f32.mrf.mxu0 }
 0xdd6   :  { %v3691_v32 = vcombine.low %v3639_v53, %v3641_v43  ;;  %v3692_v3 = vcombine.low %v3680_v40, %v3682_v41 }
 0xdd7   :  { %v3643_v28 = vpop.f32.mrf.mxu1  ;;  %v3684_v37 = vpop.f32.mrf.mxu0 }
 0xdd8   :  { %v3699_v15 = vrot.slane %v3691_v32, %v5069_v54  ;;  %v3706_v57 = vrot.slane %v3692_v3, %v5069_v54 }
 0xdd9   :  { %v3644_v12 = vpop.f32.mrf.mxu1  ;;  %v3685_v38 = vpop.f32.mrf.mxu0 }
 0xdda   :  { %v3707_v18 = vcombine.low %v3699_v15, %v3706_v57 }
 0xddc   :  { %v3709_v42 = vadd.f32 %v3707_v18, %v5605_v27 }
 0xdde   :  { %v4368_v45 = vmul.f32 -1.442695, %v3709_v42 }
 0xde0   :  { %4550 = vpow2.f32 %v4368_v45 }
 0xded   :  { %v4551_v52 = vpop.eup %4550 }
 0xdee   :  { %v3713_v13 = vadd.f32 1.0, %v4551_v52 }
 0xdf0   :  { %4552 = vrcp.f32 %v3713_v13 }
 0xdfd   :  { %v4553_v34 = vpop.eup %4552 }
 0xdfe   :  { %v3717_v55 = vrot.slane %v4553_v34, 4  ;;  %v3721_v9 = vrot.slane %v4553_v34, 2  ;;  %v3727_v40 = vrot.slane %v4553_v34, 6 }
 0xe00   :  { %v3719_v17 = vmul.f32 2.0, %v3717_v55  ;;  %v3723_v36 = vmul.f32 %v3721_v9, %v5693_v60 }
 0xe02   :  { %v4369_v56 = vadd.f32 -1.0, %v3719_v17 }
 0xe04   :  { %v3724_v30 = vmul.f32 %v4553_v34, %v4369_v56 }
 0xe06   :  { %v5734_v53 = vadd.f32 %v3724_v30, %v3723_v36 }
 0xe08   :  { %4554 = vtanh.f32 %v5734_v53 }
 0xe15   :  { %v4555_v43 = vpop.eup %4554 }
 0xe16   :  { %v3729_v27 = vmul.f32 %v4555_v43, %v3727_v40 }
 0xe18   :  { %3730 = vst [vmem:[#allocation3 + $0x6] sm:$0x3] %v3729_v27  ;;  %3731 = vst [vmem:[#allocation4 + $0x8] sm:$0x3] %v3729_v27  ;;  %v3733_v41 = vpack.c.bf16 %v3729_v27, %v3729_v27 }
 0xe1a   :  { %3767 = vmatmul.mubr.bf16.vlgmr.msra.gmra.mxu1 %v3733_v41  ;;  %3808 = vmatmul.mubr.bf16.vlgmr.msra.gmra.mxu0 %v3733_v41 }
 0xe1b   :  { %3864 = vmatpush1.bf16.msra.mxu1 %v5406_v63  ;;  %3905 = vmatpush1.bf16.msra.mxu0 %v5408_v2 }
 0xe1c   :  { %3865 = vmatprep.subr.bf16.mxu1 %v5414_v46  ;;  %3906 = vmatprep.subr.bf16.mxu0 %v5416_v25 }
 0xe1d   :  { %3895 = vmatprep.mubr.bf16.mxu1 %v5879_v39  ;;  %3936 = vmatprep.mubr.bf16.mxu0 %v5879_v39 }
 0xe1f   :  { %3866 = vmatpush1.bf16.msra.mxu1 %v5422_v49  ;;  %3907 = vmatpush1.bf16.msra.mxu0 %v5424_v4 }
 0xe20   :  { %3867 = vmatprep.subr.bf16.mxu1 %v5428_v16  ;;  %3908 = vmatprep.subr.bf16.mxu0 %v5430_v61 }
 0xe23   :  { %3868 = vmatpush1.bf16.msra.mxu1 %v5438_v35  ;;  %3909 = vmatpush1.bf16.msra.mxu0 %v5440_v58 }
 0xe24   :  { %3869 = vmatprep.subr.bf16.mxu1 %v5444_v51  ;;  %3910 = vmatprep.subr.bf16.mxu0 %v5446_v8 }
 0xe27   :  { %3870 = vmatpush1.bf16.msra.mxu1 %v5450_v31  ;;  %3911 = vmatpush1.bf16.msra.mxu0 %v5452_v50 }
 0xe28   :  { %3871 = vmatprep.subr.bf16.mxu1 %v5456_v6  ;;  %3912 = vmatprep.subr.bf16.mxu0 %v5458_v7 }
 0xe2b   :  { %3872 = vmatpush1.bf16.msra.mxu1 %v5462_v62  ;;  %3913 = vmatpush1.bf16.msra.mxu0 %v5464_v1 }
 0xe2c   :  { %3873 = vmatprep.subr.bf16.mxu1 %v5468_v47  ;;  %3914 = vmatprep.subr.bf16.mxu0 %v5470_v48 }
 0xe2f   :  { %3874 = vmatpush1.bf16.msra.mxu1 %v5474_v59  ;;  %3915 = vmatpush1.bf16.msra.mxu0 %v5476_v19 }
 0xe30   :  { %3875 = vmatprep.subr.bf16.mxu1 %v5480_v20  ;;  %3916 = vmatprep.subr.bf16.mxu0 %v5482_v0 }
 0xe33   :  { %3876 = vmatpush1.bf16.msra.mxu1 %v5486_v21  ;;  %3917 = vmatpush1.bf16.msra.mxu0 %v5488_v23 }
 0xe34   :  { %3877 = vmatprep.subr.bf16.mxu1 %v5492_v24  ;;  %3918 = vmatprep.subr.bf16.mxu0 %v5494_v26 }
 0xe37   :  { %3878 = vmatpush1.bf16.msra.mxu1 %v5895_v44  ;;  %3919 = vmatpush1.bf16.msra.mxu0 %v5896_v22 }
 0xe38   :  { %3992 = vmatprep.subr.bf16.mxu1 %v5897_v11  ;;  %4033 = vmatprep.subr.bf16.mxu0 %v5898_v10 }
 0xeda   :  { %v3768_v60 = vpop.f32.mrf.mxu1  ;;  %v3809_v32 = vpop.f32.mrf.mxu0 }
 0xedc   :  { %v3770_v3 = vpop.f32.mrf.mxu1  ;;  %v3811_v28 = vpop.f32.mrf.mxu0 }
 0xedd   :  { %v3820_v37 = vcombine.low %v3768_v60, %v3770_v3  ;;  %v3821_v15 = vcombine.low %v3809_v32, %v3811_v28  ;;  %v4616_v32 = vld [vmem:[#allocation10 + $0x1e8] ss:$16 sps:$4 sm:$0xff]   ;;  %v4617_v3 = vld [vmem:[#allocation10 + $0x1c4] ss:$16 sps:$4 sm:$0xff]   ;;  %v4618_v28 = vld [vmem:[#allocation10 + $0x1cc] ss:$16 sps:$4 sm:$0xff]  }
 0xede   :  { %v3772_v57 = vpop.f32.mrf.mxu1  ;;  %v3813_v12 = vpop.f32.mrf.mxu0 }
 0xedf   :  { %v3828_v38 = vrot.slane %v3820_v37, %v5069_v54  ;;  %v3835_v18 = vrot.slane %v3821_v15, %v5069_v54  ;;  %v4619_v37 = vld [vmem:[#allocation10 + $0x1c0] ss:$16 sps:$4 sm:$0xff]   ;;  %v4620_v15 = vld [vmem:[#allocation10 + $0x1c8] ss:$16 sps:$4 sm:$0xff]   ;;  %v4621_v57 = vld [vmem:[#allocation10 + $0x1a4] ss:$16 sps:$4 sm:$0xff]  }
 0xee0   :  { %v3773_v42 = vpop.f32.mrf.mxu1  ;;  %v3814_v45 = vpop.f32.mrf.mxu0  ;;  %v4622_v12 = vld [vmem:[#allocation10 + $0x1ac] ss:$16 sps:$4 sm:$0xff]  }
 0xee1   :  { %v3836_v52 = vcombine.low %v3828_v38, %v3835_v18  ;;  %v4623_v38 = vld [vmem:[#allocation10 + $0x1a0] ss:$16 sps:$4 sm:$0xff]   ;;  %v4624_v18 = vld [vmem:[#allocation10 + $0x1a8] ss:$16 sps:$4 sm:$0xff]   ;;  %v4625_v42 = vld [vmem:[#allocation10 + $0x184] ss:$16 sps:$4 sm:$0xff]  }
 0xee2   :  { %v4626_v45 = vld [vmem:[#allocation10 + $0x18c] ss:$16 sps:$4 sm:$0xff]  }
 0xee3   :  { %v3838_v13 = vadd.f32 %v3836_v52, %v5584_v5  ;;  %v4627_v52 = vld [vmem:[#allocation10 + $0x180] ss:$16 sps:$4 sm:$0xff]  }
 0xee5   :  { %v4370_v11 = vmul.f32 -1.442695, %v3838_v13  ;;  %v4628_v13 = vld [vmem:[#allocation10 + $0x188] ss:$16 sps:$4 sm:$0xff]  }
 0xee7   :  { %4556 = vpow2.f32 %v4370_v11  ;;  %v4630_v11 = vld [vmem:[#allocation10 + $0x16c] ss:$16 sps:$4 sm:$0xff]  }
 0xef4   :  { %v4557_v10 = vpop.eup %4556 }
 0xef5   :  { %v3842_v34 = vadd.f32 1.0, %v4557_v10  ;;  %v4631_v10 = vld [vmem:[#allocation10 + $0x160] ss:$16 sps:$4 sm:$0xff]  }
 0xef7   :  { %4558 = vrcp.f32 %v3842_v34  ;;  %v4632_v34 = vld [vmem:[#allocation10 + $0x168] ss:$16 sps:$4 sm:$0xff]  }
 0xf04   :  { %v4559_v55 = vpop.eup %4558 }
 0xf05   :  { %v3846_v17 = vrot.slane %v4559_v55, 4  ;;  %v3850_v56 = vrot.slane %v4559_v55, 2  ;;  %v3856_v27 = vrot.slane %v4559_v55, 6 }
 0xf07   :  { %v3848_v9 = vmul.f32 2.0, %v3846_v17  ;;  %v3852_v30 = vmul.f32 %v3850_v56, %v5734_v53  ;;  %v4615_v53 = vld [vmem:[#allocation10 + $0x1e0] ss:$16 sps:$4 sm:$0xff]   ;;  %v4634_v17 = vld [vmem:[#allocation10 + $0x14c] ss:$16 sps:$4 sm:$0xff]  }
 0xf08   :  { %v4636_v56 = vld [vmem:[#allocation10 + $0x148] ss:$16 sps:$4 sm:$0xff]  }
 0xf09   :  { %v4371_v36 = vadd.f32 -1.0, %v3848_v9  ;;  %v4635_v9 = vld [vmem:[#allocation10 + $0x140] ss:$16 sps:$4 sm:$0xff]  }
 0xf0b   :  { %v3853_v40 = vmul.f32 %v4559_v55, %v4371_v36  ;;  %v4633_v55 = vld [vmem:[#allocation10 + $0x144] ss:$16 sps:$4 sm:$0xff]  }
 0xf0c   :  { %v4637_v36 = vld [vmem:[#allocation10 + $0x124] ss:$16 sps:$4 sm:$0xff]  }
 0xf0d   :  { %v5775_v43 = vadd.f32 %v3853_v40, %v3852_v30  ;;  %v4638_v30 = vld [vmem:[#allocation10 + $0x12c] ss:$16 sps:$4 sm:$0xff]   ;;  %v4639_v40 = vld [vmem:[#allocation10 + $0x120] ss:$16 sps:$4 sm:$0xff]  }
 0xf0f   :  { %4560 = vtanh.f32 %v5775_v43 }
 0xf1c   :  { %v4561_v41 = vpop.eup %4560 }
 0xf1d   :  { %v3858_v5 = vmul.f32 %v4561_v41, %v3856_v27  ;;  %v4641_v27 = vld [vmem:[#allocation10 + $0x104] ss:$16 sps:$4 sm:$0xff]   ;;  %v4642_v41 = vld [vmem:[#allocation10 + $0x10c] ss:$16 sps:$4 sm:$0xff]  }
 0xf1f   :  { %3859 = vst [vmem:[#allocation3 + $0x8] sm:$0x3] %v3858_v5  ;;  %3860 = vst [vmem:[#allocation4 + $0x6] sm:$0x3] %v3858_v5  ;;  %v3862_v60 = vpack.c.bf16 %v3858_v5, %v3858_v5  ;;  %v4643_v5 = vld [vmem:[#allocation10 + $0x100] ss:$16 sps:$4 sm:$0xff]  }
 0xf21   :  { %3896 = vmatmul.mubr.bf16.vlgmr.msra.gmra.mxu1 %v3862_v60  ;;  %3937 = vmatmul.mubr.bf16.vlgmr.msra.gmra.mxu0 %v3862_v60  ;;  %v4644_v60 = vld [vmem:[#allocation10 + $0x108] ss:$16 sps:$4 sm:$0xff]  }
 0xf22   :  { %3993 = vmatpush1.bf16.msra.mxu1 %v5406_v63  ;;  %4034 = vmatpush1.bf16.msra.mxu0 %v5408_v2  ;;  %v4613_v63 = vld [vmem:[#allocation10 + $0x1e4] ss:$16 sps:$4 sm:$0xff]   ;;  %v4614_v2 = vld [vmem:[#allocation10 + $0x1ec] ss:$16 sps:$4 sm:$0xff]  }
 0xf23   :  { %3994 = vmatprep.subr.bf16.mxu1 %v5414_v46  ;;  %4035 = vmatprep.subr.bf16.mxu0 %v5416_v25 }
 0xf24   :  { %4024 = vmatprep.mubr.bf16.mxu1 %v5879_v39  ;;  %4065 = vmatprep.mubr.bf16.mxu0 %v5879_v39 }
 0xf26   :  { %3995 = vmatpush1.bf16.msra.mxu1 %v5422_v49  ;;  %4036 = vmatpush1.bf16.msra.mxu0 %v5424_v4 }
 0xf27   :  { %3996 = vmatprep.subr.bf16.mxu1 %v5428_v16  ;;  %4037 = vmatprep.subr.bf16.mxu0 %v5430_v61 }
 0xf2a   :  { %3997 = vmatpush1.bf16.msra.mxu1 %v5438_v35  ;;  %4038 = vmatpush1.bf16.msra.mxu0 %v5440_v58 }
 0xf2b   :  { %3998 = vmatprep.subr.bf16.mxu1 %v5444_v51  ;;  %4039 = vmatprep.subr.bf16.mxu0 %v5446_v8 }
 0xf2e   :  { %3999 = vmatpush1.bf16.msra.mxu1 %v5450_v31  ;;  %4040 = vmatpush1.bf16.msra.mxu0 %v5452_v50 }
 0xf2f   :  { %4000 = vmatprep.subr.bf16.mxu1 %v5456_v6  ;;  %4041 = vmatprep.subr.bf16.mxu0 %v5458_v7 }
 0xf32   :  { %4001 = vmatpush1.bf16.msra.mxu1 %v5462_v62  ;;  %4042 = vmatpush1.bf16.msra.mxu0 %v5464_v1 }
 0xf33   :  { %4002 = vmatprep.subr.bf16.mxu1 %v5468_v47  ;;  %4043 = vmatprep.subr.bf16.mxu0 %v5470_v48 }
 0xf36   :  { %4003 = vmatpush1.bf16.msra.mxu1 %v5474_v59  ;;  %4044 = vmatpush1.bf16.msra.mxu0 %v5476_v19 }
 0xf37   :  { %4004 = vmatprep.subr.bf16.mxu1 %v5480_v20  ;;  %4045 = vmatprep.subr.bf16.mxu0 %v5482_v0 }
 0xf3a   :  { %4005 = vmatpush1.bf16.msra.mxu1 %v5486_v21  ;;  %4046 = vmatpush1.bf16.msra.mxu0 %v5488_v23 }
 0xf3b   :  { %4006 = vmatprep.subr.bf16.mxu1 %v5492_v24  ;;  %4047 = vmatprep.subr.bf16.mxu0 %v5494_v26 }
 0xf3e   :  { %4007 = vmatpush1.bf16.msra.mxu1 %v5895_v44  ;;  %4048 = vmatpush1.bf16.msra.mxu0 %v5896_v22 }
 0xf3f   :  { %4121 = vmatprep.subr.bf16.mxu1 %v4613_v63  ;;  %4162 = vmatprep.subr.bf16.mxu0 %v4614_v2 }
 0xfe1   :  { %v3897_v46 = vpop.f32.mrf.mxu1  ;;  %v3938_v25 = vpop.f32.mrf.mxu0 }
 0xfe3   :  { %v3899_v49 = vpop.f32.mrf.mxu1  ;;  %v3940_v4 = vpop.f32.mrf.mxu0 }
 0xfe4   :  { %v3949_v16 = vcombine.low %v3897_v46, %v3899_v49  ;;  %v3950_v61 = vcombine.low %v3938_v25, %v3940_v4 }
 0xfe5   :  { %v3901_v35 = vpop.f32.mrf.mxu1  ;;  %v3942_v58 = vpop.f32.mrf.mxu0 }
 0xfe6   :  { %v3957_v51 = vrot.slane %v3949_v16, %v5069_v54  ;;  %v3964_v8 = vrot.slane %v3950_v61, %v5069_v54 }
 0xfe7   :  { %v3902_v31 = vpop.f32.mrf.mxu1  ;;  %v3943_v50 = vpop.f32.mrf.mxu0 }
 0xfe8   :  { %v3965_v6 = vcombine.low %v3957_v51, %v3964_v8 }
 0xfea   :  { %v3967_v7 = vadd.f32 %v3965_v6, %v5586_v29 }
 0xfec   :  { %v4372_v62 = vmul.f32 -1.442695, %v3967_v7 }
 0xfee   :  { %4562 = vpow2.f32 %v4372_v62 }
 0xffb   :  { %v4563_v1 = vpop.eup %4562 }
 0xffc   :  { %v3971_v47 = vadd.f32 1.0, %v4563_v1 }
 0xffe   :  { %4564 = vrcp.f32 %v3971_v47 }
0x100b   :  { %v4565_v48 = vpop.eup %4564 }
0x100c   :  { %v3975_v59 = vrot.slane %v4565_v48, 4  ;;  %v3979_v20 = vrot.slane %v4565_v48, 2  ;;  %v3985_v26 = vrot.slane %v4565_v48, 6 }
0x100e   :  { %v3977_v19 = vmul.f32 2.0, %v3975_v59  ;;  %v3981_v21 = vmul.f32 %v3979_v20, %v5775_v43  ;;  %v4640_v43 = vld [vmem:[#allocation10 + $0x128] ss:$16 sps:$4 sm:$0xff]  }
0x1010   :  { %v4373_v0 = vadd.f32 -1.0, %v3977_v19 }
0x1012   :  { %v3982_v23 = vmul.f32 %v4565_v48, %v4373_v0 }
0x1014   :  { %v5814_v24 = vadd.f32 %v3982_v23, %v3981_v21 }
0x1016   :  { %4566 = vtanh.f32 %v5814_v24 }
0x1023   :  { %v4567_v44 = vpop.eup %4566 }
0x1024   :  { %v3987_v29 = vmul.f32 %v4567_v44, %v3985_v26 }
0x1026   :  { %3988 = vst [vmem:[#allocation3 + $0xa] sm:$0x3] %v3987_v29  ;;  %3989 = vst [vmem:[#allocation4 + $0x4] sm:$0x3] %v3987_v29  ;;  %v3991_v22 = vpack.c.bf16 %v3987_v29, %v3987_v29 }
0x1028   :  { %4025 = vmatmul.mubr.bf16.vlgmr.msra.gmra.mxu1 %v3991_v22  ;;  %4066 = vmatmul.mubr.bf16.vlgmr.msra.gmra.mxu0 %v3991_v22 }
0x1029   :  { %4122 = vmatpush1.bf16.msra.mxu1 %v4615_v53  ;;  %4163 = vmatpush1.bf16.msra.mxu0 %v4616_v32 }
0x102a   :  { %4123 = vmatprep.subr.bf16.mxu1 %v4617_v3  ;;  %4164 = vmatprep.subr.bf16.mxu0 %v4618_v28 }
0x102b   :  { %4153 = vmatprep.mubr.bf16.mxu1 %v5879_v39  ;;  %4194 = vmatprep.mubr.bf16.mxu0 %v5879_v39  ;;  %v4629_v39 = vld [vmem:[#allocation10 + $0x164] ss:$16 sps:$4 sm:$0xff]  }
0x102d   :  { %4124 = vmatpush1.bf16.msra.mxu1 %v4619_v37  ;;  %4165 = vmatpush1.bf16.msra.mxu0 %v4620_v15 }
0x102e   :  { %4125 = vmatprep.subr.bf16.mxu1 %v4621_v57  ;;  %4166 = vmatprep.subr.bf16.mxu0 %v4622_v12 }
0x1031   :  { %4126 = vmatpush1.bf16.msra.mxu1 %v4623_v38  ;;  %4167 = vmatpush1.bf16.msra.mxu0 %v4624_v18 }
0x1032   :  { %4127 = vmatprep.subr.bf16.mxu1 %v4625_v42  ;;  %4168 = vmatprep.subr.bf16.mxu0 %v4626_v45 }
0x1035   :  { %4128 = vmatpush1.bf16.msra.mxu1 %v4627_v52  ;;  %4169 = vmatpush1.bf16.msra.mxu0 %v4628_v13 }
0x1036   :  { %4129 = vmatprep.subr.bf16.mxu1 %v4629_v39  ;;  %4170 = vmatprep.subr.bf16.mxu0 %v4630_v11 }
0x1039   :  { %4130 = vmatpush1.bf16.msra.mxu1 %v4631_v10  ;;  %4171 = vmatpush1.bf16.msra.mxu0 %v4632_v34 }
0x103a   :  { %4131 = vmatprep.subr.bf16.mxu1 %v4633_v55  ;;  %4172 = vmatprep.subr.bf16.mxu0 %v4634_v17 }
0x103d   :  { %4132 = vmatpush1.bf16.msra.mxu1 %v4635_v9  ;;  %4173 = vmatpush1.bf16.msra.mxu0 %v4636_v56 }
0x103e   :  { %4133 = vmatprep.subr.bf16.mxu1 %v4637_v36  ;;  %4174 = vmatprep.subr.bf16.mxu0 %v4638_v30 }
0x1041   :  { %4134 = vmatpush1.bf16.msra.mxu1 %v4639_v40  ;;  %4175 = vmatpush1.bf16.msra.mxu0 %v4640_v43  ;;  %v5899_v40 = vld [vmem:[#allocation16_spill] sm:$0xff] }
0x1042   :  { %4135 = vmatprep.subr.bf16.mxu1 %v4641_v27  ;;  %4176 = vmatprep.subr.bf16.mxu0 %v4642_v41  ;;  %v4249_v27 = vld [vmem:[#allocation4 + $0xe] sm:$0x3]  ;;  %v5900_v41 = vld [vmem:[#allocation15_spill] sm:$0xff] }
0x1045   :  { %4136 = vmatpush1.bf16.msra.mxu1 %v4643_v5  ;;  %4177 = vmatpush1.bf16.msra.mxu0 %v4644_v60 }
0x10e8   :  { %v4026_v63 = vpop.f32.mrf.mxu1  ;;  %v4067_v2 = vpop.f32.mrf.mxu0 }
0x10ea   :  { %v4028_v46 = vpop.f32.mrf.mxu1  ;;  %v4069_v25 = vpop.f32.mrf.mxu0 }
0x10eb   :  { %v4078_v49 = vcombine.low %v4026_v63, %v4028_v46  ;;  %v4079_v4 = vcombine.low %v4067_v2, %v4069_v25 }
0x10ec   :  { %v4030_v16 = vpop.f32.mrf.mxu1  ;;  %v4071_v61 = vpop.f32.mrf.mxu0 }
0x10ed   :  { %v4086_v35 = vrot.slane %v4078_v49, %v5069_v54  ;;  %v4093_v58 = vrot.slane %v4079_v4, %v5069_v54  ;;  %v4271_v4 = vstv %s5845_s8 }
0x10ee   :  { %v4031_v51 = vpop.f32.mrf.mxu1  ;;  %v4072_v8 = vpop.f32.mrf.mxu0 }
0x10ef   :  { %v4094_v31 = vcombine.low %v4086_v35, %v4093_v58 }
0x10f1   :  { %v4096_v50 = vadd.f32 %v4094_v31, %v5588_v33 }
0x10f3   :  { %v4374_v6 = vmul.f32 -1.442695, %v4096_v50 }
0x10f5   :  { %4568 = vpow2.f32 %v4374_v6 }
0x1102   :  { %v4569_v7 = vpop.eup %4568 }
0x1103   :  { %v4100_v62 = vadd.f32 1.0, %v4569_v7 }
0x1105   :  { %4570 = vrcp.f32 %v4100_v62 }
0x1112   :  { %v4571_v1 = vpop.eup %4570 }
0x1113   :  { %v4104_v47 = vrot.slane %v4571_v1, 4  ;;  %v4108_v59 = vrot.slane %v4571_v1, 2  ;;  %v4114_v23 = vrot.slane %v4571_v1, 6 }
0x1115   :  { %v4106_v48 = vmul.f32 2.0, %v4104_v47  ;;  %v4110_v20 = vmul.f32 %v4108_v59, %v5814_v24 }
0x1117   :  { %v4375_v19 = vadd.f32 -1.0, %v4106_v48 }
0x1119   :  { %v4111_v0 = vmul.f32 %v4571_v1, %v4375_v19 }
0x111b   :  { %v4112_v21 = vadd.f32 %v4111_v0, %v4110_v20 }
0x111d   :  { %4572 = vtanh.f32 %v4112_v21 }
0x112a   :  { %v4573_v26 = vpop.eup %4572 }
0x112b   :  { %v4116_v44 = vmul.f32 %v4573_v26, %v4114_v23 }
0x112d   :  { %4117 = vst [vmem:[#allocation3 + $0xc] sm:$0x3] %v4116_v44  ;;  %4118 = vst [vmem:[#allocation4 + $0x2] sm:$0x3] %v4116_v44  ;;  %v4120_v33 = vpack.c.bf16 %v4116_v44, %v4116_v44 }
0x112f   :  { %4154 = vmatmul.mubr.bf16.vlgmr.msra.gmra.mxu1 %v4120_v33  ;;  %4195 = vmatmul.mubr.bf16.vlgmr.msra.gmra.mxu0 %v4120_v33 }
0x11ef   :  { %v4155_v29 = vpop.f32.mrf.mxu1  ;;  %v4196_v22 = vpop.f32.mrf.mxu0 }
0x11f1   :  { %v4157_v53 = vpop.f32.mrf.mxu1  ;;  %v4198_v32 = vpop.f32.mrf.mxu0 }
0x11f2   :  { %v4207_v3 = vcombine.low %v4155_v29, %v4157_v53  ;;  %v4208_v28 = vcombine.low %v4196_v22, %v4198_v32 }
0x11f3   :  { %v4159_v37 = vpop.f32.mrf.mxu1  ;;  %v4200_v15 = vpop.f32.mrf.mxu0 }
0x11f4   :  { %v4215_v24 = vrot.slane %v4207_v3, %v5069_v54  ;;  %v4222_v57 = vrot.slane %v4208_v28, %v5069_v54 }
0x11f5   :  { %v4160_v12 = vpop.f32.mrf.mxu1  ;;  %v4201_v38 = vpop.f32.mrf.mxu0 }
0x11f6   :  { %v4223_v18 = vcombine.low %v4215_v24, %v4222_v57 }
0x11f8   :  { %v4225_v42 = vadd.f32 %v4223_v18, %v5590_v14  ;;  %v4250_v14 = vld [vmem:[%s5844_s7] sm:$0x3] }
0x11f9   :  { %v4259_v43 = vrot.slane %v4250_v14, %v5899_v40  ;;  %v4255_v5 = vrot.slane %v4250_v14, %v5900_v41 }
0x11fa   :  { %v4376_v45 = vmul.f32 -1.442695, %v4225_v42 }
0x11fb   :  { %v4263_v60 = vmul.f32 %v4259_v43, %v4249_v27 }
0x11fc   :  { %4574 = vpow2.f32 %v4376_v45 }
0x11fd   :  { %v4266_v25 = vsel %vm4264_vm0, %v4263_v60, 0.0 }
0x1209   :  { %v4575_v52 = vpop.eup %4574 }
0x120a   :  { %v4229_v13 = vadd.f32 1.0, %v4575_v52 }
0x120c   :  { %4576 = vrcp.f32 %v4229_v13 }
0x1219   :  { %v4577_v39 = vpop.eup %4576 }
0x121a   :  { %v4233_v11 = vrot.slane %v4577_v39, 4  ;;  %v4237_v34 = vrot.slane %v4577_v39, 2  ;;  %v4243_v54 = vrot.slane %v4577_v39, 6 }
0x121c   :  { %v4235_v10 = vmul.f32 2.0, %v4233_v11  ;;  %v4239_v17 = vmul.f32 %v4237_v34, %v4112_v21 }
0x121e   :  { %v4377_v55 = vadd.f32 -1.0, %v4235_v10 }
0x1220   :  { %v4240_v9 = vmul.f32 %v4577_v39, %v4377_v55 }
0x1222   :  { %v4241_v56 = vadd.f32 %v4240_v9, %v4239_v17 }
0x1224   :  { %4578 = vtanh.f32 %v4241_v56 }
0x1231   :  { %v4579_v36 = vpop.eup %4578 }
0x1232   :  { %v4245_v30 = vmul.f32 %v4579_v36, %v4243_v54 }
0x1234   :  { %4246 = vst [vmem:[#allocation3 + $0xe] sm:$0x3] %v4245_v30  ;;  %4247 = vst [vmem:[#allocation4] sm:$0x3] %v4245_v30 }
0x123b   :  { %v4248_v63 = vld [vmem:[#allocation3 + $0xe] sm:$0x3] }
0x123c   :  { %v4262_v2 = vmul.f32 %v4255_v5, %v4248_v63 }
0x123e   :  { %v4265_v46 = vsel %vm4264_vm0, %v4262_v2, 0.0 }
0x123f   :  { %v4267_v49 = vadd.f32 %v4266_v25, %v4265_v46 }
0x1241   :  { %4268 = vadd.xlane.f32.xlu0 %v4267_v49 }
0x12ca   :  { %v4269_v16 = vpop.xlane.xlu0 %4268 }
0x12cb   :  { %v4272_v61 = vadd.f32 %v4271_v4, %v4269_v16 }
0x12cd   :  { %4274 = vst.msk [vmem:[%s5846_s9] sm:$0x3] %vm4273_vm1, %v4272_v61 }
0x12ce   :  { %4279 = vsyncpa [#allocation7], 1 }
0x12cf   :  { %4280 = vsyncpa [#allocation9], 1 }

</bundles_post_ra>
